<compile_context>
chip_gen: v7x
topology: tpu7x:2x2x1
jax: 0.10.0
libtpu: 0.0.40
codegen_flags: <defaults>
</compile_context>

<pallas_src>
import functools
import math

import jax
import jax.numpy as jnp
from jax import lax
from jax.experimental import pallas as pl
from jax.experimental.pallas import tpu as pltpu

BIAS = False    # reference `nn.Linear(d_model, head_size, bias=BIAS)`
RELU = False    # reference `if RELU: relu(k/q/v)`
EPS = 1e-5      # nn.LayerNorm default eps


# ---------------------------------------------------------------------------
# helpers traced inside the Pallas kernels (pure jnp on VMEM-resident values)
# ---------------------------------------------------------------------------
def _layernorm(v, g, b):
    # v: (rows, D) f32 ; g, b: (1, D) f32
    mu = jnp.mean(v, axis=-1, keepdims=True)
    var = jnp.mean(jnp.square(v - mu), axis=-1, keepdims=True)
    return (v - mu) * lax.rsqrt(var + EPS) * g + b


def _masked_softmax(wei, maskf):
    # wei, maskf: (N, Tq, Tk) f32, maskf in {0,1}.  Matches torch semantics:
    # masked_fill(-inf) -> softmax -> fully-masked rows set to 0.
    neg = jnp.float32(-1e30)
    wm = wei * maskf + neg * (1.0 - maskf)
    m = jnp.max(wm, axis=-1, keepdims=True)
    p = jnp.exp(wm - m) * maskf
    denom = jnp.sum(p, axis=-1, keepdims=True)
    inv = pl.reciprocal(jnp.maximum(denom, jnp.float32(1e-30)), approx=True)
    return jnp.where(denom > 0.0, p * inv, 0.0)


def _split_heads(x2, bq, t, num_heads, head_size):
    # (bq*t, num_heads*head_size) f32 -> (num_heads*bq, t, head_size), h-major.
    parts = [x2[:, h * head_size:(h + 1) * head_size].reshape(bq, t, head_size)
             for h in range(num_heads)]
    return jnp.concatenate(parts, axis=0) if num_heads > 1 else parts[0]


def _mha(q2, kv2, wq, wk, wv, pw, pb, mask3, *, bq, tq, tk, num_heads,
         head_size):
    """Fused multi-head attention on flattened (rows, D) slabs.

    q2:(bq*tq,D) / kv2:(bq*tk,D) f32; wq/wk/wv/pw are bf16 (wq pre-scaled by
    head_size**-0.5 in the wrapper); mask3:(num_heads*bq, tq, tk) f32 {0,1}.
    Returns (bq*tq, D) f32.
    """
    d_model = num_heads * head_size
    q2b = q2.astype(jnp.bfloat16)
    kv2b = kv2.astype(jnp.bfloat16)
    # full-width Q/K/V projections: one (rows, D) x (D, D) MXU matmul each.
    q = jnp.dot(q2b, wq, preferred_element_type=jnp.float32)
    k = jnp.dot(kv2b, wk, preferred_element_type=jnp.float32)
    v = jnp.dot(kv2b, wv, preferred_element_type=jnp.float32)
    if RELU:
        q = jnp.maximum(q, 0.0)
        k = jnp.maximum(k, 0.0)
        v = jnp.maximum(v, 0.0)
    qh = _split_heads(q, bq, tq, num_heads, head_size).astype(jnp.bfloat16)
    kh = _split_heads(k, bq, tk, num_heads, head_size).astype(jnp.bfloat16)
    vh = _split_heads(v, bq, tk, num_heads, head_size).astype(jnp.bfloat16)
    # batched (batch-elem x head) attention, contracting the last dims (no .T)
    # TODO(synk): for long sequences, flash-style tiling over the key axis
    # would bound the (N, Tq, Tk) score footprint (v7x has 64 MiB VMEM).
    wei = jnp.einsum("bqd,bkd->bqk", qh, kh,
                     preferred_element_type=jnp.float32)
    w = _masked_softmax(wei, mask3).astype(jnp.bfloat16)
    oh = jnp.einsum("bqk,bkd->bqd", w, vh,
                    preferred_element_type=jnp.float32)
    # output projection accumulated per head -> no lane concatenate.
    acc = jnp.zeros((bq * tq, d_model), jnp.float32)
    for h in range(num_heads):
        oh_h = oh[h * bq:(h + 1) * bq].reshape(bq * tq, head_size)
        acc = acc + jnp.dot(oh_h.astype(jnp.bfloat16),
                            pw[h * head_size:(h + 1) * head_size, :],
                            preferred_element_type=jnp.float32)
    return acc + pb


# ---------------------------------------------------------------------------
# fused encoder+decoder stack kernel
# grid = (batch_blocks, num_layers); x/y carried in VMEM scratch over layers.
# ---------------------------------------------------------------------------
def seq2seq_stack_kernel(vlx_ref, vly_ref,                 # scalar prefetch
                         x_ref, y_ref,                     # (bblk,Tx,D)/(bblk,Ty,D)
                         e_ln1_g, e_ln1_b, e_ln2_g, e_ln2_b,   # (1, D) f32
                         e_wq, e_wk, e_wv, e_pw,               # (D, D) bf16
                         e_pb,                                  # (1, D) f32
                         d_ln1_g, d_ln1_b, d_ln2_g, d_ln2_b,
                         d_ln3_g, d_ln3_b, d_ln4_g, d_ln4_b,
                         sa_wq, sa_wk, sa_wv, sa_pw, sa_pb,
                         ca_wq, ca_wk, ca_wv, ca_pw, ca_pb,
                         y_out_ref,                         # (bblk, Ty, D) f32
                         x_buf, y_buf,                      # VMEM scratch f32
                         *, num_heads, head_size, bblk, causal):
    bq, tx, d = x_ref.shape
    _, ty, _ = y_ref.shape
    l = pl.program_id(1)
    b0 = pl.program_id(0) * bblk

    # layer 0: load the embeddings into the resident activation buffers.
    @pl.when(l == 0)
    def _():
        x_buf[...] = x_ref[...]
        y_buf[...] = y_ref[...]

    xf = x_buf[...].reshape(bq * tx, d)
    yf = y_buf[...].reshape(bq * ty, d)

    # validity / causal masks (cheap; recomputed per layer step).
    r_xx = lax.broadcasted_iota(jnp.int32, (tx, tx), 0)
    c_xx = lax.broadcasted_iota(jnp.int32, (tx, tx), 1)
    r_yy = lax.broadcasted_iota(jnp.int32, (ty, ty), 0)
    c_yy = lax.broadcasted_iota(jnp.int32, (ty, ty), 1)
    r_yx = lax.broadcasted_iota(jnp.int32, (ty, tx), 0)
    c_yx = lax.broadcasted_iota(jnp.int32, (ty, tx), 1)
    enc_masks, sa_masks, ca_masks = [], [], []
    for i in range(bblk):
        vlx = vlx_ref[b0 + i]
        vly = vly_ref[b0 + i]
        enc_masks.append(((r_xx < vlx) & (c_xx < vlx)).astype(jnp.float32))
        sm = (r_yy < vly) & (c_yy < vly)
        cm = (r_yx < vly) & (c_yx < vlx)
        if causal:
            sm = sm & (c_yy <= r_yy)
            cm = cm & (c_yx <= r_yx)
        sa_masks.append(sm.astype(jnp.float32))
        ca_masks.append(cm.astype(jnp.float32))

    def tile_heads(ms):
        mb = jnp.stack(ms, axis=0)
        return jnp.concatenate([mb] * num_heads, axis=0) if num_heads > 1 else mb

    enc_m3 = tile_heads(enc_masks)
    sa_m3 = tile_heads(sa_masks)
    ca_m3 = tile_heads(ca_masks)

    # ---- encoder Block: x = x + SA(ln1(x)); x = x + relu(ln2(x)) ----
    ln1x = _layernorm(xf, e_ln1_g[...], e_ln1_b[...])
    x1 = xf + _mha(ln1x, ln1x, e_wq[...], e_wk[...], e_wv[...],
                   e_pw[...], e_pb[...], enc_m3,
                   bq=bq, tq=tx, tk=tx,
                   num_heads=num_heads, head_size=head_size)
    ln2x = _layernorm(x1, e_ln2_g[...], e_ln2_b[...])
    x2 = x1 + jnp.maximum(ln2x, 0.0)

    # ---- decoder Decoder_Block on (x2, y) ----
    # 1) y = y + SA(ln1(y))  (masked, causal self-attention)
    dln1y = _layernorm(yf, d_ln1_g[...], d_ln1_b[...])
    y1 = yf + _mha(dln1y, dln1y, sa_wq[...], sa_wk[...], sa_wv[...],
                   sa_pw[...], sa_pb[...], sa_m3,
                   bq=bq, tq=ty, tk=ty,
                   num_heads=num_heads, head_size=head_size)
    # 2) y = y + CA(ln2(x), ln3(y))  (queries from y, keys/values from x)
    dln2x = _layernorm(x2, d_ln2_g[...], d_ln2_b[...])
    dln3y = _layernorm(y1, d_ln3_g[...], d_ln3_b[...])
    y2 = y1 + _mha(dln3y, dln2x, ca_wq[...], ca_wk[...], ca_wv[...],
                   ca_pw[...], ca_pb[...], ca_m3,
                   bq=bq, tq=ty, tk=tx,
                   num_heads=num_heads, head_size=head_size)
    # 3) y = y + FeedForward(ln4(y))   (FeedForward == ReLU)
    dln4y = _layernorm(y2, d_ln4_g[...], d_ln4_b[...])
    y3 = y2 + jnp.maximum(dln4y, 0.0)

    x_buf[...] = x2.reshape(bq, tx, d)
    y_buf[...] = y3.reshape(bq, ty, d)
    # output block index only depends on the batch axis, so HBM writeback
    # happens once per batch block (after the last layer).
    y_out_ref[...] = y3.reshape(bq, ty, d)


def lm_head_kernel(y_ref, w_ref, b_ref, o_ref):
    o_ref[...] = (jnp.dot(y_ref[...].astype(jnp.bfloat16), w_ref[...],
                          preferred_element_type=jnp.float32) + b_ref[...])


# ---------------------------------------------------------------------------
# wrappers
# ---------------------------------------------------------------------------
def _pick_bblk(batch):
    # >= 2 grid steps along the "parallel" axis feeds both TensorCores on v7x;
    # bblk > 1 amortises per-grid-step overhead and gives the MXU more rows.
    if batch >= 2 and batch % 2 == 0:
        return batch // 2
    return 1


def seq2seq_stack_pallas(x, y, valid_lens_x, valid_lens_y, enc_params,
                         dec_params, *, num_heads, causal=True):
    B, Tx, D = x.shape
    _, Ty, _ = y.shape
    L = len(enc_params)
    head_size = D // num_heads
    scale = head_size ** -0.5
    bblk = _pick_bblk(B)
    bf16 = jnp.bfloat16

    def vstack(ps, k):                         # (L, 1, D) f32
        return jnp.stack([p[k] for p in ps], axis=0)

    def mstack(ps, k, s=1.0):                  # (L, D, D) bf16
        return (jnp.stack([p[k] for p in ps], axis=0) * s).astype(bf16)

    kernel = functools.partial(seq2seq_stack_kernel, num_heads=num_heads,
                               head_size=head_size, bblk=bblk, causal=causal)

    vecL = pl.BlockSpec((None, 1, D), lambda i, l, *_: (l, 0, 0))
    matL = pl.BlockSpec((None, D, D), lambda i, l, *_: (l, 0, 0))
    xspec = pl.BlockSpec((bblk, Tx, D), lambda i, l, *_: (i, 0, 0))
    yspec = pl.BlockSpec((bblk, Ty, D), lambda i, l, *_: (i, 0, 0))

    in_specs = ([xspec, yspec]
                + [vecL] * 4 + [matL] * 4 + [vecL]     # encoder block params
                + [vecL] * 8                           # decoder LayerNorms
                + [matL] * 4 + [vecL]                  # decoder self-attn
                + [matL] * 4 + [vecL])                 # decoder cross-attn

    grid_spec = pltpu.PrefetchScalarGridSpec(
        num_scalar_prefetch=2,
        grid=(B // bblk, L),
        in_specs=in_specs,
        out_specs=yspec,
        scratch_shapes=[pltpu.VMEM((bblk, Tx, D), jnp.float32),
                        pltpu.VMEM((bblk, Ty, D), jnp.float32)],
    )
    return pl.pallas_call(
        kernel,
        grid_spec=grid_spec,
        out_shape=jax.ShapeDtypeStruct((B, Ty, D), jnp.float32),
        compiler_params=pltpu.CompilerParams(
            dimension_semantics=("parallel", "arbitrary")),
    )(valid_lens_x, valid_lens_y, x, y,
      vstack(enc_params, "ln1_g"), vstack(enc_params, "ln1_b"),
      vstack(enc_params, "ln2_g"), vstack(enc_params, "ln2_b"),
      mstack(enc_params, "wq", scale), mstack(enc_params, "wk"),
      mstack(enc_params, "wv"), mstack(enc_params, "pw"),
      vstack(enc_params, "pb"),
      vstack(dec_params, "ln1_g"), vstack(dec_params, "ln1_b"),
      vstack(dec_params, "ln2_g"), vstack(dec_params, "ln2_b"),
      vstack(dec_params, "ln3_g"), vstack(dec_params, "ln3_b"),
      vstack(dec_params, "ln4_g"), vstack(dec_params, "ln4_b"),
      mstack(dec_params, "sa_wq", scale), mstack(dec_params, "sa_wk"),
      mstack(dec_params, "sa_wv"), mstack(dec_params, "sa_pw"),
      vstack(dec_params, "sa_pb"),
      mstack(dec_params, "ca_wq", scale), mstack(dec_params, "ca_wk"),
      mstack(dec_params, "ca_wv"), mstack(dec_params, "ca_pw"),
      vstack(dec_params, "ca_pb"))


def lm_head_pallas(y, w, b):
    B, Ty, D = y.shape
    V = w.shape[1]
    out = pl.pallas_call(
        lm_head_kernel,
        out_shape=jax.ShapeDtypeStruct((B * Ty, V), jnp.float32),
    )(y.reshape(B * Ty, D), w.astype(jnp.bfloat16), b)
    return out.reshape(B, Ty, V)


def positional_encoding(max_len, d_model):
    pos = jnp.arange(max_len, dtype=jnp.float32)[:, None]
    div = jnp.exp(jnp.arange(0, d_model, 2, dtype=jnp.float32) / d_model
                  * (-math.log(10000.0)))
    pe = jnp.zeros((max_len, d_model), jnp.float32)
    pe = pe.at[:, 0::2].set(jnp.sin(pos * div))
    pe = pe.at[:, 1::2].set(jnp.cos(pos * div))
    return pe


def seq2seq_forward(x_tok, y_tok, valid_lens_x, valid_lens_y, params, *,
                    num_heads, num_layers):
    # TODO(synk): token-embedding gather, positional-encoding add and the
    # generate()/sampling loop are left in XLA (data-dependent gather /
    # sampling have no clean Pallas equivalent at this size).
    del num_layers  # layer count comes from the stacked parameter lists
    Tx = x_tok.shape[1]
    Ty = y_tok.shape[1]
    x = params["emb_enc"][x_tok] + params["pe"][None, :Tx, :]
    y = params["emb_dec"][y_tok] + params["pe"][None, :Ty, :]
    y = seq2seq_stack_pallas(x, y, valid_lens_x, valid_lens_y,
                             params["enc"], params["dec"],
                             num_heads=num_heads)
    return lm_head_pallas(y, params["lm_w"], params["lm_b"])


# ---------------------------------------------------------------------------
# pure-JAX reference mimicking the PyTorch forward (validation only)
# ---------------------------------------------------------------------------
def _ref_ln(v, g, b):
    mu = jnp.mean(v, axis=-1, keepdims=True)
    var = jnp.mean(jnp.square(v - mu), axis=-1, keepdims=True)
    return (v - mu) / jnp.sqrt(var + EPS) * g + b


def _ref_mha(q_in, kv_in, wq, wk, wv, pw, pb, mask, num_heads, head_size):
    bf16 = jnp.bfloat16
    B, Tq, D = q_in.shape
    Tk = kv_in.shape[1]
    q = jnp.einsum("btd,de->bte", q_in.astype(bf16), wq.astype(bf16),
                   preferred_element_type=jnp.float32)
    k = jnp.einsum("btd,de->bte", kv_in.astype(bf16), wk.astype(bf16),
                   preferred_element_type=jnp.float32)
    v = jnp.einsum("btd,de->bte", kv_in.astype(bf16), wv.astype(bf16),
                   preferred_element_type=jnp.float32)
    if RELU:
        q, k, v = map(jax.nn.relu, (q, k, v))
    qh = q.reshape(B, Tq, num_heads, head_size)
    kh = k.reshape(B, Tk, num_heads, head_size)
    vh = v.reshape(B, Tk, num_heads, head_size)
    wei = jnp.einsum("bqhd,bkhd->bhqk", qh.astype(bf16), kh.astype(bf16),
                     preferred_element_type=jnp.float32) * head_size ** -0.5
    m = mask[:, None]                                     # (B,1,Tq,Tk)
    wei = jnp.where(m > 0, wei, -jnp.inf)
    dead = jnp.all(m <= 0, axis=-1, keepdims=True)
    w = jnp.where(dead, 0.0, jax.nn.softmax(wei, axis=-1))
    out = jnp.einsum("bhqk,bkhd->bqhd", w.astype(bf16), vh.astype(bf16),
                     preferred_element_type=jnp.float32).reshape(B, Tq, D)
    return jnp.einsum("btd,de->bte", out.astype(bf16), pw.astype(bf16),
                      preferred_element_type=jnp.float32) + pb


def _ref_pad_mask(vl, T):
    v = (jnp.arange(T)[None, :] < vl[:, None]).astype(jnp.float32)
    return v[:, :, None] * v[:, None, :]


def _ref_cross_mask(vlx, vly, Tx, Ty):
    xv = (jnp.arange(Tx)[None, :] < vlx[:, None]).astype(jnp.float32)
    yv = (jnp.arange(Ty)[None, :] < vly[:, None]).astype(jnp.float32)
    return yv[:, :, None] * xv[:, None, :]


def _ref_encoder_block(x, vlx, p, num_heads):
    _, Tx, D = x.shape
    hs = D // num_heads
    mask = _ref_pad_mask(vlx, Tx)
    h = _ref_ln(x, p["ln1_g"], p["ln1_b"])
    x = x + _ref_mha(h, h, p["wq"], p["wk"], p["wv"], p["pw"], p["pb"],
                     mask, num_heads, hs)
    h = _ref_ln(x, p["ln2_g"], p["ln2_b"])
    return x + jax.nn.relu(h)


def _ref_decoder_block(x, y, vlx, vly, p, num_heads):
    _, Ty, D = y.shape
    Tx = x.shape[1]
    hs = D // num_heads
    sa_mask = _ref_pad_mask(vly, Ty) * jnp.tril(jnp.ones((Ty, Ty)))[None]
    ca_mask = (_ref_cross_mask(vlx, vly, Tx, Ty)
               * jnp.tril(jnp.ones((Ty, Tx)))[None])
    h = _ref_ln(y, p["ln1_g"], p["ln1_b"])
    y = y + _ref_mha(h, h, p["sa_wq"], p["sa_wk"], p["sa_wv"],
                     p["sa_pw"], p["sa_pb"], sa_mask, num_heads, hs)
    hx = _ref_ln(x, p["ln2_g"], p["ln2_b"])
    hy = _ref_ln(y, p["ln3_g"], p["ln3_b"])
    y = y + _ref_mha(hy, hx, p["ca_wq"], p["ca_wk"], p["ca_wv"],
                     p["ca_pw"], p["ca_pb"], ca_mask, num_heads, hs)
    h = _ref_ln(y, p["ln4_g"], p["ln4_b"])
    return y + jax.nn.relu(h)


def ref_seq2seq(x_tok, y_tok, vlx, vly, params, num_heads, num_layers):
    Tx = x_tok.shape[1]
    Ty = y_tok.shape[1]
    x = params["emb_enc"][x_tok] + params["pe"][None, :Tx, :]
    y = params["emb_dec"][y_tok] + params["pe"][None, :Ty, :]
    for layer in range(num_layers):
        x = _ref_encoder_block(x, vlx, params["enc"][layer], num_heads)
        y = _ref_decoder_block(x, y, vlx, vly, params["dec"][layer], num_heads)
    return (jnp.einsum("btd,dv->btv", y.astype(jnp.bfloat16),
                       params["lm_w"].astype(jnp.bfloat16),
                       preferred_element_type=jnp.float32) + params["lm_b"])


# ---------------------------------------------------------------------------
def init_params(key, *, d_model, num_layers, vocab_src, vocab_tgt, max_len):
    keys = iter(jax.random.split(key, 8 + num_layers * 32))

    def nrm(shape, s=0.1):
        return jax.random.normal(next(keys), shape, jnp.float32) * s

    def ln():
        return 1.0 + nrm((1, d_model)), nrm((1, d_model))

    def attn(prefix=""):
        # weights stored already transposed for right-multiplication: (in, out)
        return {prefix + "wq": nrm((d_model, d_model)),
                prefix + "wk": nrm((d_model, d_model)),
                prefix + "wv": nrm((d_model, d_model)),
                prefix + "pw": nrm((d_model, d_model)),
                prefix + "pb": nrm((1, d_model))}

    enc, dec = [], []
    for _ in range(num_layers):
        g1, b1 = ln()
        g2, b2 = ln()
        layer = {"ln1_g": g1, "ln1_b": b1, "ln2_g": g2, "ln2_b": b2}
        layer.update(attn())
        enc.append(layer)
    for _ in range(num_layers):
        g1, b1 = ln()
        g2, b2 = ln()
        g3, b3 = ln()
        g4, b4 = ln()
        layer = {"ln1_g": g1, "ln1_b": b1, "ln2_g": g2, "ln2_b": b2,
                 "ln3_g": g3, "ln3_b": b3, "ln4_g": g4, "ln4_b": b4}
        layer.update(attn("sa_"))
        layer.update(attn("ca_"))
        dec.append(layer)

    return {
        "emb_enc": nrm((vocab_src, d_model), 0.5),
        "emb_dec": nrm((vocab_tgt, d_model), 0.5),
        "pe": positional_encoding(max_len, d_model),
        "enc": enc,
        "dec": dec,
        "lm_w": nrm((d_model, vocab_tgt)),
        "lm_b": nrm((1, vocab_tgt)),
    }


if __name__ == "__main__":
    B, T, D, NUM_HEADS, NUM_LAYERS = 2, 8, 32, 4, 2
    VOCAB_SRC, VOCAB_TGT = 24, 20

    key = jax.random.PRNGKey(0)
    kp, kx, ky = jax.random.split(key, 3)
    params = init_params(kp, d_model=D, num_layers=NUM_LAYERS,
                         vocab_src=VOCAB_SRC, vocab_tgt=VOCAB_TGT, max_len=T)

    x_tok = jax.random.randint(kx, (B, T), 0, VOCAB_SRC, dtype=jnp.int32)
    y_tok = jax.random.randint(ky, (B, T), 0, VOCAB_TGT, dtype=jnp.int32)
    # The torch module's cross-attention mask implicitly requires
    # max(valid_lens) == padded length, so keep one full-length sequence.
    valid_lens_x = jnp.array([T, 5], dtype=jnp.int32)
    valid_lens_y = jnp.array([T, 6], dtype=jnp.int32)

    fwd = jax.jit(functools.partial(seq2seq_forward, num_heads=NUM_HEADS,
                                    num_layers=NUM_LAYERS))
    logits = jax.block_until_ready(
        fwd(x_tok, y_tok, valid_lens_x, valid_lens_y, params))

    ref = jax.block_until_ready(
        ref_seq2seq(x_tok, y_tok, valid_lens_x, valid_lens_y, params,
                    NUM_HEADS, NUM_LAYERS))

    assert logits.shape == (B, T, VOCAB_TGT)
    err = float(jnp.max(jnp.abs(logits - ref)))
    assert jnp.allclose(logits, ref, atol=3e-2, rtol=3e-2), err
    print("KERNEL_OK")
</pallas_src>

<mosaic_0001>
module attributes {stable_mosaic.version = 11 : i64} {
  func.func @lm_head_kernel(%arg0: memref<16x32xf32, #tpu.memory_space<vmem>>, %arg1: memref<32x20xbf16, #tpu.memory_space<vmem>>, %arg2: memref<1x20xf32, #tpu.memory_space<vmem>>, %arg3: memref<16x20xf32, #tpu.memory_space<vmem>>) attributes {dimension_semantics = [], scalar_prefetch = 0 : i64, scratch_operands = 0 : i64, tpu.core_type = #tpu.core_type<tc>} {
    %c0 = arith.constant 0 : index
    %c0_0 = arith.constant 0 : index
    %0 = vector.load %arg0[%c0, %c0_0] : memref<16x32xf32, #tpu.memory_space<vmem>>, vector<16x32xf32>
    %1 = arith.truncf %0 : vector<16x32xf32> to vector<16x32xbf16>
    %c0_1 = arith.constant 0 : index
    %c0_2 = arith.constant 0 : index
    %2 = vector.load %arg1[%c0_1, %c0_2] : memref<32x20xbf16, #tpu.memory_space<vmem>>, vector<32x20xbf16>
    %cst = arith.constant dense<0.000000e+00> : vector<16x20xf32>
    %3 = tpu.matmul %1, %2, %cst {dimension_numbers = #tpu.dot_dimension_numbers<[1], [0], [0], [1], [0, 0, 1, 1], [], []>} : vector<16x32xbf16>, vector<32x20xbf16>, vector<16x20xf32> -> vector<16x20xf32>
    %c0_3 = arith.constant 0 : index
    %c0_4 = arith.constant 0 : index
    %4 = vector.load %arg2[%c0_3, %c0_4] : memref<1x20xf32, #tpu.memory_space<vmem>>, vector<1x20xf32>
    %5 = vector.broadcast %4 : vector<1x20xf32> to vector<16x20xf32>
    %6 = arith.addf %3, %5 : vector<16x20xf32>
    %c0_5 = arith.constant 0 : index
    %c0_6 = arith.constant 0 : index
    %7 = vector.load %arg3[%c0_5, %c0_6] : memref<16x20xf32, #tpu.memory_space<vmem>>, vector<16x20xf32>
    tpu.vector_store %arg3[%c0_5, %c0_6], %6 {strides = array<i32>} : memref<16x20xf32, #tpu.memory_space<vmem>>, vector<16x20xf32>,
    return
  }
}

module attributes {stable_mosaic.version = 11 : i64} {
  func.func @seq2seq_stack_kernel(%arg0: i32, %arg1: i32, %arg2: memref<2xi32, #tpu.memory_space<smem>>, %arg3: memref<2xi32, #tpu.memory_space<smem>>, %arg4: memref<1x8x32xf32, #tpu.memory_space<vmem>>, %arg5: memref<1x8x32xf32, #tpu.memory_space<vmem>>, %arg6: memref<1x1x32xf32, #tpu.memory_space<vmem>>, %arg7: memref<1x1x32xf32, #tpu.memory_space<vmem>>, %arg8: memref<1x1x32xf32, #tpu.memory_space<vmem>>, %arg9: memref<1x1x32xf32, #tpu.memory_space<vmem>>, %arg10: memref<1x32x32xbf16, #tpu.memory_space<vmem>>, %arg11: memref<1x32x32xbf16, #tpu.memory_space<vmem>>, %arg12: memref<1x32x32xbf16, #tpu.memory_space<vmem>>, %arg13: memref<1x32x32xbf16, #tpu.memory_space<vmem>>, %arg14: memref<1x1x32xf32, #tpu.memory_space<vmem>>, %arg15: memref<1x1x32xf32, #tpu.memory_space<vmem>>, %arg16: memref<1x1x32xf32, #tpu.memory_space<vmem>>, %arg17: memref<1x1x32xf32, #tpu.memory_space<vmem>>, %arg18: memref<1x1x32xf32, #tpu.memory_space<vmem>>, %arg19: memref<1x1x32xf32, #tpu.memory_space<vmem>>, %arg20: memref<1x1x32xf32, #tpu.memory_space<vmem>>, %arg21: memref<1x1x32xf32, #tpu.memory_space<vmem>>, %arg22: memref<1x1x32xf32, #tpu.memory_space<vmem>>, %arg23: memref<1x32x32xbf16, #tpu.memory_space<vmem>>, %arg24: memref<1x32x32xbf16, #tpu.memory_space<vmem>>, %arg25: memref<1x32x32xbf16, #tpu.memory_space<vmem>>, %arg26: memref<1x32x32xbf16, #tpu.memory_space<vmem>>, %arg27: memref<1x1x32xf32, #tpu.memory_space<vmem>>, %arg28: memref<1x32x32xbf16, #tpu.memory_space<vmem>>, %arg29: memref<1x32x32xbf16, #tpu.memory_space<vmem>>, %arg30: memref<1x32x32xbf16, #tpu.memory_space<vmem>>, %arg31: memref<1x32x32xbf16, #tpu.memory_space<vmem>>, %arg32: memref<1x1x32xf32, #tpu.memory_space<vmem>>, %arg33: memref<1x8x32xf32, #tpu.memory_space<vmem>>, %arg34: memref<1x8x32xf32, #tpu.memory_space<vmem>>, %arg35: memref<1x8x32xf32, #tpu.memory_space<vmem>>) attributes {dimension_semantics = [#tpu.dimension_semantics<parallel>, #tpu.dimension_semantics<arbitrary>], iteration_bounds = array<i64: 2, 2>, scalar_prefetch = 2 : i64, scratch_operands = 2 : i64, tpu.core_type = #tpu.core_type<tc>, window_params = [{transform_indices = @transform_0, window_bounds = array<i64: 1, 8, 32>}, {transform_indices = @transform_1, window_bounds = array<i64: 1, 8, 32>}, {transform_indices = @transform_2, window_bounds = array<i64: 1, 1, 32>}, {transform_indices = @transform_3, window_bounds = array<i64: 1, 1, 32>}, {transform_indices = @transform_4, window_bounds = array<i64: 1, 1, 32>}, {transform_indices = @transform_5, window_bounds = array<i64: 1, 1, 32>}, {transform_indices = @transform_6, window_bounds = array<i64: 1, 32, 32>}, {transform_indices = @transform_7, window_bounds = array<i64: 1, 32, 32>}, {transform_indices = @transform_8, window_bounds = array<i64: 1, 32, 32>}, {transform_indices = @transform_9, window_bounds = array<i64: 1, 32, 32>}, {transform_indices = @transform_10, window_bounds = array<i64: 1, 1, 32>}, {transform_indices = @transform_11, window_bounds = array<i64: 1, 1, 32>}, {transform_indices = @transform_12, window_bounds = array<i64: 1, 1, 32>}, {transform_indices = @transform_13, window_bounds = array<i64: 1, 1, 32>}, {transform_indices = @transform_14, window_bounds = array<i64: 1, 1, 32>}, {transform_indices = @transform_15, window_bounds = array<i64: 1, 1, 32>}, {transform_indices = @transform_16, window_bounds = array<i64: 1, 1, 32>}, {transform_indices = @transform_17, window_bounds = array<i64: 1, 1, 32>}, {transform_indices = @transform_18, window_bounds = array<i64: 1, 1, 32>}, {transform_indices = @transform_19, window_bounds = array<i64: 1, 32, 32>}, {transform_indices = @transform_20, window_bounds = array<i64: 1, 32, 32>}, {transform_indices = @transform_21, window_bounds = array<i64: 1, 32, 32>}, {transform_indices = @transform_22, window_bounds = array<i64: 1, 32, 32>}, {transform_indices = @transform_23, window_bounds = array<i64: 1, 1, 32>}, {transform_indices = @transform_24, window_bounds = array<i64: 1, 32, 32>}, {transform_indices = @transform_25, window_bounds = array<i64: 1, 32, 32>}, {transform_indices = @transform_26, window_bounds = array<i64: 1, 32, 32>}, {transform_indices = @transform_27, window_bounds = array<i64: 1, 32, 32>}, {transform_indices = @transform_28, window_bounds = array<i64: 1, 1, 32>}, {transform_indices = @transform_29, window_bounds = array<i64: 1, 8, 32>}]} {
    %c1_i32 = arith.constant 1 : i32
    %0 = arith.muli %arg0, %c1_i32 : i32
    %c0_i32 = arith.constant 0 : i32
    %1 = arith.cmpi eq, %arg1, %c0_i32 : i32
    %2 = arith.extui %1 : i1 to i32
    %c0_i32_0 = arith.constant 0 : i32
    %3 = arith.cmpi ne, %2, %c0_i32_0 : i32
    scf.if %3 {
      %c0_180 = arith.constant 0 : index
      %c0_181 = arith.constant 0 : index
      %c0_182 = arith.constant 0 : index
      %522 = vector.load %arg4[%c0_180, %c0_181, %c0_182] : memref<1x8x32xf32, #tpu.memory_space<vmem>>, vector<1x8x32xf32>
      %c0_183 = arith.constant 0 : index
      %c0_184 = arith.constant 0 : index
      %c0_185 = arith.constant 0 : index
      %523 = vector.load %arg34[%c0_183, %c0_184, %c0_185] : memref<1x8x32xf32, #tpu.memory_space<vmem>>, vector<1x8x32xf32>
      tpu.vector_store %arg34[%c0_183, %c0_184, %c0_185], %522 {strides = array<i32>} : memref<1x8x32xf32, #tpu.memory_space<vmem>>, vector<1x8x32xf32>,
      %c0_186 = arith.constant 0 : index
      %c0_187 = arith.constant 0 : index
      %c0_188 = arith.constant 0 : index
      %524 = vector.load %arg5[%c0_186, %c0_187, %c0_188] : memref<1x8x32xf32, #tpu.memory_space<vmem>>, vector<1x8x32xf32>
      %c0_189 = arith.constant 0 : index
      %c0_190 = arith.constant 0 : index
      %c0_191 = arith.constant 0 : index
      %525 = vector.load %arg35[%c0_189, %c0_190, %c0_191] : memref<1x8x32xf32, #tpu.memory_space<vmem>>, vector<1x8x32xf32>
      tpu.vector_store %arg35[%c0_189, %c0_190, %c0_191], %524 {strides = array<i32>} : memref<1x8x32xf32, #tpu.memory_space<vmem>>, vector<1x8x32xf32>,
    } else {
    }
    %c0 = arith.constant 0 : index
    %c0_1 = arith.constant 0 : index
    %c0_2 = arith.constant 0 : index
    %4 = vector.load %arg34[%c0, %c0_1, %c0_2] : memref<1x8x32xf32, #tpu.memory_space<vmem>>, vector<1x8x32xf32>
    %5 = vector.shape_cast %4 : vector<1x8x32xf32> to vector<8x32xf32>
    %c0_3 = arith.constant 0 : index
    %c0_4 = arith.constant 0 : index
    %c0_5 = arith.constant 0 : index
    %6 = vector.load %arg35[%c0_3, %c0_4, %c0_5] : memref<1x8x32xf32, #tpu.memory_space<vmem>>, vector<1x8x32xf32>
    %7 = vector.shape_cast %6 : vector<1x8x32xf32> to vector<8x32xf32>
    %8 = tpu.iota {dimensions = array<i32: 0>} : vector<8x8xi32>
    %9 = tpu.iota {dimensions = array<i32: 1>} : vector<8x8xi32>
    %10 = tpu.iota {dimensions = array<i32: 0>} : vector<8x8xi32>
    %11 = tpu.iota {dimensions = array<i32: 1>} : vector<8x8xi32>
    %12 = tpu.iota {dimensions = array<i32: 0>} : vector<8x8xi32>
    %13 = tpu.iota {dimensions = array<i32: 1>} : vector<8x8xi32>
    %c0_i32_6 = arith.constant 0 : i32
    %14 = arith.addi %0, %c0_i32_6 : i32
    %15 = arith.index_cast %14 : i32 to index
    %16 = memref.load %arg2[%15] : memref<2xi32, #tpu.memory_space<smem>>
    %c0_i32_7 = arith.constant 0 : i32
    %17 = arith.addi %0, %c0_i32_7 : i32
    %18 = arith.index_cast %17 : i32 to index
    %19 = memref.load %arg3[%18] : memref<2xi32, #tpu.memory_space<smem>>
    %20 = vector.broadcast %16 : i32 to vector<8x8xi32>
    %21 = arith.cmpi slt, %8, %20 : vector<8x8xi32>
    %22 = vector.broadcast %16 : i32 to vector<8x8xi32>
    %23 = arith.cmpi slt, %9, %22 : vector<8x8xi32>
    %24 = arith.andi %21, %23 : vector<8x8xi1>
    %25 = arith.extui %24 : vector<8x8xi1> to vector<8x8xi32>
    %26 = arith.sitofp %25 : vector<8x8xi32> to vector<8x8xf32>
    %27 = vector.broadcast %19 : i32 to vector<8x8xi32>
    %28 = arith.cmpi slt, %10, %27 : vector<8x8xi32>
    %29 = vector.broadcast %19 : i32 to vector<8x8xi32>
    %30 = arith.cmpi slt, %11, %29 : vector<8x8xi32>
    %31 = arith.andi %28, %30 : vector<8x8xi1>
    %32 = vector.broadcast %19 : i32 to vector<8x8xi32>
    %33 = arith.cmpi slt, %12, %32 : vector<8x8xi32>
    %34 = vector.broadcast %16 : i32 to vector<8x8xi32>
    %35 = arith.cmpi slt, %13, %34 : vector<8x8xi32>
    %36 = arith.andi %33, %35 : vector<8x8xi1>
    %37 = arith.cmpi sle, %11, %10 : vector<8x8xi32>
    %38 = arith.andi %31, %37 : vector<8x8xi1>
    %39 = arith.cmpi sle, %13, %12 : vector<8x8xi32>
    %40 = arith.andi %36, %39 : vector<8x8xi1>
    %41 = arith.extui %38 : vector<8x8xi1> to vector<8x8xi32>
    %42 = arith.sitofp %41 : vector<8x8xi32> to vector<8x8xf32>
    %43 = arith.extui %40 : vector<8x8xi1> to vector<8x8xi32>
    %44 = arith.sitofp %43 : vector<8x8xi32> to vector<8x8xf32>
    %45 = vector.shape_cast %26 : vector<8x8xf32> to vector<1x8x8xf32>
    %46 = tpu.concatenate %45, %45, %45, %45 in 0 : vector<1x8x8xf32>, vector<1x8x8xf32>, vector<1x8x8xf32>, vector<1x8x8xf32> -> vector<4x8x8xf32>
    %47 = vector.shape_cast %42 : vector<8x8xf32> to vector<1x8x8xf32>
    %48 = tpu.concatenate %47, %47, %47, %47 in 0 : vector<1x8x8xf32>, vector<1x8x8xf32>, vector<1x8x8xf32>, vector<1x8x8xf32> -> vector<4x8x8xf32>
    %49 = vector.shape_cast %44 : vector<8x8xf32> to vector<1x8x8xf32>
    %50 = tpu.concatenate %49, %49, %49, %49 in 0 : vector<1x8x8xf32>, vector<1x8x8xf32>, vector<1x8x8xf32>, vector<1x8x8xf32> -> vector<4x8x8xf32>
    %c0_8 = arith.constant 0 : index
    %c0_9 = arith.constant 0 : index
    %c0_10 = arith.constant 0 : index
    %51 = vector.load %arg6[%c0_8, %c0_9, %c0_10] : memref<1x1x32xf32, #tpu.memory_space<vmem>>, vector<1x1x32xf32>
    %52 = vector.shape_cast %51 : vector<1x1x32xf32> to vector<1x32xf32>
    %c0_11 = arith.constant 0 : index
    %c0_12 = arith.constant 0 : index
    %c0_13 = arith.constant 0 : index
    %53 = vector.load %arg7[%c0_11, %c0_12, %c0_13] : memref<1x1x32xf32, #tpu.memory_space<vmem>>, vector<1x1x32xf32>
    %54 = vector.shape_cast %53 : vector<1x1x32xf32> to vector<1x32xf32>
    %cst = arith.constant dense<0.000000e+00> : vector<8xf32>
    %55 = vector.multi_reduction <add>, %5, %cst [1] : vector<8x32xf32> to vector<8xf32>
    %56 = vector.shape_cast %55 : vector<8xf32> to vector<8x1xf32>
    %cst_14 = arith.constant 3.200000e+01 : f32
    %57 = vector.broadcast %cst_14 : f32 to vector<8x1xf32>
    %58 = arith.divf %56, %57 : vector<8x1xf32>
    %59 = vector.broadcast %58 : vector<8x1xf32> to vector<8x32xf32>
    %60 = arith.subf %5, %59 : vector<8x32xf32>
    %61 = arith.mulf %60, %60 : vector<8x32xf32>
    %cst_15 = arith.constant dense<0.000000e+00> : vector<8xf32>
    %62 = vector.multi_reduction <add>, %61, %cst_15 [1] : vector<8x32xf32> to vector<8xf32>
    %63 = vector.shape_cast %62 : vector<8xf32> to vector<8x1xf32>
    %cst_16 = arith.constant 3.200000e+01 : f32
    %64 = vector.broadcast %cst_16 : f32 to vector<8x1xf32>
    %65 = arith.divf %63, %64 : vector<8x1xf32>
    %66 = vector.broadcast %58 : vector<8x1xf32> to vector<8x32xf32>
    %67 = arith.subf %5, %66 : vector<8x32xf32>
    %cst_17 = arith.constant 9.99999974E-6 : f32
    %68 = vector.broadcast %cst_17 : f32 to vector<8x1xf32>
    %69 = arith.addf %65, %68 : vector<8x1xf32>
    %70 = math.rsqrt %69 : vector<8x1xf32>
    %71 = vector.broadcast %70 : vector<8x1xf32> to vector<8x32xf32>
    %72 = arith.mulf %67, %71 : vector<8x32xf32>
    %73 = vector.broadcast %52 : vector<1x32xf32> to vector<8x32xf32>
    %74 = arith.mulf %72, %73 : vector<8x32xf32>
    %75 = vector.broadcast %54 : vector<1x32xf32> to vector<8x32xf32>
    %76 = arith.addf %74, %75 : vector<8x32xf32>
    %c0_18 = arith.constant 0 : index
    %c0_19 = arith.constant 0 : index
    %c0_20 = arith.constant 0 : index
    %77 = vector.load %arg10[%c0_18, %c0_19, %c0_20] : memref<1x32x32xbf16, #tpu.memory_space<vmem>>, vector<1x32x32xbf16>
    %78 = vector.shape_cast %77 : vector<1x32x32xbf16> to vector<32x32xbf16>
    %c0_21 = arith.constant 0 : index
    %c0_22 = arith.constant 0 : index
    %c0_23 = arith.constant 0 : index
    %79 = vector.load %arg11[%c0_21, %c0_22, %c0_23] : memref<1x32x32xbf16, #tpu.memory_space<vmem>>, vector<1x32x32xbf16>
    %80 = vector.shape_cast %79 : vector<1x32x32xbf16> to vector<32x32xbf16>
    %c0_24 = arith.constant 0 : index
    %c0_25 = arith.constant 0 : index
    %c0_26 = arith.constant 0 : index
    %81 = vector.load %arg12[%c0_24, %c0_25, %c0_26] : memref<1x32x32xbf16, #tpu.memory_space<vmem>>, vector<1x32x32xbf16>
    %82 = vector.shape_cast %81 : vector<1x32x32xbf16> to vector<32x32xbf16>
    %c0_27 = arith.constant 0 : index
    %c0_28 = arith.constant 0 : index
    %c0_29 = arith.constant 0 : index
    %83 = vector.load %arg13[%c0_27, %c0_28, %c0_29] : memref<1x32x32xbf16, #tpu.memory_space<vmem>>, vector<1x32x32xbf16>
    %84 = vector.shape_cast %83 : vector<1x32x32xbf16> to vector<32x32xbf16>
    %c0_30 = arith.constant 0 : index
    %c0_31 = arith.constant 0 : index
    %c0_32 = arith.constant 0 : index
    %85 = vector.load %arg14[%c0_30, %c0_31, %c0_32] : memref<1x1x32xf32, #tpu.memory_space<vmem>>, vector<1x1x32xf32>
    %86 = vector.shape_cast %85 : vector<1x1x32xf32> to vector<1x32xf32>
    %87 = arith.truncf %76 : vector<8x32xf32> to vector<8x32xbf16>
    %88 = arith.truncf %76 : vector<8x32xf32> to vector<8x32xbf16>
    %cst_33 = arith.constant dense<0.000000e+00> : vector<8x32xf32>
    %89 = tpu.matmul %87, %78, %cst_33 {dimension_numbers = #tpu.dot_dimension_numbers<[1], [0], [0], [1], [0, 0, 1, 1], [], []>} : vector<8x32xbf16>, vector<32x32xbf16>, vector<8x32xf32> -> vector<8x32xf32>
    %cst_34 = arith.constant dense<0.000000e+00> : vector<8x32xf32>
    %90 = tpu.matmul %88, %80, %cst_34 {dimension_numbers = #tpu.dot_dimension_numbers<[1], [0], [0], [1], [0, 0, 1, 1], [], []>} : vector<8x32xbf16>, vector<32x32xbf16>, vector<8x32xf32> -> vector<8x32xf32>
    %cst_35 = arith.constant dense<0.000000e+00> : vector<8x32xf32>
    %91 = tpu.matmul %88, %82, %cst_35 {dimension_numbers = #tpu.dot_dimension_numbers<[1], [0], [0], [1], [0, 0, 1, 1], [], []>} : vector<8x32xbf16>, vector<32x32xbf16>, vector<8x32xf32> -> vector<8x32xf32>
    %92 = vector.extract_strided_slice %89 {offsets = [0, 0], sizes = [8, 8], strides = [1, 1]} : vector<8x32xf32> to vector<8x8xf32>
    %93 = vector.shape_cast %92 : vector<8x8xf32> to vector<1x8x8xf32>
    %94 = vector.extract_strided_slice %89 {offsets = [0, 8], sizes = [8, 8], strides = [1, 1]} : vector<8x32xf32> to vector<8x8xf32>
    %95 = vector.shape_cast %94 : vector<8x8xf32> to vector<1x8x8xf32>
    %96 = vector.extract_strided_slice %89 {offsets = [0, 16], sizes = [8, 8], strides = [1, 1]} : vector<8x32xf32> to vector<8x8xf32>
    %97 = vector.shape_cast %96 : vector<8x8xf32> to vector<1x8x8xf32>
    %98 = vector.extract_strided_slice %89 {offsets = [0, 24], sizes = [8, 8], strides = [1, 1]} : vector<8x32xf32> to vector<8x8xf32>
    %99 = vector.shape_cast %98 : vector<8x8xf32> to vector<1x8x8xf32>
    %100 = tpu.concatenate %93, %95, %97, %99 in 0 : vector<1x8x8xf32>, vector<1x8x8xf32>, vector<1x8x8xf32>, vector<1x8x8xf32> -> vector<4x8x8xf32>
    %101 = arith.truncf %100 : vector<4x8x8xf32> to vector<4x8x8xbf16>
    %102 = vector.extract_strided_slice %90 {offsets = [0, 0], sizes = [8, 8], strides = [1, 1]} : vector<8x32xf32> to vector<8x8xf32>
    %103 = vector.shape_cast %102 : vector<8x8xf32> to vector<1x8x8xf32>
    %104 = vector.extract_strided_slice %90 {offsets = [0, 8], sizes = [8, 8], strides = [1, 1]} : vector<8x32xf32> to vector<8x8xf32>
    %105 = vector.shape_cast %104 : vector<8x8xf32> to vector<1x8x8xf32>
    %106 = vector.extract_strided_slice %90 {offsets = [0, 16], sizes = [8, 8], strides = [1, 1]} : vector<8x32xf32> to vector<8x8xf32>
    %107 = vector.shape_cast %106 : vector<8x8xf32> to vector<1x8x8xf32>
    %108 = vector.extract_strided_slice %90 {offsets = [0, 24], sizes = [8, 8], strides = [1, 1]} : vector<8x32xf32> to vector<8x8xf32>
    %109 = vector.shape_cast %108 : vector<8x8xf32> to vector<1x8x8xf32>
    %110 = tpu.concatenate %103, %105, %107, %109 in 0 : vector<1x8x8xf32>, vector<1x8x8xf32>, vector<1x8x8xf32>, vector<1x8x8xf32> -> vector<4x8x8xf32>
    %111 = arith.truncf %110 : vector<4x8x8xf32> to vector<4x8x8xbf16>
    %112 = vector.extract_strided_slice %91 {offsets = [0, 0], sizes = [8, 8], strides = [1, 1]} : vector<8x32xf32> to vector<8x8xf32>
    %113 = vector.shape_cast %112 : vector<8x8xf32> to vector<1x8x8xf32>
    %114 = vector.extract_strided_slice %91 {offsets = [0, 8], sizes = [8, 8], strides = [1, 1]} : vector<8x32xf32> to vector<8x8xf32>
    %115 = vector.shape_cast %114 : vector<8x8xf32> to vector<1x8x8xf32>
    %116 = vector.extract_strided_slice %91 {offsets = [0, 16], sizes = [8, 8], strides = [1, 1]} : vector<8x32xf32> to vector<8x8xf32>
    %117 = vector.shape_cast %116 : vector<8x8xf32> to vector<1x8x8xf32>
    %118 = vector.extract_strided_slice %91 {offsets = [0, 24], sizes = [8, 8], strides = [1, 1]} : vector<8x32xf32> to vector<8x8xf32>
    %119 = vector.shape_cast %118 : vector<8x8xf32> to vector<1x8x8xf32>
    %120 = tpu.concatenate %113, %115, %117, %119 in 0 : vector<1x8x8xf32>, vector<1x8x8xf32>, vector<1x8x8xf32>, vector<1x8x8xf32> -> vector<4x8x8xf32>
    %121 = arith.truncf %120 : vector<4x8x8xf32> to vector<4x8x8xbf16>
    "tpu.trace_start"() <{level = 10 : i32, message = "bqd,bkd->bqk"}> : () -> ()
    %cst_36 = arith.constant dense<0.000000e+00> : vector<4x8x8xf32>
    %122 = tpu.matmul %101, %111, %cst_36 {dimension_numbers = #tpu.dot_dimension_numbers<[2], [2], [1], [1], [0, 0, 0, 1, 1, 1], [0], [0]>} : vector<4x8x8xbf16>, vector<4x8x8xbf16>, vector<4x8x8xf32> -> vector<4x8x8xf32>
    "tpu.trace_stop"() : () -> ()
    %123 = arith.mulf %122, %46 : vector<4x8x8xf32>
    %cst_37 = arith.constant 1.000000e+00 : f32
    %124 = vector.broadcast %cst_37 : f32 to vector<4x8x8xf32>
    %125 = arith.subf %124, %46 : vector<4x8x8xf32>
    %cst_38 = arith.constant -1.000000e+30 : f32
    %126 = vector.broadcast %cst_38 : f32 to vector<4x8x8xf32>
    %127 = arith.mulf %126, %125 : vector<4x8x8xf32>
    %128 = arith.addf %123, %127 : vector<4x8x8xf32>
    %cst_39 = arith.constant dense<0xFF800000> : vector<4x8xf32>
    %129 = vector.multi_reduction <maximumf>, %128, %cst_39 [2] : vector<4x8x8xf32> to vector<4x8xf32>
    %130 = vector.shape_cast %129 : vector<4x8xf32> to vector<4x8x1xf32>
    %131 = vector.broadcast %130 : vector<4x8x1xf32> to vector<4x8x8xf32>
    %132 = arith.subf %128, %131 : vector<4x8x8xf32>
    %133 = math.exp %132 : vector<4x8x8xf32>
    %134 = arith.mulf %133, %46 : vector<4x8x8xf32>
    %cst_40 = arith.constant dense<0.000000e+00> : vector<4x8xf32>
    %135 = vector.multi_reduction <add>, %134, %cst_40 [2] : vector<4x8x8xf32> to vector<4x8xf32>
    %136 = vector.shape_cast %135 : vector<4x8xf32> to vector<4x8x1xf32>
    %cst_41 = arith.constant 1.000000e-30 : f32
    %137 = vector.broadcast %cst_41 : f32 to vector<4x8x1xf32>
    %138 = arith.maximumf %136, %137 : vector<4x8x1xf32>
    %139 = tpu.reciprocal %138 {approx = true} : vector<4x8x1xf32> -> vector<4x8x1xf32>
    %cst_42 = arith.constant 0.000000e+00 : f32
    %140 = vector.broadcast %cst_42 : f32 to vector<4x8x1xf32>
    %141 = arith.cmpf ogt, %136, %140 : vector<4x8x1xf32>
    %142 = vector.broadcast %139 : vector<4x8x1xf32> to vector<4x8x8xf32>
    %143 = arith.mulf %134, %142 : vector<4x8x8xf32>
    %cst_43 = arith.constant 0.000000e+00 : f32
    %144 = vector.shape_cast %141 : vector<4x8x1xi1> to vector<4x8x1xi1>
    %145 = vector.broadcast %144 : vector<4x8x1xi1> to vector<4x8x8xi1>
    %146 = vector.broadcast %cst_43 : f32 to vector<4x8x8xf32>
    %147 = arith.select %145, %143, %146 : vector<4x8x8xi1>, vector<4x8x8xf32>
    %148 = arith.truncf %147 : vector<4x8x8xf32> to vector<4x8x8xbf16>
    "tpu.trace_start"() <{level = 10 : i32, message = "bqk,bkd->bqd"}> : () -> ()
    %cst_44 = arith.constant dense<0.000000e+00> : vector<4x8x8xf32>
    %149 = tpu.matmul %148, %121, %cst_44 {dimension_numbers = #tpu.dot_dimension_numbers<[2], [1], [1], [2], [0, 0, 0, 1, 1, 2], [0], [0]>} : vector<4x8x8xbf16>, vector<4x8x8xbf16>, vector<4x8x8xf32> -> vector<4x8x8xf32>
    %cst_45 = arith.constant 0.000000e+00 : f32
    "tpu.trace_stop"() : () -> ()
    %150 = vector.broadcast %cst_45 : f32 to vector<8x32xf32>
    %151 = vector.extract_strided_slice %149 {offsets = [0, 0, 0], sizes = [1, 8, 8], strides = [1, 1, 1]} : vector<4x8x8xf32> to vector<1x8x8xf32>
    %152 = vector.shape_cast %151 : vector<1x8x8xf32> to vector<8x8xf32>
    %153 = arith.truncf %152 : vector<8x8xf32> to vector<8x8xbf16>
    %154 = vector.extract_strided_slice %84 {offsets = [0, 0], sizes = [8, 32], strides = [1, 1]} : vector<32x32xbf16> to vector<8x32xbf16>
    %cst_46 = arith.constant dense<0.000000e+00> : vector<8x32xf32>
    %155 = tpu.matmul %153, %154, %cst_46 {dimension_numbers = #tpu.dot_dimension_numbers<[1], [0], [0], [1], [0, 0, 1, 1], [], []>} : vector<8x8xbf16>, vector<8x32xbf16>, vector<8x32xf32> -> vector<8x32xf32>
    %156 = arith.addf %150, %155 : vector<8x32xf32>
    %157 = vector.extract_strided_slice %149 {offsets = [1, 0, 0], sizes = [1, 8, 8], strides = [1, 1, 1]} : vector<4x8x8xf32> to vector<1x8x8xf32>
    %158 = vector.shape_cast %157 : vector<1x8x8xf32> to vector<8x8xf32>
    %159 = arith.truncf %158 : vector<8x8xf32> to vector<8x8xbf16>
    %160 = vector.extract_strided_slice %84 {offsets = [8, 0], sizes = [8, 32], strides = [1, 1]} : vector<32x32xbf16> to vector<8x32xbf16>
    %cst_47 = arith.constant dense<0.000000e+00> : vector<8x32xf32>
    %161 = tpu.matmul %159, %160, %cst_47 {dimension_numbers = #tpu.dot_dimension_numbers<[1], [0], [0], [1], [0, 0, 1, 1], [], []>} : vector<8x8xbf16>, vector<8x32xbf16>, vector<8x32xf32> -> vector<8x32xf32>
    %162 = arith.addf %156, %161 : vector<8x32xf32>
    %163 = vector.extract_strided_slice %149 {offsets = [2, 0, 0], sizes = [1, 8, 8], strides = [1, 1, 1]} : vector<4x8x8xf32> to vector<1x8x8xf32>
    %164 = vector.shape_cast %163 : vector<1x8x8xf32> to vector<8x8xf32>
    %165 = arith.truncf %164 : vector<8x8xf32> to vector<8x8xbf16>
    %166 = vector.extract_strided_slice %84 {offsets = [16, 0], sizes = [8, 32], strides = [1, 1]} : vector<32x32xbf16> to vector<8x32xbf16>
    %cst_48 = arith.constant dense<0.000000e+00> : vector<8x32xf32>
    %167 = tpu.matmul %165, %166, %cst_48 {dimension_numbers = #tpu.dot_dimension_numbers<[1], [0], [0], [1], [0, 0, 1, 1], [], []>} : vector<8x8xbf16>, vector<8x32xbf16>, vector<8x32xf32> -> vector<8x32xf32>
    %168 = arith.addf %162, %167 : vector<8x32xf32>
    %169 = vector.extract_strided_slice %149 {offsets = [3, 0, 0], sizes = [1, 8, 8], strides = [1, 1, 1]} : vector<4x8x8xf32> to vector<1x8x8xf32>
    %170 = vector.shape_cast %169 : vector<1x8x8xf32> to vector<8x8xf32>
    %171 = arith.truncf %170 : vector<8x8xf32> to vector<8x8xbf16>
    %172 = vector.extract_strided_slice %84 {offsets = [24, 0], sizes = [8, 32], strides = [1, 1]} : vector<32x32xbf16> to vector<8x32xbf16>
    %cst_49 = arith.constant dense<0.000000e+00> : vector<8x32xf32>
    %173 = tpu.matmul %171, %172, %cst_49 {dimension_numbers = #tpu.dot_dimension_numbers<[1], [0], [0], [1], [0, 0, 1, 1], [], []>} : vector<8x8xbf16>, vector<8x32xbf16>, vector<8x32xf32> -> vector<8x32xf32>
    %174 = arith.addf %168, %173 : vector<8x32xf32>
    %175 = vector.broadcast %86 : vector<1x32xf32> to vector<8x32xf32>
    %176 = arith.addf %174, %175 : vector<8x32xf32>
    %177 = arith.addf %5, %176 : vector<8x32xf32>
    %c0_50 = arith.constant 0 : index
    %c0_51 = arith.constant 0 : index
    %c0_52 = arith.constant 0 : index
    %178 = vector.load %arg8[%c0_50, %c0_51, %c0_52] : memref<1x1x32xf32, #tpu.memory_space<vmem>>, vector<1x1x32xf32>
    %179 = vector.shape_cast %178 : vector<1x1x32xf32> to vector<1x32xf32>
    %c0_53 = arith.constant 0 : index
    %c0_54 = arith.constant 0 : index
    %c0_55 = arith.constant 0 : index
    %180 = vector.load %arg9[%c0_53, %c0_54, %c0_55] : memref<1x1x32xf32, #tpu.memory_space<vmem>>, vector<1x1x32xf32>
    %181 = vector.shape_cast %180 : vector<1x1x32xf32> to vector<1x32xf32>
    %cst_56 = arith.constant dense<0.000000e+00> : vector<8xf32>
    %182 = vector.multi_reduction <add>, %177, %cst_56 [1] : vector<8x32xf32> to vector<8xf32>
    %183 = vector.shape_cast %182 : vector<8xf32> to vector<8x1xf32>
    %cst_57 = arith.constant 3.200000e+01 : f32
    %184 = vector.broadcast %cst_57 : f32 to vector<8x1xf32>
    %185 = arith.divf %183, %184 : vector<8x1xf32>
    %186 = vector.broadcast %185 : vector<8x1xf32> to vector<8x32xf32>
    %187 = arith.subf %177, %186 : vector<8x32xf32>
    %188 = arith.mulf %187, %187 : vector<8x32xf32>
    %cst_58 = arith.constant dense<0.000000e+00> : vector<8xf32>
    %189 = vector.multi_reduction <add>, %188, %cst_58 [1] : vector<8x32xf32> to vector<8xf32>
    %190 = vector.shape_cast %189 : vector<8xf32> to vector<8x1xf32>
    %cst_59 = arith.constant 3.200000e+01 : f32
    %191 = vector.broadcast %cst_59 : f32 to vector<8x1xf32>
    %192 = arith.divf %190, %191 : vector<8x1xf32>
    %193 = vector.broadcast %185 : vector<8x1xf32> to vector<8x32xf32>
    %194 = arith.subf %177, %193 : vector<8x32xf32>
    %cst_60 = arith.constant 9.99999974E-6 : f32
    %195 = vector.broadcast %cst_60 : f32 to vector<8x1xf32>
    %196 = arith.addf %192, %195 : vector<8x1xf32>
    %197 = math.rsqrt %196 : vector<8x1xf32>
    %198 = vector.broadcast %197 : vector<8x1xf32> to vector<8x32xf32>
    %199 = arith.mulf %194, %198 : vector<8x32xf32>
    %200 = vector.broadcast %179 : vector<1x32xf32> to vector<8x32xf32>
    %201 = arith.mulf %199, %200 : vector<8x32xf32>
    %202 = vector.broadcast %181 : vector<1x32xf32> to vector<8x32xf32>
    %203 = arith.addf %201, %202 : vector<8x32xf32>
    %cst_61 = arith.constant 0.000000e+00 : f32
    %204 = vector.broadcast %cst_61 : f32 to vector<8x32xf32>
    %205 = arith.maximumf %203, %204 : vector<8x32xf32>
    %206 = arith.addf %177, %205 : vector<8x32xf32>
    %c0_62 = arith.constant 0 : index
    %c0_63 = arith.constant 0 : index
    %c0_64 = arith.constant 0 : index
    %207 = vector.load %arg15[%c0_62, %c0_63, %c0_64] : memref<1x1x32xf32, #tpu.memory_space<vmem>>, vector<1x1x32xf32>
    %208 = vector.shape_cast %207 : vector<1x1x32xf32> to vector<1x32xf32>
    %c0_65 = arith.constant 0 : index
    %c0_66 = arith.constant 0 : index
    %c0_67 = arith.constant 0 : index
    %209 = vector.load %arg16[%c0_65, %c0_66, %c0_67] : memref<1x1x32xf32, #tpu.memory_space<vmem>>, vector<1x1x32xf32>
    %210 = vector.shape_cast %209 : vector<1x1x32xf32> to vector<1x32xf32>
    %cst_68 = arith.constant dense<0.000000e+00> : vector<8xf32>
    %211 = vector.multi_reduction <add>, %7, %cst_68 [1] : vector<8x32xf32> to vector<8xf32>
    %212 = vector.shape_cast %211 : vector<8xf32> to vector<8x1xf32>
    %cst_69 = arith.constant 3.200000e+01 : f32
    %213 = vector.broadcast %cst_69 : f32 to vector<8x1xf32>
    %214 = arith.divf %212, %213 : vector<8x1xf32>
    %215 = vector.broadcast %214 : vector<8x1xf32> to vector<8x32xf32>
    %216 = arith.subf %7, %215 : vector<8x32xf32>
    %217 = arith.mulf %216, %216 : vector<8x32xf32>
    %cst_70 = arith.constant dense<0.000000e+00> : vector<8xf32>
    %218 = vector.multi_reduction <add>, %217, %cst_70 [1] : vector<8x32xf32> to vector<8xf32>
    %219 = vector.shape_cast %218 : vector<8xf32> to vector<8x1xf32>
    %cst_71 = arith.constant 3.200000e+01 : f32
    %220 = vector.broadcast %cst_71 : f32 to vector<8x1xf32>
    %221 = arith.divf %219, %220 : vector<8x1xf32>
    %222 = vector.broadcast %214 : vector<8x1xf32> to vector<8x32xf32>
    %223 = arith.subf %7, %222 : vector<8x32xf32>
    %cst_72 = arith.constant 9.99999974E-6 : f32
    %224 = vector.broadcast %cst_72 : f32 to vector<8x1xf32>
    %225 = arith.addf %221, %224 : vector<8x1xf32>
    %226 = math.rsqrt %225 : vector<8x1xf32>
    %227 = vector.broadcast %226 : vector<8x1xf32> to vector<8x32xf32>
    %228 = arith.mulf %223, %227 : vector<8x32xf32>
    %229 = vector.broadcast %208 : vector<1x32xf32> to vector<8x32xf32>
    %230 = arith.mulf %228, %229 : vector<8x32xf32>
    %231 = vector.broadcast %210 : vector<1x32xf32> to vector<8x32xf32>
    %232 = arith.addf %230, %231 : vector<8x32xf32>
    %c0_73 = arith.constant 0 : index
    %c0_74 = arith.constant 0 : index
    %c0_75 = arith.constant 0 : index
    %233 = vector.load %arg23[%c0_73, %c0_74, %c0_75] : memref<1x32x32xbf16, #tpu.memory_space<vmem>>, vector<1x32x32xbf16>
    %234 = vector.shape_cast %233 : vector<1x32x32xbf16> to vector<32x32xbf16>
    %c0_76 = arith.constant 0 : index
    %c0_77 = arith.constant 0 : index
    %c0_78 = arith.constant 0 : index
    %235 = vector.load %arg24[%c0_76, %c0_77, %c0_78] : memref<1x32x32xbf16, #tpu.memory_space<vmem>>, vector<1x32x32xbf16>
    %236 = vector.shape_cast %235 : vector<1x32x32xbf16> to vector<32x32xbf16>
    %c0_79 = arith.constant 0 : index
    %c0_80 = arith.constant 0 : index
    %c0_81 = arith.constant 0 : index
    %237 = vector.load %arg25[%c0_79, %c0_80, %c0_81] : memref<1x32x32xbf16, #tpu.memory_space<vmem>>, vector<1x32x32xbf16>
    %238 = vector.shape_cast %237 : vector<1x32x32xbf16> to vector<32x32xbf16>
    %c0_82 = arith.constant 0 : index
    %c0_83 = arith.constant 0 : index
    %c0_84 = arith.constant 0 : index
    %239 = vector.load %arg26[%c0_82, %c0_83, %c0_84] : memref<1x32x32xbf16, #tpu.memory_space<vmem>>, vector<1x32x32xbf16>
    %240 = vector.shape_cast %239 : vector<1x32x32xbf16> to vector<32x32xbf16>
    %c0_85 = arith.constant 0 : index
    %c0_86 = arith.constant 0 : index
    %c0_87 = arith.constant 0 : index
    %241 = vector.load %arg27[%c0_85, %c0_86, %c0_87] : memref<1x1x32xf32, #tpu.memory_space<vmem>>, vector<1x1x32xf32>
    %242 = vector.shape_cast %241 : vector<1x1x32xf32> to vector<1x32xf32>
    %243 = arith.truncf %232 : vector<8x32xf32> to vector<8x32xbf16>
    %244 = arith.truncf %232 : vector<8x32xf32> to vector<8x32xbf16>
    %cst_88 = arith.constant dense<0.000000e+00> : vector<8x32xf32>
    %245 = tpu.matmul %243, %234, %cst_88 {dimension_numbers = #tpu.dot_dimension_numbers<[1], [0], [0], [1], [0, 0, 1, 1], [], []>} : vector<8x32xbf16>, vector<32x32xbf16>, vector<8x32xf32> -> vector<8x32xf32>
    %cst_89 = arith.constant dense<0.000000e+00> : vector<8x32xf32>
    %246 = tpu.matmul %244, %236, %cst_89 {dimension_numbers = #tpu.dot_dimension_numbers<[1], [0], [0], [1], [0, 0, 1, 1], [], []>} : vector<8x32xbf16>, vector<32x32xbf16>, vector<8x32xf32> -> vector<8x32xf32>
    %cst_90 = arith.constant dense<0.000000e+00> : vector<8x32xf32>
    %247 = tpu.matmul %244, %238, %cst_90 {dimension_numbers = #tpu.dot_dimension_numbers<[1], [0], [0], [1], [0, 0, 1, 1], [], []>} : vector<8x32xbf16>, vector<32x32xbf16>, vector<8x32xf32> -> vector<8x32xf32>
    %248 = vector.extract_strided_slice %245 {offsets = [0, 0], sizes = [8, 8], strides = [1, 1]} : vector<8x32xf32> to vector<8x8xf32>
    %249 = vector.shape_cast %248 : vector<8x8xf32> to vector<1x8x8xf32>
    %250 = vector.extract_strided_slice %245 {offsets = [0, 8], sizes = [8, 8], strides = [1, 1]} : vector<8x32xf32> to vector<8x8xf32>
    %251 = vector.shape_cast %250 : vector<8x8xf32> to vector<1x8x8xf32>
    %252 = vector.extract_strided_slice %245 {offsets = [0, 16], sizes = [8, 8], strides = [1, 1]} : vector<8x32xf32> to vector<8x8xf32>
    %253 = vector.shape_cast %252 : vector<8x8xf32> to vector<1x8x8xf32>
    %254 = vector.extract_strided_slice %245 {offsets = [0, 24], sizes = [8, 8], strides = [1, 1]} : vector<8x32xf32> to vector<8x8xf32>
    %255 = vector.shape_cast %254 : vector<8x8xf32> to vector<1x8x8xf32>
    %256 = tpu.concatenate %249, %251, %253, %255 in 0 : vector<1x8x8xf32>, vector<1x8x8xf32>, vector<1x8x8xf32>, vector<1x8x8xf32> -> vector<4x8x8xf32>
    %257 = arith.truncf %256 : vector<4x8x8xf32> to vector<4x8x8xbf16>
    %258 = vector.extract_strided_slice %246 {offsets = [0, 0], sizes = [8, 8], strides = [1, 1]} : vector<8x32xf32> to vector<8x8xf32>
    %259 = vector.shape_cast %258 : vector<8x8xf32> to vector<1x8x8xf32>
    %260 = vector.extract_strided_slice %246 {offsets = [0, 8], sizes = [8, 8], strides = [1, 1]} : vector<8x32xf32> to vector<8x8xf32>
    %261 = vector.shape_cast %260 : vector<8x8xf32> to vector<1x8x8xf32>
    %262 = vector.extract_strided_slice %246 {offsets = [0, 16], sizes = [8, 8], strides = [1, 1]} : vector<8x32xf32> to vector<8x8xf32>
    %263 = vector.shape_cast %262 : vector<8x8xf32> to vector<1x8x8xf32>
    %264 = vector.extract_strided_slice %246 {offsets = [0, 24], sizes = [8, 8], strides = [1, 1]} : vector<8x32xf32> to vector<8x8xf32>
    %265 = vector.shape_cast %264 : vector<8x8xf32> to vector<1x8x8xf32>
    %266 = tpu.concatenate %259, %261, %263, %265 in 0 : vector<1x8x8xf32>, vector<1x8x8xf32>, vector<1x8x8xf32>, vector<1x8x8xf32> -> vector<4x8x8xf32>
    %267 = arith.truncf %266 : vector<4x8x8xf32> to vector<4x8x8xbf16>
    %268 = vector.extract_strided_slice %247 {offsets = [0, 0], sizes = [8, 8], strides = [1, 1]} : vector<8x32xf32> to vector<8x8xf32>
    %269 = vector.shape_cast %268 : vector<8x8xf32> to vector<1x8x8xf32>
    %270 = vector.extract_strided_slice %247 {offsets = [0, 8], sizes = [8, 8], strides = [1, 1]} : vector<8x32xf32> to vector<8x8xf32>
    %271 = vector.shape_cast %270 : vector<8x8xf32> to vector<1x8x8xf32>
    %272 = vector.extract_strided_slice %247 {offsets = [0, 16], sizes = [8, 8], strides = [1, 1]} : vector<8x32xf32> to vector<8x8xf32>
    %273 = vector.shape_cast %272 : vector<8x8xf32> to vector<1x8x8xf32>
    %274 = vector.extract_strided_slice %247 {offsets = [0, 24], sizes = [8, 8], strides = [1, 1]} : vector<8x32xf32> to vector<8x8xf32>
    %275 = vector.shape_cast %274 : vector<8x8xf32> to vector<1x8x8xf32>
    %276 = tpu.concatenate %269, %271, %273, %275 in 0 : vector<1x8x8xf32>, vector<1x8x8xf32>, vector<1x8x8xf32>, vector<1x8x8xf32> -> vector<4x8x8xf32>
    %277 = arith.truncf %276 : vector<4x8x8xf32> to vector<4x8x8xbf16>
    "tpu.trace_start"() <{level = 10 : i32, message = "bqd,bkd->bqk"}> : () -> ()
    %cst_91 = arith.constant dense<0.000000e+00> : vector<4x8x8xf32>
    %278 = tpu.matmul %257, %267, %cst_91 {dimension_numbers = #tpu.dot_dimension_numbers<[2], [2], [1], [1], [0, 0, 0, 1, 1, 1], [0], [0]>} : vector<4x8x8xbf16>, vector<4x8x8xbf16>, vector<4x8x8xf32> -> vector<4x8x8xf32>
    "tpu.trace_stop"() : () -> ()
    %279 = arith.mulf %278, %48 : vector<4x8x8xf32>
    %cst_92 = arith.constant 1.000000e+00 : f32
    %280 = vector.broadcast %cst_92 : f32 to vector<4x8x8xf32>
    %281 = arith.subf %280, %48 : vector<4x8x8xf32>
    %cst_93 = arith.constant -1.000000e+30 : f32
    %282 = vector.broadcast %cst_93 : f32 to vector<4x8x8xf32>
    %283 = arith.mulf %282, %281 : vector<4x8x8xf32>
    %284 = arith.addf %279, %283 : vector<4x8x8xf32>
    %cst_94 = arith.constant dense<0xFF800000> : vector<4x8xf32>
    %285 = vector.multi_reduction <maximumf>, %284, %cst_94 [2] : vector<4x8x8xf32> to vector<4x8xf32>
    %286 = vector.shape_cast %285 : vector<4x8xf32> to vector<4x8x1xf32>
    %287 = vector.broadcast %286 : vector<4x8x1xf32> to vector<4x8x8xf32>
    %288 = arith.subf %284, %287 : vector<4x8x8xf32>
    %289 = math.exp %288 : vector<4x8x8xf32>
    %290 = arith.mulf %289, %48 : vector<4x8x8xf32>
    %cst_95 = arith.constant dense<0.000000e+00> : vector<4x8xf32>
    %291 = vector.multi_reduction <add>, %290, %cst_95 [2] : vector<4x8x8xf32> to vector<4x8xf32>
    %292 = vector.shape_cast %291 : vector<4x8xf32> to vector<4x8x1xf32>
    %cst_96 = arith.constant 1.000000e-30 : f32
    %293 = vector.broadcast %cst_96 : f32 to vector<4x8x1xf32>
    %294 = arith.maximumf %292, %293 : vector<4x8x1xf32>
    %295 = tpu.reciprocal %294 {approx = true} : vector<4x8x1xf32> -> vector<4x8x1xf32>
    %cst_97 = arith.constant 0.000000e+00 : f32
    %296 = vector.broadcast %cst_97 : f32 to vector<4x8x1xf32>
    %297 = arith.cmpf ogt, %292, %296 : vector<4x8x1xf32>
    %298 = vector.broadcast %295 : vector<4x8x1xf32> to vector<4x8x8xf32>
    %299 = arith.mulf %290, %298 : vector<4x8x8xf32>
    %cst_98 = arith.constant 0.000000e+00 : f32
    %300 = vector.shape_cast %297 : vector<4x8x1xi1> to vector<4x8x1xi1>
    %301 = vector.broadcast %300 : vector<4x8x1xi1> to vector<4x8x8xi1>
    %302 = vector.broadcast %cst_98 : f32 to vector<4x8x8xf32>
    %303 = arith.select %301, %299, %302 : vector<4x8x8xi1>, vector<4x8x8xf32>
    %304 = arith.truncf %303 : vector<4x8x8xf32> to vector<4x8x8xbf16>
    "tpu.trace_start"() <{level = 10 : i32, message = "bqk,bkd->bqd"}> : () -> ()
    %cst_99 = arith.constant dense<0.000000e+00> : vector<4x8x8xf32>
    %305 = tpu.matmul %304, %277, %cst_99 {dimension_numbers = #tpu.dot_dimension_numbers<[2], [1], [1], [2], [0, 0, 0, 1, 1, 2], [0], [0]>} : vector<4x8x8xbf16>, vector<4x8x8xbf16>, vector<4x8x8xf32> -> vector<4x8x8xf32>
    %cst_100 = arith.constant 0.000000e+00 : f32
    "tpu.trace_stop"() : () -> ()
    %306 = vector.broadcast %cst_100 : f32 to vector<8x32xf32>
    %307 = vector.extract_strided_slice %305 {offsets = [0, 0, 0], sizes = [1, 8, 8], strides = [1, 1, 1]} : vector<4x8x8xf32> to vector<1x8x8xf32>
    %308 = vector.shape_cast %307 : vector<1x8x8xf32> to vector<8x8xf32>
    %309 = arith.truncf %308 : vector<8x8xf32> to vector<8x8xbf16>
    %310 = vector.extract_strided_slice %240 {offsets = [0, 0], sizes = [8, 32], strides = [1, 1]} : vector<32x32xbf16> to vector<8x32xbf16>
    %cst_101 = arith.constant dense<0.000000e+00> : vector<8x32xf32>
    %311 = tpu.matmul %309, %310, %cst_101 {dimension_numbers = #tpu.dot_dimension_numbers<[1], [0], [0], [1], [0, 0, 1, 1], [], []>} : vector<8x8xbf16>, vector<8x32xbf16>, vector<8x32xf32> -> vector<8x32xf32>
    %312 = arith.addf %306, %311 : vector<8x32xf32>
    %313 = vector.extract_strided_slice %305 {offsets = [1, 0, 0], sizes = [1, 8, 8], strides = [1, 1, 1]} : vector<4x8x8xf32> to vector<1x8x8xf32>
    %314 = vector.shape_cast %313 : vector<1x8x8xf32> to vector<8x8xf32>
    %315 = arith.truncf %314 : vector<8x8xf32> to vector<8x8xbf16>
    %316 = vector.extract_strided_slice %240 {offsets = [8, 0], sizes = [8, 32], strides = [1, 1]} : vector<32x32xbf16> to vector<8x32xbf16>
    %cst_102 = arith.constant dense<0.000000e+00> : vector<8x32xf32>
    %317 = tpu.matmul %315, %316, %cst_102 {dimension_numbers = #tpu.dot_dimension_numbers<[1], [0], [0], [1], [0, 0, 1, 1], [], []>} : vector<8x8xbf16>, vector<8x32xbf16>, vector<8x32xf32> -> vector<8x32xf32>
    %318 = arith.addf %312, %317 : vector<8x32xf32>
    %319 = vector.extract_strided_slice %305 {offsets = [2, 0, 0], sizes = [1, 8, 8], strides = [1, 1, 1]} : vector<4x8x8xf32> to vector<1x8x8xf32>
    %320 = vector.shape_cast %319 : vector<1x8x8xf32> to vector<8x8xf32>
    %321 = arith.truncf %320 : vector<8x8xf32> to vector<8x8xbf16>
    %322 = vector.extract_strided_slice %240 {offsets = [16, 0], sizes = [8, 32], strides = [1, 1]} : vector<32x32xbf16> to vector<8x32xbf16>
    %cst_103 = arith.constant dense<0.000000e+00> : vector<8x32xf32>
    %323 = tpu.matmul %321, %322, %cst_103 {dimension_numbers = #tpu.dot_dimension_numbers<[1], [0], [0], [1], [0, 0, 1, 1], [], []>} : vector<8x8xbf16>, vector<8x32xbf16>, vector<8x32xf32> -> vector<8x32xf32>
    %324 = arith.addf %318, %323 : vector<8x32xf32>
    %325 = vector.extract_strided_slice %305 {offsets = [3, 0, 0], sizes = [1, 8, 8], strides = [1, 1, 1]} : vector<4x8x8xf32> to vector<1x8x8xf32>
    %326 = vector.shape_cast %325 : vector<1x8x8xf32> to vector<8x8xf32>
    %327 = arith.truncf %326 : vector<8x8xf32> to vector<8x8xbf16>
    %328 = vector.extract_strided_slice %240 {offsets = [24, 0], sizes = [8, 32], strides = [1, 1]} : vector<32x32xbf16> to vector<8x32xbf16>
    %cst_104 = arith.constant dense<0.000000e+00> : vector<8x32xf32>
    %329 = tpu.matmul %327, %328, %cst_104 {dimension_numbers = #tpu.dot_dimension_numbers<[1], [0], [0], [1], [0, 0, 1, 1], [], []>} : vector<8x8xbf16>, vector<8x32xbf16>, vector<8x32xf32> -> vector<8x32xf32>
    %330 = arith.addf %324, %329 : vector<8x32xf32>
    %331 = vector.broadcast %242 : vector<1x32xf32> to vector<8x32xf32>
    %332 = arith.addf %330, %331 : vector<8x32xf32>
    %333 = arith.addf %7, %332 : vector<8x32xf32>
    %c0_105 = arith.constant 0 : index
    %c0_106 = arith.constant 0 : index
    %c0_107 = arith.constant 0 : index
    %334 = vector.load %arg17[%c0_105, %c0_106, %c0_107] : memref<1x1x32xf32, #tpu.memory_space<vmem>>, vector<1x1x32xf32>
    %335 = vector.shape_cast %334 : vector<1x1x32xf32> to vector<1x32xf32>
    %c0_108 = arith.constant 0 : index
    %c0_109 = arith.constant 0 : index
    %c0_110 = arith.constant 0 : index
    %336 = vector.load %arg18[%c0_108, %c0_109, %c0_110] : memref<1x1x32xf32, #tpu.memory_space<vmem>>, vector<1x1x32xf32>
    %337 = vector.shape_cast %336 : vector<1x1x32xf32> to vector<1x32xf32>
    %cst_111 = arith.constant dense<0.000000e+00> : vector<8xf32>
    %338 = vector.multi_reduction <add>, %206, %cst_111 [1] : vector<8x32xf32> to vector<8xf32>
    %339 = vector.shape_cast %338 : vector<8xf32> to vector<8x1xf32>
    %cst_112 = arith.constant 3.200000e+01 : f32
    %340 = vector.broadcast %cst_112 : f32 to vector<8x1xf32>
    %341 = arith.divf %339, %340 : vector<8x1xf32>
    %342 = vector.broadcast %341 : vector<8x1xf32> to vector<8x32xf32>
    %343 = arith.subf %206, %342 : vector<8x32xf32>
    %344 = arith.mulf %343, %343 : vector<8x32xf32>
    %cst_113 = arith.constant dense<0.000000e+00> : vector<8xf32>
    %345 = vector.multi_reduction <add>, %344, %cst_113 [1] : vector<8x32xf32> to vector<8xf32>
    %346 = vector.shape_cast %345 : vector<8xf32> to vector<8x1xf32>
    %cst_114 = arith.constant 3.200000e+01 : f32
    %347 = vector.broadcast %cst_114 : f32 to vector<8x1xf32>
    %348 = arith.divf %346, %347 : vector<8x1xf32>
    %349 = vector.broadcast %341 : vector<8x1xf32> to vector<8x32xf32>
    %350 = arith.subf %206, %349 : vector<8x32xf32>
    %cst_115 = arith.constant 9.99999974E-6 : f32
    %351 = vector.broadcast %cst_115 : f32 to vector<8x1xf32>
    %352 = arith.addf %348, %351 : vector<8x1xf32>
    %353 = math.rsqrt %352 : vector<8x1xf32>
    %354 = vector.broadcast %353 : vector<8x1xf32> to vector<8x32xf32>
    %355 = arith.mulf %350, %354 : vector<8x32xf32>
    %356 = vector.broadcast %335 : vector<1x32xf32> to vector<8x32xf32>
    %357 = arith.mulf %355, %356 : vector<8x32xf32>
    %358 = vector.broadcast %337 : vector<1x32xf32> to vector<8x32xf32>
    %359 = arith.addf %357, %358 : vector<8x32xf32>
    %c0_116 = arith.constant 0 : index
    %c0_117 = arith.constant 0 : index
    %c0_118 = arith.constant 0 : index
    %360 = vector.load %arg19[%c0_116, %c0_117, %c0_118] : memref<1x1x32xf32, #tpu.memory_space<vmem>>, vector<1x1x32xf32>
    %361 = vector.shape_cast %360 : vector<1x1x32xf32> to vector<1x32xf32>
    %c0_119 = arith.constant 0 : index
    %c0_120 = arith.constant 0 : index
    %c0_121 = arith.constant 0 : index
    %362 = vector.load %arg20[%c0_119, %c0_120, %c0_121] : memref<1x1x32xf32, #tpu.memory_space<vmem>>, vector<1x1x32xf32>
    %363 = vector.shape_cast %362 : vector<1x1x32xf32> to vector<1x32xf32>
    %cst_122 = arith.constant dense<0.000000e+00> : vector<8xf32>
    %364 = vector.multi_reduction <add>, %333, %cst_122 [1] : vector<8x32xf32> to vector<8xf32>
    %365 = vector.shape_cast %364 : vector<8xf32> to vector<8x1xf32>
    %cst_123 = arith.constant 3.200000e+01 : f32
    %366 = vector.broadcast %cst_123 : f32 to vector<8x1xf32>
    %367 = arith.divf %365, %366 : vector<8x1xf32>
    %368 = vector.broadcast %367 : vector<8x1xf32> to vector<8x32xf32>
    %369 = arith.subf %333, %368 : vector<8x32xf32>
    %370 = arith.mulf %369, %369 : vector<8x32xf32>
    %cst_124 = arith.constant dense<0.000000e+00> : vector<8xf32>
    %371 = vector.multi_reduction <add>, %370, %cst_124 [1] : vector<8x32xf32> to vector<8xf32>
    %372 = vector.shape_cast %371 : vector<8xf32> to vector<8x1xf32>
    %cst_125 = arith.constant 3.200000e+01 : f32
    %373 = vector.broadcast %cst_125 : f32 to vector<8x1xf32>
    %374 = arith.divf %372, %373 : vector<8x1xf32>
    %375 = vector.broadcast %367 : vector<8x1xf32> to vector<8x32xf32>
    %376 = arith.subf %333, %375 : vector<8x32xf32>
    %cst_126 = arith.constant 9.99999974E-6 : f32
    %377 = vector.broadcast %cst_126 : f32 to vector<8x1xf32>
    %378 = arith.addf %374, %377 : vector<8x1xf32>
    %379 = math.rsqrt %378 : vector<8x1xf32>
    %380 = vector.broadcast %379 : vector<8x1xf32> to vector<8x32xf32>
    %381 = arith.mulf %376, %380 : vector<8x32xf32>
    %382 = vector.broadcast %361 : vector<1x32xf32> to vector<8x32xf32>
    %383 = arith.mulf %381, %382 : vector<8x32xf32>
    %384 = vector.broadcast %363 : vector<1x32xf32> to vector<8x32xf32>
    %385 = arith.addf %383, %384 : vector<8x32xf32>
    %c0_127 = arith.constant 0 : index
    %c0_128 = arith.constant 0 : index
    %c0_129 = arith.constant 0 : index
    %386 = vector.load %arg28[%c0_127, %c0_128, %c0_129] : memref<1x32x32xbf16, #tpu.memory_space<vmem>>, vector<1x32x32xbf16>
    %387 = vector.shape_cast %386 : vector<1x32x32xbf16> to vector<32x32xbf16>
    %c0_130 = arith.constant 0 : index
    %c0_131 = arith.constant 0 : index
    %c0_132 = arith.constant 0 : index
    %388 = vector.load %arg29[%c0_130, %c0_131, %c0_132] : memref<1x32x32xbf16, #tpu.memory_space<vmem>>, vector<1x32x32xbf16>
    %389 = vector.shape_cast %388 : vector<1x32x32xbf16> to vector<32x32xbf16>
    %c0_133 = arith.constant 0 : index
    %c0_134 = arith.constant 0 : index
    %c0_135 = arith.constant 0 : index
    %390 = vector.load %arg30[%c0_133, %c0_134, %c0_135] : memref<1x32x32xbf16, #tpu.memory_space<vmem>>, vector<1x32x32xbf16>
    %391 = vector.shape_cast %390 : vector<1x32x32xbf16> to vector<32x32xbf16>
    %c0_136 = arith.constant 0 : index
    %c0_137 = arith.constant 0 : index
    %c0_138 = arith.constant 0 : index
    %392 = vector.load %arg31[%c0_136, %c0_137, %c0_138] : memref<1x32x32xbf16, #tpu.memory_space<vmem>>, vector<1x32x32xbf16>
    %393 = vector.shape_cast %392 : vector<1x32x32xbf16> to vector<32x32xbf16>
    %c0_139 = arith.constant 0 : index
    %c0_140 = arith.constant 0 : index
    %c0_141 = arith.constant 0 : index
    %394 = vector.load %arg32[%c0_139, %c0_140, %c0_141] : memref<1x1x32xf32, #tpu.memory_space<vmem>>, vector<1x1x32xf32>
    %395 = vector.shape_cast %394 : vector<1x1x32xf32> to vector<1x32xf32>
    %396 = arith.truncf %385 : vector<8x32xf32> to vector<8x32xbf16>
    %397 = arith.truncf %359 : vector<8x32xf32> to vector<8x32xbf16>
    %cst_142 = arith.constant dense<0.000000e+00> : vector<8x32xf32>
    %398 = tpu.matmul %396, %387, %cst_142 {dimension_numbers = #tpu.dot_dimension_numbers<[1], [0], [0], [1], [0, 0, 1, 1], [], []>} : vector<8x32xbf16>, vector<32x32xbf16>, vector<8x32xf32> -> vector<8x32xf32>
    %cst_143 = arith.constant dense<0.000000e+00> : vector<8x32xf32>
    %399 = tpu.matmul %397, %389, %cst_143 {dimension_numbers = #tpu.dot_dimension_numbers<[1], [0], [0], [1], [0, 0, 1, 1], [], []>} : vector<8x32xbf16>, vector<32x32xbf16>, vector<8x32xf32> -> vector<8x32xf32>
    %cst_144 = arith.constant dense<0.000000e+00> : vector<8x32xf32>
    %400 = tpu.matmul %397, %391, %cst_144 {dimension_numbers = #tpu.dot_dimension_numbers<[1], [0], [0], [1], [0, 0, 1, 1], [], []>} : vector<8x32xbf16>, vector<32x32xbf16>, vector<8x32xf32> -> vector<8x32xf32>
    %401 = vector.extract_strided_slice %398 {offsets = [0, 0], sizes = [8, 8], strides = [1, 1]} : vector<8x32xf32> to vector<8x8xf32>
    %402 = vector.shape_cast %401 : vector<8x8xf32> to vector<1x8x8xf32>
    %403 = vector.extract_strided_slice %398 {offsets = [0, 8], sizes = [8, 8], strides = [1, 1]} : vector<8x32xf32> to vector<8x8xf32>
    %404 = vector.shape_cast %403 : vector<8x8xf32> to vector<1x8x8xf32>
    %405 = vector.extract_strided_slice %398 {offsets = [0, 16], sizes = [8, 8], strides = [1, 1]} : vector<8x32xf32> to vector<8x8xf32>
    %406 = vector.shape_cast %405 : vector<8x8xf32> to vector<1x8x8xf32>
    %407 = vector.extract_strided_slice %398 {offsets = [0, 24], sizes = [8, 8], strides = [1, 1]} : vector<8x32xf32> to vector<8x8xf32>
    %408 = vector.shape_cast %407 : vector<8x8xf32> to vector<1x8x8xf32>
    %409 = tpu.concatenate %402, %404, %406, %408 in 0 : vector<1x8x8xf32>, vector<1x8x8xf32>, vector<1x8x8xf32>, vector<1x8x8xf32> -> vector<4x8x8xf32>
    %410 = arith.truncf %409 : vector<4x8x8xf32> to vector<4x8x8xbf16>
    %411 = vector.extract_strided_slice %399 {offsets = [0, 0], sizes = [8, 8], strides = [1, 1]} : vector<8x32xf32> to vector<8x8xf32>
    %412 = vector.shape_cast %411 : vector<8x8xf32> to vector<1x8x8xf32>
    %413 = vector.extract_strided_slice %399 {offsets = [0, 8], sizes = [8, 8], strides = [1, 1]} : vector<8x32xf32> to vector<8x8xf32>
    %414 = vector.shape_cast %413 : vector<8x8xf32> to vector<1x8x8xf32>
    %415 = vector.extract_strided_slice %399 {offsets = [0, 16], sizes = [8, 8], strides = [1, 1]} : vector<8x32xf32> to vector<8x8xf32>
    %416 = vector.shape_cast %415 : vector<8x8xf32> to vector<1x8x8xf32>
    %417 = vector.extract_strided_slice %399 {offsets = [0, 24], sizes = [8, 8], strides = [1, 1]} : vector<8x32xf32> to vector<8x8xf32>
    %418 = vector.shape_cast %417 : vector<8x8xf32> to vector<1x8x8xf32>
    %419 = tpu.concatenate %412, %414, %416, %418 in 0 : vector<1x8x8xf32>, vector<1x8x8xf32>, vector<1x8x8xf32>, vector<1x8x8xf32> -> vector<4x8x8xf32>
    %420 = arith.truncf %419 : vector<4x8x8xf32> to vector<4x8x8xbf16>
    %421 = vector.extract_strided_slice %400 {offsets = [0, 0], sizes = [8, 8], strides = [1, 1]} : vector<8x32xf32> to vector<8x8xf32>
    %422 = vector.shape_cast %421 : vector<8x8xf32> to vector<1x8x8xf32>
    %423 = vector.extract_strided_slice %400 {offsets = [0, 8], sizes = [8, 8], strides = [1, 1]} : vector<8x32xf32> to vector<8x8xf32>
    %424 = vector.shape_cast %423 : vector<8x8xf32> to vector<1x8x8xf32>
    %425 = vector.extract_strided_slice %400 {offsets = [0, 16], sizes = [8, 8], strides = [1, 1]} : vector<8x32xf32> to vector<8x8xf32>
    %426 = vector.shape_cast %425 : vector<8x8xf32> to vector<1x8x8xf32>
    %427 = vector.extract_strided_slice %400 {offsets = [0, 24], sizes = [8, 8], strides = [1, 1]} : vector<8x32xf32> to vector<8x8xf32>
    %428 = vector.shape_cast %427 : vector<8x8xf32> to vector<1x8x8xf32>
    %429 = tpu.concatenate %422, %424, %426, %428 in 0 : vector<1x8x8xf32>, vector<1x8x8xf32>, vector<1x8x8xf32>, vector<1x8x8xf32> -> vector<4x8x8xf32>
    %430 = arith.truncf %429 : vector<4x8x8xf32> to vector<4x8x8xbf16>
    "tpu.trace_start"() <{level = 10 : i32, message = "bqd,bkd->bqk"}> : () -> ()
    %cst_145 = arith.constant dense<0.000000e+00> : vector<4x8x8xf32>
    %431 = tpu.matmul %410, %420, %cst_145 {dimension_numbers = #tpu.dot_dimension_numbers<[2], [2], [1], [1], [0, 0, 0, 1, 1, 1], [0], [0]>} : vector<4x8x8xbf16>, vector<4x8x8xbf16>, vector<4x8x8xf32> -> vector<4x8x8xf32>
    "tpu.trace_stop"() : () -> ()
    %432 = arith.mulf %431, %50 : vector<4x8x8xf32>
    %cst_146 = arith.constant 1.000000e+00 : f32
    %433 = vector.broadcast %cst_146 : f32 to vector<4x8x8xf32>
    %434 = arith.subf %433, %50 : vector<4x8x8xf32>
    %cst_147 = arith.constant -1.000000e+30 : f32
    %435 = vector.broadcast %cst_147 : f32 to vector<4x8x8xf32>
    %436 = arith.mulf %435, %434 : vector<4x8x8xf32>
    %437 = arith.addf %432, %436 : vector<4x8x8xf32>
    %cst_148 = arith.constant dense<0xFF800000> : vector<4x8xf32>
    %438 = vector.multi_reduction <maximumf>, %437, %cst_148 [2] : vector<4x8x8xf32> to vector<4x8xf32>
    %439 = vector.shape_cast %438 : vector<4x8xf32> to vector<4x8x1xf32>
    %440 = vector.broadcast %439 : vector<4x8x1xf32> to vector<4x8x8xf32>
    %441 = arith.subf %437, %440 : vector<4x8x8xf32>
    %442 = math.exp %441 : vector<4x8x8xf32>
    %443 = arith.mulf %442, %50 : vector<4x8x8xf32>
    %cst_149 = arith.constant dense<0.000000e+00> : vector<4x8xf32>
    %444 = vector.multi_reduction <add>, %443, %cst_149 [2] : vector<4x8x8xf32> to vector<4x8xf32>
    %445 = vector.shape_cast %444 : vector<4x8xf32> to vector<4x8x1xf32>
    %cst_150 = arith.constant 1.000000e-30 : f32
    %446 = vector.broadcast %cst_150 : f32 to vector<4x8x1xf32>
    %447 = arith.maximumf %445, %446 : vector<4x8x1xf32>
    %448 = tpu.reciprocal %447 {approx = true} : vector<4x8x1xf32> -> vector<4x8x1xf32>
    %cst_151 = arith.constant 0.000000e+00 : f32
    %449 = vector.broadcast %cst_151 : f32 to vector<4x8x1xf32>
    %450 = arith.cmpf ogt, %445, %449 : vector<4x8x1xf32>
    %451 = vector.broadcast %448 : vector<4x8x1xf32> to vector<4x8x8xf32>
    %452 = arith.mulf %443, %451 : vector<4x8x8xf32>
    %cst_152 = arith.constant 0.000000e+00 : f32
    %453 = vector.shape_cast %450 : vector<4x8x1xi1> to vector<4x8x1xi1>
    %454 = vector.broadcast %453 : vector<4x8x1xi1> to vector<4x8x8xi1>
    %455 = vector.broadcast %cst_152 : f32 to vector<4x8x8xf32>
    %456 = arith.select %454, %452, %455 : vector<4x8x8xi1>, vector<4x8x8xf32>
    %457 = arith.truncf %456 : vector<4x8x8xf32> to vector<4x8x8xbf16>
    "tpu.trace_start"() <{level = 10 : i32, message = "bqk,bkd->bqd"}> : () -> ()
    %cst_153 = arith.constant dense<0.000000e+00> : vector<4x8x8xf32>
    %458 = tpu.matmul %457, %430, %cst_153 {dimension_numbers = #tpu.dot_dimension_numbers<[2], [1], [1], [2], [0, 0, 0, 1, 1, 2], [0], [0]>} : vector<4x8x8xbf16>, vector<4x8x8xbf16>, vector<4x8x8xf32> -> vector<4x8x8xf32>
    %cst_154 = arith.constant 0.000000e+00 : f32
    "tpu.trace_stop"() : () -> ()
    %459 = vector.broadcast %cst_154 : f32 to vector<8x32xf32>
    %460 = vector.extract_strided_slice %458 {offsets = [0, 0, 0], sizes = [1, 8, 8], strides = [1, 1, 1]} : vector<4x8x8xf32> to vector<1x8x8xf32>
    %461 = vector.shape_cast %460 : vector<1x8x8xf32> to vector<8x8xf32>
    %462 = arith.truncf %461 : vector<8x8xf32> to vector<8x8xbf16>
    %463 = vector.extract_strided_slice %393 {offsets = [0, 0], sizes = [8, 32], strides = [1, 1]} : vector<32x32xbf16> to vector<8x32xbf16>
    %cst_155 = arith.constant dense<0.000000e+00> : vector<8x32xf32>
    %464 = tpu.matmul %462, %463, %cst_155 {dimension_numbers = #tpu.dot_dimension_numbers<[1], [0], [0], [1], [0, 0, 1, 1], [], []>} : vector<8x8xbf16>, vector<8x32xbf16>, vector<8x32xf32> -> vector<8x32xf32>
    %465 = arith.addf %459, %464 : vector<8x32xf32>
    %466 = vector.extract_strided_slice %458 {offsets = [1, 0, 0], sizes = [1, 8, 8], strides = [1, 1, 1]} : vector<4x8x8xf32> to vector<1x8x8xf32>
    %467 = vector.shape_cast %466 : vector<1x8x8xf32> to vector<8x8xf32>
    %468 = arith.truncf %467 : vector<8x8xf32> to vector<8x8xbf16>
    %469 = vector.extract_strided_slice %393 {offsets = [8, 0], sizes = [8, 32], strides = [1, 1]} : vector<32x32xbf16> to vector<8x32xbf16>
    %cst_156 = arith.constant dense<0.000000e+00> : vector<8x32xf32>
    %470 = tpu.matmul %468, %469, %cst_156 {dimension_numbers = #tpu.dot_dimension_numbers<[1], [0], [0], [1], [0, 0, 1, 1], [], []>} : vector<8x8xbf16>, vector<8x32xbf16>, vector<8x32xf32> -> vector<8x32xf32>
    %471 = arith.addf %465, %470 : vector<8x32xf32>
    %472 = vector.extract_strided_slice %458 {offsets = [2, 0, 0], sizes = [1, 8, 8], strides = [1, 1, 1]} : vector<4x8x8xf32> to vector<1x8x8xf32>
    %473 = vector.shape_cast %472 : vector<1x8x8xf32> to vector<8x8xf32>
    %474 = arith.truncf %473 : vector<8x8xf32> to vector<8x8xbf16>
    %475 = vector.extract_strided_slice %393 {offsets = [16, 0], sizes = [8, 32], strides = [1, 1]} : vector<32x32xbf16> to vector<8x32xbf16>
    %cst_157 = arith.constant dense<0.000000e+00> : vector<8x32xf32>
    %476 = tpu.matmul %474, %475, %cst_157 {dimension_numbers = #tpu.dot_dimension_numbers<[1], [0], [0], [1], [0, 0, 1, 1], [], []>} : vector<8x8xbf16>, vector<8x32xbf16>, vector<8x32xf32> -> vector<8x32xf32>
    %477 = arith.addf %471, %476 : vector<8x32xf32>
    %478 = vector.extract_strided_slice %458 {offsets = [3, 0, 0], sizes = [1, 8, 8], strides = [1, 1, 1]} : vector<4x8x8xf32> to vector<1x8x8xf32>
    %479 = vector.shape_cast %478 : vector<1x8x8xf32> to vector<8x8xf32>
    %480 = arith.truncf %479 : vector<8x8xf32> to vector<8x8xbf16>
    %481 = vector.extract_strided_slice %393 {offsets = [24, 0], sizes = [8, 32], strides = [1, 1]} : vector<32x32xbf16> to vector<8x32xbf16>
    %cst_158 = arith.constant dense<0.000000e+00> : vector<8x32xf32>
    %482 = tpu.matmul %480, %481, %cst_158 {dimension_numbers = #tpu.dot_dimension_numbers<[1], [0], [0], [1], [0, 0, 1, 1], [], []>} : vector<8x8xbf16>, vector<8x32xbf16>, vector<8x32xf32> -> vector<8x32xf32>
    %483 = arith.addf %477, %482 : vector<8x32xf32>
    %484 = vector.broadcast %395 : vector<1x32xf32> to vector<8x32xf32>
    %485 = arith.addf %483, %484 : vector<8x32xf32>
    %486 = arith.addf %333, %485 : vector<8x32xf32>
    %c0_159 = arith.constant 0 : index
    %c0_160 = arith.constant 0 : index
    %c0_161 = arith.constant 0 : index
    %487 = vector.load %arg21[%c0_159, %c0_160, %c0_161] : memref<1x1x32xf32, #tpu.memory_space<vmem>>, vector<1x1x32xf32>
    %488 = vector.shape_cast %487 : vector<1x1x32xf32> to vector<1x32xf32>
    %c0_162 = arith.constant 0 : index
    %c0_163 = arith.constant 0 : index
    %c0_164 = arith.constant 0 : index
    %489 = vector.load %arg22[%c0_162, %c0_163, %c0_164] : memref<1x1x32xf32, #tpu.memory_space<vmem>>, vector<1x1x32xf32>
    %490 = vector.shape_cast %489 : vector<1x1x32xf32> to vector<1x32xf32>
    %cst_165 = arith.constant dense<0.000000e+00> : vector<8xf32>
    %491 = vector.multi_reduction <add>, %486, %cst_165 [1] : vector<8x32xf32> to vector<8xf32>
    %492 = vector.shape_cast %491 : vector<8xf32> to vector<8x1xf32>
    %cst_166 = arith.constant 3.200000e+01 : f32
    %493 = vector.broadcast %cst_166 : f32 to vector<8x1xf32>
    %494 = arith.divf %492, %493 : vector<8x1xf32>
    %495 = vector.broadcast %494 : vector<8x1xf32> to vector<8x32xf32>
    %496 = arith.subf %486, %495 : vector<8x32xf32>
    %497 = arith.mulf %496, %496 : vector<8x32xf32>
    %cst_167 = arith.constant dense<0.000000e+00> : vector<8xf32>
    %498 = vector.multi_reduction <add>, %497, %cst_167 [1] : vector<8x32xf32> to vector<8xf32>
    %499 = vector.shape_cast %498 : vector<8xf32> to vector<8x1xf32>
    %cst_168 = arith.constant 3.200000e+01 : f32
    %500 = vector.broadcast %cst_168 : f32 to vector<8x1xf32>
    %501 = arith.divf %499, %500 : vector<8x1xf32>
    %502 = vector.broadcast %494 : vector<8x1xf32> to vector<8x32xf32>
    %503 = arith.subf %486, %502 : vector<8x32xf32>
    %cst_169 = arith.constant 9.99999974E-6 : f32
    %504 = vector.broadcast %cst_169 : f32 to vector<8x1xf32>
    %505 = arith.addf %501, %504 : vector<8x1xf32>
    %506 = math.rsqrt %505 : vector<8x1xf32>
    %507 = vector.broadcast %506 : vector<8x1xf32> to vector<8x32xf32>
    %508 = arith.mulf %503, %507 : vector<8x32xf32>
    %509 = vector.broadcast %488 : vector<1x32xf32> to vector<8x32xf32>
    %510 = arith.mulf %508, %509 : vector<8x32xf32>
    %511 = vector.broadcast %490 : vector<1x32xf32> to vector<8x32xf32>
    %512 = arith.addf %510, %511 : vector<8x32xf32>
    %cst_170 = arith.constant 0.000000e+00 : f32
    %513 = vector.broadcast %cst_170 : f32 to vector<8x32xf32>
    %514 = arith.maximumf %512, %513 : vector<8x32xf32>
    %515 = arith.addf %486, %514 : vector<8x32xf32>
    %516 = vector.shape_cast %206 : vector<8x32xf32> to vector<1x8x32xf32>
    %c0_171 = arith.constant 0 : index
    %c0_172 = arith.constant 0 : index
    %c0_173 = arith.constant 0 : index
    %517 = vector.load %arg34[%c0_171, %c0_172, %c0_173] : memref<1x8x32xf32, #tpu.memory_space<vmem>>, vector<1x8x32xf32>
    tpu.vector_store %arg34[%c0_171, %c0_172, %c0_173], %516 {strides = array<i32>} : memref<1x8x32xf32, #tpu.memory_space<vmem>>, vector<1x8x32xf32>,
    %518 = vector.shape_cast %515 : vector<8x32xf32> to vector<1x8x32xf32>
    %c0_174 = arith.constant 0 : index
    %c0_175 = arith.constant 0 : index
    %c0_176 = arith.constant 0 : index
    %519 = vector.load %arg35[%c0_174, %c0_175, %c0_176] : memref<1x8x32xf32, #tpu.memory_space<vmem>>, vector<1x8x32xf32>
    tpu.vector_store %arg35[%c0_174, %c0_175, %c0_176], %518 {strides = array<i32>} : memref<1x8x32xf32, #tpu.memory_space<vmem>>, vector<1x8x32xf32>,
    %520 = vector.shape_cast %515 : vector<8x32xf32> to vector<1x8x32xf32>
    %c0_177 = arith.constant 0 : index
    %c0_178 = arith.constant 0 : index
    %c0_179 = arith.constant 0 : index
    %521 = vector.load %arg33[%c0_177, %c0_178, %c0_179] : memref<1x8x32xf32, #tpu.memory_space<vmem>>, vector<1x8x32xf32>
    tpu.vector_store %arg33[%c0_177, %c0_178, %c0_179], %520 {strides = array<i32>} : memref<1x8x32xf32, #tpu.memory_space<vmem>>, vector<1x8x32xf32>,
    return
  }
  func.func @transform_0(%arg0: i32, %arg1: i32, %arg2: memref<2xi32, #tpu.memory_space<smem>>, %arg3: memref<2xi32, #tpu.memory_space<smem>>) -> (i32, i32, i32) {
    %c0_i32 = arith.constant 0 : i32
    %c0_i32_0 = arith.constant 0 : i32
    %c0_i32_1 = arith.constant 0 : i32
    return %arg0, %c0_i32, %c0_i32_0 : i32, i32, i32
  }
  func.func @transform_1(%arg0: i32, %arg1: i32, %arg2: memref<2xi32, #tpu.memory_space<smem>>, %arg3: memref<2xi32, #tpu.memory_space<smem>>) -> (i32, i32, i32) {
    %c0_i32 = arith.constant 0 : i32
    %c0_i32_0 = arith.constant 0 : i32
    %c0_i32_1 = arith.constant 0 : i32
    return %arg0, %c0_i32, %c0_i32_0 : i32, i32, i32
  }
  func.func @transform_2(%arg0: i32, %arg1: i32, %arg2: memref<2xi32, #tpu.memory_space<smem>>, %arg3: memref<2xi32, #tpu.memory_space<smem>>) -> (i32, i32, i32) {
    %c0_i32 = arith.constant 0 : i32
    %c0_i32_0 = arith.constant 0 : i32
    %c0_i32_1 = arith.constant 0 : i32
    return %arg1, %c0_i32, %c0_i32_0 : i32, i32, i32
  }
  func.func @transform_3(%arg0: i32, %arg1: i32, %arg2: memref<2xi32, #tpu.memory_space<smem>>, %arg3: memref<2xi32, #tpu.memory_space<smem>>) -> (i32, i32, i32) {
    %c0_i32 = arith.constant 0 : i32
    %c0_i32_0 = arith.constant 0 : i32
    %c0_i32_1 = arith.constant 0 : i32
    return %arg1, %c0_i32, %c0_i32_0 : i32, i32, i32
  }
  func.func @transform_4(%arg0: i32, %arg1: i32, %arg2: memref<2xi32, #tpu.memory_space<smem>>, %arg3: memref<2xi32, #tpu.memory_space<smem>>) -> (i32, i32, i32) {
    %c0_i32 = arith.constant 0 : i32
    %c0_i32_0 = arith.constant 0 : i32
    %c0_i32_1 = arith.constant 0 : i32
    return %arg1, %c0_i32, %c0_i32_0 : i32, i32, i32
  }
  func.func @transform_5(%arg0: i32, %arg1: i32, %arg2: memref<2xi32, #tpu.memory_space<smem>>, %arg3: memref<2xi32, #tpu.memory_space<smem>>) -> (i32, i32, i32) {
    %c0_i32 = arith.constant 0 : i32
    %c0_i32_0 = arith.constant 0 : i32
    %c0_i32_1 = arith.constant 0 : i32
    return %arg1, %c0_i32, %c0_i32_0 : i32, i32, i32
  }
  func.func @transform_6(%arg0: i32, %arg1: i32, %arg2: memref<2xi32, #tpu.memory_space<smem>>, %arg3: memref<2xi32, #tpu.memory_space<smem>>) -> (i32, i32, i32) {
    %c0_i32 = arith.constant 0 : i32
    %c0_i32_0 = arith.constant 0 : i32
    %c0_i32_1 = arith.constant 0 : i32
    return %arg1, %c0_i32, %c0_i32_0 : i32, i32, i32
  }
  func.func @transform_7(%arg0: i32, %arg1: i32, %arg2: memref<2xi32, #tpu.memory_space<smem>>, %arg3: memref<2xi32, #tpu.memory_space<smem>>) -> (i32, i32, i32) {
    %c0_i32 = arith.constant 0 : i32
    %c0_i32_0 = arith.constant 0 : i32
    %c0_i32_1 = arith.constant 0 : i32
    return %arg1, %c0_i32, %c0_i32_0 : i32, i32, i32
  }
  func.func @transform_8(%arg0: i32, %arg1: i32, %arg2: memref<2xi32, #tpu.memory_space<smem>>, %arg3: memref<2xi32, #tpu.memory_space<smem>>) -> (i32, i32, i32) {
    %c0_i32 = arith.constant 0 : i32
    %c0_i32_0 = arith.constant 0 : i32
    %c0_i32_1 = arith.constant 0 : i32
    return %arg1, %c0_i32, %c0_i32_0 : i32, i32, i32
  }
  func.func @transform_9(%arg0: i32, %arg1: i32, %arg2: memref<2xi32, #tpu.memory_space<smem>>, %arg3: memref<2xi32, #tpu.memory_space<smem>>) -> (i32, i32, i32) {
    %c0_i32 = arith.constant 0 : i32
    %c0_i32_0 = arith.constant 0 : i32
    %c0_i32_1 = arith.constant 0 : i32
    return %arg1, %c0_i32, %c0_i32_0 : i32, i32, i32
  }
  func.func @transform_10(%arg0: i32, %arg1: i32, %arg2: memref<2xi32, #tpu.memory_space<smem>>, %arg3: memref<2xi32, #tpu.memory_space<smem>>) -> (i32, i32, i32) {
    %c0_i32 = arith.constant 0 : i32
    %c0_i32_0 = arith.constant 0 : i32
    %c0_i32_1 = arith.constant 0 : i32
    return %arg1, %c0_i32, %c0_i32_0 : i32, i32, i32
  }
  func.func @transform_11(%arg0: i32, %arg1: i32, %arg2: memref<2xi32, #tpu.memory_space<smem>>, %arg3: memref<2xi32, #tpu.memory_space<smem>>) -> (i32, i32, i32) {
    %c0_i32 = arith.constant 0 : i32
    %c0_i32_0 = arith.constant 0 : i32
    %c0_i32_1 = arith.constant 0 : i32
    return %arg1, %c0_i32, %c0_i32_0 : i32, i32, i32
  }
  func.func @transform_12(%arg0: i32, %arg1: i32, %arg2: memref<2xi32, #tpu.memory_space<smem>>, %arg3: memref<2xi32, #tpu.memory_space<smem>>) -> (i32, i32, i32) {
    %c0_i32 = arith.constant 0 : i32
    %c0_i32_0 = arith.constant 0 : i32
    %c0_i32_1 = arith.constant 0 : i32
    return %arg1, %c0_i32, %c0_i32_0 : i32, i32, i32
  }
  func.func @transform_13(%arg0: i32, %arg1: i32, %arg2: memref<2xi32, #tpu.memory_space<smem>>, %arg3: memref<2xi32, #tpu.memory_space<smem>>) -> (i32, i32, i32) {
    %c0_i32 = arith.constant 0 : i32
    %c0_i32_0 = arith.constant 0 : i32
    %c0_i32_1 = arith.constant 0 : i32
    return %arg1, %c0_i32, %c0_i32_0 : i32, i32, i32
  }
  func.func @transform_14(%arg0: i32, %arg1: i32, %arg2: memref<2xi32, #tpu.memory_space<smem>>, %arg3: memref<2xi32, #tpu.memory_space<smem>>) -> (i32, i32, i32) {
    %c0_i32 = arith.constant 0 : i32
    %c0_i32_0 = arith.constant 0 : i32
    %c0_i32_1 = arith.constant 0 : i32
    return %arg1, %c0_i32, %c0_i32_0 : i32, i32, i32
  }
  func.func @transform_15(%arg0: i32, %arg1: i32, %arg2: memref<2xi32, #tpu.memory_space<smem>>, %arg3: memref<2xi32, #tpu.memory_space<smem>>) -> (i32, i32, i32) {
    %c0_i32 = arith.constant 0 : i32
    %c0_i32_0 = arith.constant 0 : i32
    %c0_i32_1 = arith.constant 0 : i32
    return %arg1, %c0_i32, %c0_i32_0 : i32, i32, i32
  }
  func.func @transform_16(%arg0: i32, %arg1: i32, %arg2: memref<2xi32, #tpu.memory_space<smem>>, %arg3: memref<2xi32, #tpu.memory_space<smem>>) -> (i32, i32, i32) {
    %c0_i32 = arith.constant 0 : i32
    %c0_i32_0 = arith.constant 0 : i32
    %c0_i32_1 = arith.constant 0 : i32
    return %arg1, %c0_i32, %c0_i32_0 : i32, i32, i32
  }
  func.func @transform_17(%arg0: i32, %arg1: i32, %arg2: memref<2xi32, #tpu.memory_space<smem>>, %arg3: memref<2xi32, #tpu.memory_space<smem>>) -> (i32, i32, i32) {
    %c0_i32 = arith.constant 0 : i32
    %c0_i32_0 = arith.constant 0 : i32
    %c0_i32_1 = arith.constant 0 : i32
    return %arg1, %c0_i32, %c0_i32_0 : i32, i32, i32
  }
  func.func @transform_18(%arg0: i32, %arg1: i32, %arg2: memref<2xi32, #tpu.memory_space<smem>>, %arg3: memref<2xi32, #tpu.memory_space<smem>>) -> (i32, i32, i32) {
    %c0_i32 = arith.constant 0 : i32
    %c0_i32_0 = arith.constant 0 : i32
    %c0_i32_1 = arith.constant 0 : i32
    return %arg1, %c0_i32, %c0_i32_0 : i32, i32, i32
  }
  func.func @transform_19(%arg0: i32, %arg1: i32, %arg2: memref<2xi32, #tpu.memory_space<smem>>, %arg3: memref<2xi32, #tpu.memory_space<smem>>) -> (i32, i32, i32) {
    %c0_i32 = arith.constant 0 : i32
    %c0_i32_0 = arith.constant 0 : i32
    %c0_i32_1 = arith.constant 0 : i32
    return %arg1, %c0_i32, %c0_i32_0 : i32, i32, i32
  }
  func.func @transform_20(%arg0: i32, %arg1: i32, %arg2: memref<2xi32, #tpu.memory_space<smem>>, %arg3: memref<2xi32, #tpu.memory_space<smem>>) -> (i32, i32, i32) {
    %c0_i32 = arith.constant 0 : i32
    %c0_i32_0 = arith.constant 0 : i32
    %c0_i32_1 = arith.constant 0 : i32
    return %arg1, %c0_i32, %c0_i32_0 : i32, i32, i32
  }
  func.func @transform_21(%arg0: i32, %arg1: i32, %arg2: memref<2xi32, #tpu.memory_space<smem>>, %arg3: memref<2xi32, #tpu.memory_space<smem>>) -> (i32, i32, i32) {
    %c0_i32 = arith.constant 0 : i32
    %c0_i32_0 = arith.constant 0 : i32
    %c0_i32_1 = arith.constant 0 : i32
    return %arg1, %c0_i32, %c0_i32_0 : i32, i32, i32
  }
  func.func @transform_22(%arg0: i32, %arg1: i32, %arg2: memref<2xi32, #tpu.memory_space<smem>>, %arg3: memref<2xi32, #tpu.memory_space<smem>>) -> (i32, i32, i32) {
    %c0_i32 = arith.constant 0 : i32
    %c0_i32_0 = arith.constant 0 : i32
    %c0_i32_1 = arith.constant 0 : i32
    return %arg1, %c0_i32, %c0_i32_0 : i32, i32, i32
  }
  func.func @transform_23(%arg0: i32, %arg1: i32, %arg2: memref<2xi32, #tpu.memory_space<smem>>, %arg3: memref<2xi32, #tpu.memory_space<smem>>) -> (i32, i32, i32) {
    %c0_i32 = arith.constant 0 : i32
    %c0_i32_0 = arith.constant 0 : i32
    %c0_i32_1 = arith.constant 0 : i32
    return %arg1, %c0_i32, %c0_i32_0 : i32, i32, i32
  }
  func.func @transform_24(%arg0: i32, %arg1: i32, %arg2: memref<2xi32, #tpu.memory_space<smem>>, %arg3: memref<2xi32, #tpu.memory_space<smem>>) -> (i32, i32, i32) {
    %c0_i32 = arith.constant 0 : i32
    %c0_i32_0 = arith.constant 0 : i32
    %c0_i32_1 = arith.constant 0 : i32
    return %arg1, %c0_i32, %c0_i32_0 : i32, i32, i32
  }
  func.func @transform_25(%arg0: i32, %arg1: i32, %arg2: memref<2xi32, #tpu.memory_space<smem>>, %arg3: memref<2xi32, #tpu.memory_space<smem>>) -> (i32, i32, i32) {
    %c0_i32 = arith.constant 0 : i32
    %c0_i32_0 = arith.constant 0 : i32
    %c0_i32_1 = arith.constant 0 : i32
    return %arg1, %c0_i32, %c0_i32_0 : i32, i32, i32
  }
  func.func @transform_26(%arg0: i32, %arg1: i32, %arg2: memref<2xi32, #tpu.memory_space<smem>>, %arg3: memref<2xi32, #tpu.memory_space<smem>>) -> (i32, i32, i32) {
    %c0_i32 = arith.constant 0 : i32
    %c0_i32_0 = arith.constant 0 : i32
    %c0_i32_1 = arith.constant 0 : i32
    return %arg1, %c0_i32, %c0_i32_0 : i32, i32, i32
  }
  func.func @transform_27(%arg0: i32, %arg1: i32, %arg2: memref<2xi32, #tpu.memory_space<smem>>, %arg3: memref<2xi32, #tpu.memory_space<smem>>) -> (i32, i32, i32) {
    %c0_i32 = arith.constant 0 : i32
    %c0_i32_0 = arith.constant 0 : i32
    %c0_i32_1 = arith.constant 0 : i32
    return %arg1, %c0_i32, %c0_i32_0 : i32, i32, i32
  }
  func.func @transform_28(%arg0: i32, %arg1: i32, %arg2: memref<2xi32, #tpu.memory_space<smem>>, %arg3: memref<2xi32, #tpu.memory_space<smem>>) -> (i32, i32, i32) {
    %c0_i32 = arith.constant 0 : i32
    %c0_i32_0 = arith.constant 0 : i32
    %c0_i32_1 = arith.constant 0 : i32
    return %arg1, %c0_i32, %c0_i32_0 : i32, i32, i32
  }
  func.func @transform_29(%arg0: i32, %arg1: i32, %arg2: memref<2xi32, #tpu.memory_space<smem>>, %arg3: memref<2xi32, #tpu.memory_space<smem>>) -> (i32, i32, i32) {
    %c0_i32 = arith.constant 0 : i32
    %c0_i32_0 = arith.constant 0 : i32
    %c0_i32_1 = arith.constant 0 : i32
    return %arg0, %c0_i32, %c0_i32_0 : i32, i32, i32
  }
}

</mosaic_0001>

<bundles_post_ra>
// kernel: seq2seq_forward.3
= control target key start
LH: loop header
LB: loop body
LE: loop exit
PB: predicated region body
PF: predicated region fallthrough
CT: control target
= control target key end

     0   :  { %v152_v1 = vmov 0.0   ;;  %vm153_vm0 = vmmov 0   ;;  %s204_s0 = inlined_call_operand.vmem [shape: f32[16,32], index: 0, kind: input, shape index: {}]   ;;  %s205_s1 = inlined_call_operand.vmem [shape: bf16[32,20], index: 1, kind: input, shape index: {}]   ;;  %s206_s2 = inlined_call_operand.vmem [shape: f32[1,20], index: 2, kind: input, shape index: {}]   ;;  %s207_s3 = inlined_call_operand.hbm [shape: f32[16,20], index: 3, kind: output, shape index: {}]  }
   0x1   :  { %v126_v0 = vld [vmem:[%s205_s1] sm:$0xff]   ;;  %113 = vmatprep.subr.bf16.mxu0 %v152_v1  ;;  %v127_v2 = vld [vmem:[%s205_s1 + $0x8] sm:$0xff]   ;;  %117 = vmatprep.mubr.msk.bf16.mxu0 %vm153_vm0, %v152_v1 }
   0x2   :  { %114 = vmatpush3.bf16.msra.mxu0 %v126_v0  ;;  %v16_v3 = vld [vmem:[%s204_s0] sm:$0xff]  ;;  %v17_v4 = vld [vmem:[%s204_s0 + $0x8] sm:$0xff] }
   0x3   :  { %115 = vmatprep.subr.bf16.mxu0 %v152_v1 }
   0x4   :  { %8 = vsyncpa [#allocation3], 0  ;;  %v18_v5 = vpack.c.bf16 %v17_v4, %v16_v3  ;;  %vm42_vm1 = vcmask 261120   ;;  %v106_v6 = vld [vmem:[%s206_s2] ss:$0 sm:$0xff]  ;;  %s154_s1 = smov [#allocation2]  }
   0x5   :  { %s95_s22 = sshll.u32 %s154_s1, 4  ;;  %vm87_vm2 = vcmask 162816   ;;  %s96_s22 = int_to_ptr.vmem [resolvable:$true] %s95_s22 }
   0x6   :  { %116 = vmatpush3.bf16.msra.mxu0 %v127_v2  ;;  %s128_s0 = scalar_lea.vmem %s96_s22, 256  ;;  %p133_p1 = scmp.lt.s32.totalorder %s96_s22, %s96_s22 }
   0x7   :  { %p129_p0 = scmp.ne.s32.totalorder %s96_s22, %s128_s0  ;;  %p134_p2 = scmp.lt.s32.totalorder %s128_s0, %s128_s0 }
   0x9   :  { %118 = vmatmul.mubr.msk.bf16.vlgmr.msra.gmra.mrb[0].mxu0 %vm42_vm1, %v18_v5  ;;  %p135_p3 = por %p134_p2, %p133_p1 }
   0xb   :  { %p136_p4 = pnand %p135_p3, %p129_p0 }
  0xdc   :  { %v80_v7 = vpop.f32.mrb[0].mxu0 }
  0xdd   :  { %v81_v8 = vadd.f32 %v106_v6, %v80_v7  ;;  %v119_v9 = vpop.f32.mrb[1].mxu0 }
  0xde   :  { %v83_v10 = vpop.f32.mrb[2].mxu0 }
  0xdf   :  { %88 = vst.msk [vmem:[#allocation2] sm:$0xff] %vm87_vm2, %v81_v8  ;;  %v84_v11 = vadd.f32 %v106_v6, %v83_v10  ;;  %v120_v12 = vpop.f32.mrb[3].mxu0 }
  0xe1   :  { %89 = vst.msk [vmem:[#allocation2 + $0x8] sm:$0xff] %vm87_vm2, %v84_v11 }
  0xe2   :  { %139 = shalt.err (!%p136_p4)
}
  0xe3   :  { %s140_s24 = scalar_lea.hbm %s207_s3, 256 }
  0xe4   :  { %p141_p5 = scmp.ne.s32.totalorder %s207_s3, %s140_s24  ;;  %p144_p6 = scmp.lt.u32.totalorder %s140_s24, %s207_s3 }
  0xe6   :  { %p146_p7 = pnand %p144_p6, %p141_p5 }
  0xe8   :  { %149 = shalt.err (!%p146_p7)
}
  0xe9   :  { %s155_s29 = smov 128   ;;  %s156_s30 = smov 8  }
  0xea   :  { %101 = dma.vmem_to_hbm [thread:$0]  %s96_s22, 256, %s207_s3, [#allocation3], %s155_s29, %s155_s29, %s156_s30  }
  0xeb   :  { %150 = dma.done.wait [#allocation3], 256  }
  0xec   :  { %151 = vsyncadd [#allocation3], 4294967040 }
  0xed   :  { %105 = vsyncpa [#allocation3], 1 }

// kernel: seq2seq_forward.2
= control target key start
LH: loop header
LB: loop body
LE: loop exit
PB: predicated region body
PF: predicated region fallthrough
CT: control target
= control target key end

     0   :  { %s5341_s6 = smov 2   ;;  %s5342_s10 = smov 3   ;;  %s6158_s0 = inlined_call_operand.smem [shape: u32[32], index: -1, kind: input, shape index: {}] }
   0x1   :  { %s5387_s5 = sld [smem:[%s6158_s0]]   ;;  %s5343_s14 = smov 4  }
   0x2   :  { %s5392_s9 = sld [smem:[%s6158_s0 + %s5341_s6]]   ;;  %s5344_s18 = smov 5  }
   0x3   :  { %s5397_s13 = sld [smem:[%s6158_s0 + %s5342_s10]]   ;;  %s5345_s22 = smov 6  }
   0x4   :  { %s5402_s17 = sld [smem:[%s6158_s0 + %s5343_s14]]   ;;  %s5346_s26 = smov 7  }
   0x5   :  { %s5407_s21 = sld [smem:[%s6158_s0 + %s5344_s18]]   ;;  %s5347_s30 = smov 8  }
   0x6   :  { %s5412_s25 = sld [smem:[%s6158_s0 + %s5345_s22]]   ;;  %s5348_s4 = smov 9  }
   0x7   :  { %s5417_s29 = sld [smem:[%s6158_s0 + %s5346_s26]]   ;;  %s5349_s10 = smov 10  }
   0x8   :  { %6171 = sst [smem:[#allocation8_spill]] %s5392_s9  ;;  %s5350_s15 = smov 11  }
   0x9   :  { %6172 = sst [smem:[#allocation9_spill]] %s5397_s13  ;;  %s5351_s20 = smov 12  }
   0xa   :  { %6173 = sst [smem:[#allocation10_spill]] %s5402_s17  ;;  %s5352_s26 = smov 13  }
   0xb   :  { %6174 = sst [smem:[#allocation11_spill]] %s5407_s21  ;;  %s5353_s1 = smov 14  }
   0xc   :  { %6175 = sst [smem:[#allocation12_spill]] %s5412_s25  ;;  %s5354_s7 = smov 15  }
   0xd   :  { %6176 = sst [smem:[#allocation13_spill]] %s5417_s29  ;;  %s5356_s22 = smov 17  }
   0xe   :  { %s5422_s3 = sld [smem:[%s6158_s0 + %s5347_s30]]   ;;  %s5357_s28 = smov 18  }
   0xf   :  { %s5427_s8 = sld [smem:[%s6158_s0 + %s5348_s4]]  }
  0x10   :  { %s5432_s14 = sld [smem:[%s6158_s0 + %s5349_s10]]  }
  0x11   :  { %s5437_s19 = sld [smem:[%s6158_s0 + %s5350_s15]]   ;;  %s5355_s15 = smov 16  }
  0x12   :  { %s5442_s24 = sld [smem:[%s6158_s0 + %s5351_s20]]  }
  0x13   :  { %s5447_s30 = sld [smem:[%s6158_s0 + %s5352_s26]]  }
  0x14   :  { %6177 = sst [smem:[#allocation14_spill]] %s5422_s3 }
  0x15   :  { %6178 = sst [smem:[#allocation15_spill]] %s5427_s8 }
  0x16   :  { %6179 = sst [smem:[#allocation16_spill]] %s5432_s14 }
  0x17   :  { %6180 = sst [smem:[#allocation17_spill]] %s5437_s19 }
  0x18   :  { %6181 = sst [smem:[#allocation18_spill]] %s5442_s24 }
  0x19   :  { %6182 = sst [smem:[#allocation19_spill]] %s5447_s30 }
  0x1a   :  { %s5452_s6 = sld [smem:[%s6158_s0 + %s5353_s1]]  }
  0x1b   :  { %s5457_s12 = sld [smem:[%s6158_s0 + %s5354_s7]]   ;;  %s5358_s7 = smov 19  }
  0x1c   :  { %s5462_s20 = sld [smem:[%s6158_s0 + %s5355_s15]]   ;;  %s5359_s15 = smov 20  }
  0x1d   :  { %s5467_s27 = sld [smem:[%s6158_s0 + %s5356_s22]]   ;;  %s5360_s22 = smov 21  }
  0x1e   :  { %s5472_s4 = sld [smem:[%s6158_s0 + %s5357_s28]]   ;;  %s5361_s28 = smov 22  }
  0x20   :  { %6183 = sst [smem:[#allocation20_spill]] %s5452_s6 }
  0x21   :  { %6184 = sst [smem:[#allocation21_spill]] %s5457_s12 }
  0x22   :  { %6185 = sst [smem:[#allocation22_spill]] %s5462_s20 }
  0x23   :  { %6186 = sst [smem:[#allocation23_spill]] %s5467_s27 }
  0x24   :  { %6187 = sst [smem:[#allocation24_spill]] %s5472_s4 }
  0x25   :  { %s5477_s12 = sld [smem:[%s6158_s0 + %s5358_s7]]   ;;  %s5362_s7 = smov 23  }
  0x26   :  { %s5482_s20 = sld [smem:[%s6158_s0 + %s5359_s15]]   ;;  %s5363_s15 = smov 24  }
  0x27   :  { %s5487_s27 = sld [smem:[%s6158_s0 + %s5360_s22]]   ;;  %s5364_s22 = smov 25  }
  0x28   :  { %s5492_s4 = sld [smem:[%s6158_s0 + %s5361_s28]]   ;;  %s5365_s28 = smov 26  }
  0x29   :  { %s5502_s23 = sld [smem:[%s6158_s0 + %s5363_s15]]   ;;  %s5367_s15 = smov 28  }
  0x2a   :  { %s5507_s1 = sld [smem:[%s6158_s0 + %s5364_s22]]  }
  0x2b   :  { %6188 = sst [smem:[#allocation25_spill]] %s5477_s12 }
  0x2c   :  { %6189 = sst [smem:[#allocation26_spill]] %s5482_s20 }
  0x2d   :  { %6190 = sst [smem:[#allocation27_spill]] %s5487_s27  ;;  %s5368_s27 = smov 29  }
  0x2e   :  { %6191 = sst [smem:[#allocation28_spill]] %s5492_s4  ;;  %s5369_s4 = smov 30  }
  0x2f   :  { %s5497_s12 = sld [smem:[%s6158_s0 + %s5362_s7]]   ;;  %s5366_s7 = smov 27  }
  0x30   :  { %6193 = sst [smem:[#allocation30_spill]] %s5502_s23  ;;  %s68_s23 = sshll.u32 %s5387_s5, 4  ;;  %s69_s23 = int_to_ptr.vmem [resolvable:$true] %s68_s23 }
  0x31   :  { %6194 = sst [smem:[#allocation31_spill]] %s5507_s1  ;;  %p5280_p1 = scmp.lt.s32.totalorder %s69_s23, %s69_s23 }
  0x32   :  { %s5512_s10 = sld [smem:[%s6158_s0 + %s5365_s28]]  }
  0x33   :  { %s5517_s16 = sld [smem:[%s6158_s0 + %s5366_s7]]  }
  0x34   :  { %s5522_s20 = sld [smem:[%s6158_s0 + %s5367_s15]]   ;;  %s5275_s15 = scalar_lea.vmem %s69_s23, 16 }
  0x35   :  { %6192 = sst [smem:[#allocation29_spill]] %s5497_s12  ;;  %s5370_s12 = smov 31  }
  0x36   :  { %s5527_s1 = sld [smem:[%s6158_s0 + %s5368_s27]]   ;;  %p5276_p0 = scmp.ne.s32.totalorder %s69_s23, %s5275_s15 }
  0x37   :  { %p5281_p2 = scmp.lt.s32.totalorder %s5275_s15, %s5275_s15 }
  0x38   :  { %6195 = sst [smem:[#allocation32_spill]] %s5512_s10 }
  0x39   :  { %6196 = sst [smem:[#allocation33_spill]] %s5517_s16  ;;  %p5282_p3 = por %p5281_p2, %p5280_p1 }
  0x3a   :  { %6197 = sst [smem:[#allocation34_spill]] %s5522_s20 }
  0x3b   :  { %s5532_s10 = sld [smem:[%s6158_s0 + %s5369_s4]]   ;;  %p5283_p4 = pnand %p5282_p3, %p5276_p0 }
  0x3c   :  { %6198 = sst [smem:[#allocation35_spill]] %s5527_s1 }
  0x3d   :  { %s5537_s16 = sld [smem:[%s6158_s0 + %s5370_s12]]  }
  0x41   :  { %6199 = sst [smem:[#allocation36_spill]] %s5532_s10 }
  0x43   :  { %6200 = sst [smem:[#allocation37_spill]] %s5537_s16 }
  0x44   :  { %5286 = shalt.err (!%p5283_p4)  }
  0x45   :  { %s5371_s18 = smov [#allocation5]   ;;  %s5372_s27 = smov 1  }
  0x46   :  { %71 = dma.vmem_to_smem %s69_s23, 16, %s5371_s18, [#allocation4] }
  0x47   :  { %s4573_s4 = sld [smem:[%s6158_s0 + %s5372_s27]]  }
  0x4d   :  { %s72_s28 = sshll.u32 %s4573_s4, 4  ;;  %s73_s28 = int_to_ptr.vmem [resolvable:$true] %s72_s28 }
  0x4e   :  { %s5287_s2 = scalar_lea.vmem %s73_s28, 16  ;;  %p5292_p6 = scmp.lt.s32.totalorder %s73_s28, %s73_s28 }
  0x4f   :  { %p5288_p5 = scmp.ne.s32.totalorder %s73_s28, %s5287_s2  ;;  %p5293_p7 = scmp.lt.s32.totalorder %s5287_s2, %s5287_s2 }
  0x51   :  { %p5294_p8 = por %p5293_p7, %p5292_p6 }
  0x53   :  { %p5295_p9 = pnand %p5294_p8, %p5288_p5 }
  0x55   :  { %5298 = shalt.err (!%p5295_p9)  }
  0x56   :  { %s5373_s5 = smov [#allocation6]  }
  0x57   :  { %75 = dma.vmem_to_smem %s73_s28, 16, %s5373_s5, [#allocation4] }
  0x58   :  { %5319 = dma.done.wait [#allocation4], 32 }
  0x59   :  { %5320 = vsyncadd [#allocation4], 4294967264 }
  0x5a   :  { %77 = sfence }
  0x5b   :  { %s5543_s12 = smov 0   ;;  %s5545_s7 = smov 0  }
  0x5c   :  { %s5547_s11 = smov 0   ;;  %s5549_s0 = smov 0  }
  0x5d   :  { %s5551_s23 = smov 0  }
  0x5e LB: > { %6201 = sst [smem:[#allocation38_spill]] %s5323_s12  ;;  %s92_s15 = sadd.s32 1, %s5331_s11  ;;  %s5339_s23 = sphi %s5551_s23, %s83_s23   ;;  %s5335_s0 = sphi %s5549_s0, %s6289_s0   ;;  %s5331_s11 = sphi %s5547_s11, %s6288_s11   ;;  %s5327_s7 = sphi %s5545_s7, %s6287_s7   ;;  %s5323_s12 = sphi %s5543_s12, %s6286_s12  }
  0x5f   : > { %6202 = sst [smem:[#allocation39_spill]] %s5327_s7  ;;  %s95_s18 = sadd.s32 1, %s5335_s0 }
  0x60   : > { %6203 = sst [smem:[#allocation40_spill]] %s5331_s11  ;;  %p93_p10 = scmp.ge.s32.totalorder %s92_s15, 2 }
  0x61   : > { %6204 = sst [smem:[#allocation41_spill]] %s5335_s0  ;;  %p4607_p11 = scmp.ge.s32.totalorder %s5339_s23, 1 }
  0x62   : > { %6205 = sst [smem:[#allocation42_spill]] %s5339_s23  ;;  %p1091_p12 = scmp.lt.s32.totalorder %s5339_s23, 5 }
  0x63   : > { %s6291_s15 = smov (%p93_p10, %s92_s15), 0  ;;  %s6293_s18 = smov (!%p93_p10, %s95_s18), %s5335_s0 }
  0x64   : > { %6206 = sst [smem:[#allocation43_spill]] %s6291_s15  ;;  %p1092_p13 = pnand %p4607_p11, %p1091_p12 }
  0x65   : > { %p97_p0 = scmp.ge.s32.totalorder %s6293_s18, 2 }
  0x66   : > { %1095 = sbr.rel (%p1092_p13) target bundleno = 4879 (0x130f), region = 136 }
  0x67   : > { %s6295_s18 = smov (%p97_p0, %s6293_s18), 0 }
  0x68   : > { %6207 = sst [smem:[#allocation44_spill]] %s6295_s18 }
  0x6d   : > { %s6215_s3 = sld [smem:[#allocation14_spill]]  ;;  %s6216_s8 = sld [smem:[#allocation15_spill]] }
  0x6e   : > { %s6217_s14 = sld [smem:[#allocation16_spill]]  ;;  %p1274_p1 = scmp.lt.s32.totalorder %s5327_s7, 1 }
  0x6f   : > { %s6218_s19 = sld [smem:[#allocation17_spill]]  ;;  %p1282_p2 = scmp.lt.s32.totalorder %s5323_s12, 1 }
  0x70   : > { %s1275_s27 = scalar_select %p1274_p1, %s5327_s7, 1 }
  0x71   : > { %s5581_s22 = scalar_select %p1282_p2, %s5323_s12, 1 }
  0x72   : > { %s5583_s4 = sshll.u32 %s1275_s27, 3  ;;  %s6224_s5 = sld [smem:[#allocation23_spill]] }
  0x73   : > { %6222 = sst [smem:[#allocation45_spill]] %s5583_s4  ;;  %s6225_s15 = sld [smem:[#allocation24_spill]] }
  0x74   : > { %s6226_s11 = sld [smem:[#allocation25_spill]]  ;;  %s6227_s7 = sld [smem:[#allocation26_spill]] }
  0x75   : > { %s6228_s16 = sld [smem:[#allocation27_spill]]  ;;  %s6229_s10 = sld [smem:[#allocation28_spill]] }
  0x76   : > { %s4719_s1 = sshll.u32 %s5581_s22, 4  ;;  %s6230_s20 = sld [smem:[#allocation29_spill]] }
  0x77   : > { %s6231_s9 = sld [smem:[#allocation30_spill]]  ;;  %s5601_s4 = scalar_lea.vmem %s6215_s3, %s4719_s1 }
  0x78   : > { %6232 = sst [smem:[#allocation46_spill]] %s5601_s4  ;;  %s6233_s18 = sld [smem:[#allocation31_spill]] }
  0x79   : > { %s5604_s13 = scalar_lea.vmem %s6216_s8, %s4719_s1  ;;  %s6235_s0 = sld [smem:[#allocation32_spill]] }
  0x7a   : > { %6234 = sst [smem:[#allocation47_spill]] %s5604_s13  ;;  %s5607_s17 = scalar_lea.vmem %s6217_s14, %s4719_s1 }
  0x7b   : > { %6236 = sst [smem:[#allocation48_spill]] %s5607_s17  ;;  %s6237_s23 = sld [smem:[#allocation33_spill]] }
  0x7c   : > { %s5610_s21 = scalar_lea.vmem %s6218_s19, %s4719_s1  ;;  %s6239_s12 = sld [smem:[#allocation34_spill]] }
  0x7d   : > { %6238 = sst [smem:[#allocation49_spill]] %s5610_s21  ;;  %s6240_s27 = sld [smem:[#allocation35_spill]] }
  0x7e   : > { %s6241_s2 = sld [smem:[#allocation36_spill]]  ;;  %s6242_s3 = sld [smem:[#allocation45_spill]] }
  0x7f   : > { %s6243_s4 = sld [smem:[#allocation37_spill]]  ;;  %s1331_s13 = scalar_lea.vmem %s6224_s5, %s5581_s22 }
  0x80   : > { %s1334_s14 = scalar_lea.vmem %s6225_s15, %s5581_s22  ;;  %s1337_s17 = scalar_lea.vmem %s6226_s11, %s5581_s22 }
  0x81   : > { %s1340_s19 = scalar_lea.vmem %s6227_s7, %s5581_s22  ;;  %s5629_s21 = scalar_lea.vmem %s6228_s16, %s4719_s1 }
  0x82   : > { %s5632_s25 = scalar_lea.vmem %s6229_s10, %s4719_s1  ;;  %s5635_s30 = scalar_lea.vmem %s6230_s20, %s4719_s1 }
  0x83   : > { %s5638_s6 = scalar_lea.vmem %s6231_s9, %s4719_s1  ;;  %s1363_s29 = scalar_lea.vmem %s6233_s18, %s5581_s22 }
  0x84   : > { %s5643_s24 = scalar_lea.vmem %s6235_s0, %s4719_s1  ;;  %s5646_s26 = scalar_lea.vmem %s6237_s23, %s4719_s1 }
  0x85   : > { %s5649_s8 = scalar_lea.vmem %s6239_s12, %s4719_s1  ;;  %s5652_s28 = scalar_lea.vmem %s6240_s27, %s4719_s1 }
  0x86   : > { %s1386_s15 = scalar_lea.vmem %s6241_s2, %s5581_s22  ;;  %s1390_s11 = scalar_lea.vmem %s6243_s4, %s6242_s3 }
  0x87   : > { %s6244_s7 = sld [smem:[#allocation38_spill]] }
  0x8d   : > { %p4635_p3 = scmp.ne.s32.totalorder %s6244_s7, 0 }
  0x8e   : > { %s6245_s10 = sld [smem:[#allocation8_spill]] (!%p4635_p3)  ;;  %s6246_s16 = sld [smem:[#allocation45_spill]] (!%p4635_p3)  ;;  %vm1397_vm0 = vcmask (!%p4635_p3), 261120  }
  0x8f   : > { %1395 = sbr.rel (%p4635_p3) target bundleno = 152 (0x98), region = 140  ;;  %s6248_s5 = sld [smem:[#allocation9_spill]] (!%p4635_p3) }
  0x94   : > { %s6247_s20 = scalar_lea.vmem (!%p4635_p3), %s6245_s10, %s6246_s16 }
  0x95   : > { %v1396_v0 = vld [vmem:[%s6247_s20] sm:$0xff] (!%p4635_p3)  ;;  %s6249_s9 = scalar_lea.vmem (!%p4635_p3), %s6248_s5, %s6246_s16 }
  0x96   : > { %v1399_v1 = vld [vmem:[%s6249_s9] sm:$0xff]  ;;  %1398 = vst.msk [vmem:[#allocation2] sm:$0xff] %vm1397_vm0, %v1396_v0 }
  0x97   : > { %1400 = vst.msk [vmem:[#allocation3] sm:$0xff] %vm1397_vm0, %v1399_v1 }
  0x98 PF: > { %s6250_s1 = sld [smem:[#allocation46_spill]]  ;;  %s6251_s12 = sld [smem:[#allocation47_spill]]  ;;  %vm1429_vm1 = vcmask 261120   ;;  %v5374_v11 = vmov 0.0   ;;  %vm5375_vm2 = vmmov 0   ;;  %vm1677_vm3 = vcmask 64512  }
  0x99   : > { %4830 = vmatprep.subr.bf16.mxu0 %v5374_v11  ;;  %4838 = vmatprep.subr.bf16.mxu1 %v5374_v11  ;;  %s6252_s3 = sld [smem:[#allocation10_spill]]  ;;  %s6253_s0 = sld [smem:[#allocation11_spill]]  ;;  %vm1947_vm4 = vcmask 1043456   ;;  %v1403_v58 = vlaneseq }
  0x9a   : > { %4834 = vmatprep.mubr.msk.bf16.mxu0 %vm5375_vm2, %v5374_v11  ;;  %s6254_s23 = sld [smem:[#allocation48_spill]]  ;;  %4842 = vmatprep.mubr.msk.bf16.mxu1 %vm5375_vm2, %v5374_v11  ;;  %s5376_s2 = smov 104  }
  0x9b   : > { %s5377_s27 = smov 120   ;;  %s5378_s7 = smov 112   ;;  %v5733_v59 = vshrl.u32 %v1403_v58, 7  ;;  %v5735_v60 = vand.u32 127, %v1403_v58 }
  0x9c   : > { %s6257_s10 = sld [smem:[#allocation39_spill]]  ;;  %s6260_s20 = sld [smem:[#allocation49_spill]] }
  0x9d   : > { %s6261_s5 = sld [smem:[#allocation19_spill]]  ;;  %s6262_s9 = sld [smem:[#allocation20_spill]]  ;;  %vm1420_vm15 = vcmp.le.s32.totalorder %v5735_v60, %v5733_v59 }
  0x9e   : > { %v5196_v9 = vld [vmem:[%s6250_s1] sm:$0xff]   ;;  %v5198_v12 = vld [vmem:[%s6250_s1 + $0x8] sm:$0xff]  }
  0x9f   : > { %v1401_v2 = vld [vmem:[#allocation2] sm:$0xff]  ;;  %4831 = vmatpush3.bf16.msra.mxu0 %v5196_v9  ;;  %v5199_v13 = vld [vmem:[%s6251_s12 + $0x8] sm:$0xff]   ;;  %s6255_s18 = scalar_lea.vmem %s6252_s3, %s5581_s22  ;;  %s6256_s4 = scalar_lea.vmem %s6253_s0, %s5581_s22 }
  0xa0   : > { %v1430_v3 = vsel %vm1429_vm1, %v1401_v2, 0.0  ;;  %v5197_v10 = vld [vmem:[%s6251_s12] sm:$0xff]   ;;  %4832 = vmatprep.subr.bf16.mxu0 %v5374_v11  ;;  %v5201_v25 = vld [vmem:[%s6254_s23 + $0x8] sm:$0xff]   ;;  %s6269_s3 = sld [smem:[#allocation12_spill]]  ;;  %s6270_s0 = sld [smem:[#allocation13_spill]] }
  0xa1   : > { %1431 = vadd.xlane.f32.xlu0 %v1430_v3  ;;  %4839 = vmatpush3.bf16.msra.mxu1 %v5197_v10  ;;  %v4639_v18 = vld [vmem:[%s6255_s18] ss:$0 sm:$0xff] }
  0xa2   : > { %4840 = vmatprep.subr.bf16.mxu1 %v5374_v11  ;;  %v4640_v20 = vld [vmem:[%s6256_s4] ss:$0 sm:$0xff]  ;;  %s1407_s16 = sld [smem:[#allocation5 + %s6257_s10]] }
  0xa3   : > { %4833 = vmatpush3.bf16.msra.mxu0 %v5198_v12  ;;  %v5200_v23 = vld [vmem:[%s6254_s23] sm:$0xff]   ;;  %s6263_s1 = scalar_lea.vmem %s6261_s5, %s5581_s22  ;;  %s6264_s12 = scalar_lea.vmem %s6262_s9, %s5581_s22 }
  0xa4   : > { %4846 = vmatprep.subr.bf16.mxu0 %v5374_v11  ;;  %s6274_s4 = sld [smem:[#allocation21_spill]] }
  0xa5   : > { %4841 = vmatpush3.bf16.msra.mxu1 %v5199_v13 }
  0xa6   : > { %4854 = vmatprep.subr.bf16.mxu1 %v5374_v11  ;;  %s6271_s23 = scalar_lea.vmem %s6269_s3, %s5581_s22  ;;  %s6272_s18 = scalar_lea.vmem %s6270_s0, %s5581_s22 }
  0xa8   : > { %v1409_v61 = vstv %s1407_s16 }
  0xa9   : > { %vm1410_vm5 = vcmp.lt.s32.totalorder %v5733_v59, %v1409_v61  ;;  %vm5739_vm6 = vcmp.lt.s32.totalorder %v5735_v60, %v1409_v61 }
  0xaa   : > { %vm1412_vm7 = vmand %vm1410_vm5, %vm5739_vm6 }
  0xab   : > { %v5746_v63 = vsel %vm1412_vm7, 1.0, %v5374_v11 }
  0xac   : > { %v1866_v0 = vsub.f32 1.0, %v5746_v63 }
  0xae   : > { %v1867_v1 = vmul.f32 -1e+30, %v1866_v0 }
 0x12e   : > { %v1432_v4 = vpop.xlane.xlu0 %1431 }
 0x12f   : > { %v1434_v5 = vmul.f32 0.03125, %v1432_v4 }
 0x131   : > { %v1435_v6 = vsub.f32 %v1401_v2, %v1434_v5 }
 0x133   : > { %v1436_v7 = vmul.f32 %v1435_v6, %v1435_v6 }
 0x135   : > { %v1437_v8 = vsel %vm1429_vm1, %v1436_v7, 0.0 }
 0x136   : > { %1438 = vadd.xlane.f32.xlu0 %v1437_v8 }
 0x1c3   : > { %v1439_v14 = vpop.xlane.xlu0 %1438 }
 0x1c4   : > { %v1440_v15 = vmul.f32 0.03125, %v1439_v14 }
 0x1c6   : > { %v1441_v16 = vadd.f32 1e-05, %v1440_v15 }
 0x1c8   : > { %5214 = vrsqrt.f32 %v1441_v16 }
 0x1d2   : > { %v5215_v17 = vpop.eup %5214 }
 0x1d3   : > { %v1443_v19 = vmul.f32 %v5215_v17, %v1435_v6 }
 0x1d5   : > { %v1450_v21 = vmul.f32 %v4639_v18, %v1443_v19 }
 0x1d7   : > { %v1457_v22 = vadd.f32 %v4640_v20, %v1450_v21 }
 0x1d9   : > { %v1475_v24 = vpack.c.bf16 %v1457_v22, %v1457_v22 }
 0x1db   : > { %4835 = vmatmul.mubr.msk.bf16.vlgmr.msra.gmra.mrb[0].mxu0 %vm1429_vm1, %v1475_v24  ;;  %4843 = vmatmul.mubr.msk.bf16.vlgmr.msra.gmra.mrb[0].mxu1 %vm1429_vm1, %v1475_v24 }
 0x1dc   : > { %4847 = vmatpush3.bf16.msra.mxu0 %v5200_v23  ;;  %4850 = vmatprep.mubr.msk.bf16.mxu0 %vm5375_vm2, %v5374_v11 }
 0x1dd   : > { %4848 = vmatprep.subr.bf16.mxu0 %v5374_v11  ;;  %4856 = vmatprep.mubr.msk.bf16.mxu1 %vm5375_vm2, %v5374_v11 }
 0x1e0   : > { %4849 = vmatpush3.bf16.msra.mxu0 %v5201_v25 }
 0x1e1   : > { %4860 = vmatprep.subr.bf16.mxu0 %v5374_v11 }
 0x1e3   : > { %4851 = vmatmul.mubr.msk.bf16.vlgmr.msra.gmra.mrb[4].mxu0 %vm1429_vm1, %v1475_v24 }
 0x1e4   : > { %4862 = vmatprep.mubr.msk.bf16.mxu0 %vm5375_vm2, %v5374_v11 }
 0x2ae   : > { %v1525_v26 = vpop.f32.mrb[0].mxu0  ;;  %v1577_v27 = vpop.f32.mrb[0].mxu1 }
 0x2af   : > { %1656 = vrot.lane.b32.xlu0 %v1577_v27, %s5376_s2  ;;  %1650 = vrot.lane.b32.xlu1 %v1577_v27, %s5377_s27  ;;  %v4836_v28 = vpop.f32.mrb[1].mxu0  ;;  %v4844_v29 = vpop.f32.mrb[1].mxu1  ;;  %v1659_v30 = vpack.c.bf16 %v1577_v27, %v1577_v27  ;;  %v1645_v37 = vpack.c.bf16 %v1525_v26, %v1525_v26 }
 0x2b0   : > { %v1528_v31 = vpop.f32.mrb[2].mxu0  ;;  %v1580_v32 = vpop.f32.mrb[2].mxu1 }
 0x2b1   : > { %v4837_v33 = vpop.f32.mrb[3].mxu0  ;;  %v4845_v34 = vpop.f32.mrb[3].mxu1  ;;  %v1682_v35 = vsel %vm1677_vm3, %v1659_v30, 0 }
 0x2b2   : > { %4855 = vmatpush3.bf16.xpose.msra.mxu1 %v1682_v35 }
 0x2b3   : > { %1636 = vrot.lane.b32.xlu1 %v1525_v26, %s5377_s27  ;;  %4866 = vmatprep.subr.bf16.mxu1 %v5374_v11 }
 0x2b6   : > { %v5705_v36 = vpop.f32.mrb[4].mxu0 }
 0x2b7   : > { %1642 = vrot.lane.b32.xlu1 %v1525_v26, %s5376_s2  ;;  %v4852_v38 = vpop.f32.mrb[5].mxu0  ;;  %v1673_v55 = vpack.c.bf16 %v5705_v36, %v5705_v36 }
 0x2b8   : > { %v1632_v39 = vpop.f32.mrb[6].mxu0 }
 0x2b9   : > { %v4853_v40 = vpop.f32.mrb[7].mxu0  ;;  %4857 = vmatmul.mubr.msk.bf16.vlgmr.msra.gmra.mrb[4].mxu1 %vm1677_vm3, %v1645_v37  ;;  %v1949_v57 = vsel %vm1947_vm4, %v1673_v55, 0 }
 0x2ba   : > { %4868 = vmatprep.mubr.msk.bf16.mxu1 %vm5375_vm2, %v5374_v11 }
 0x2bb   : > { %1653 = vrot.lane.b32.xlu1 %v1577_v27, %s5378_s7 }
 0x2bf   : > { %1639 = vrot.lane.b32.xlu1 %v1525_v26, %s5378_s7 }
 0x321   : > { %v1651_v41 = vpop.permute.xlu1 %1650  ;;  %v1657_v44 = vpop.permute.xlu0 %1656 }
 0x322   : > { %v1660_v42 = vpack.c.bf16 %v1651_v41, %v1651_v41  ;;  %v1662_v46 = vpack.c.bf16 %v1657_v44, %v1657_v44 }
 0x324   : > { %v1728_v43 = vsel %vm1677_vm3, %v1660_v42, 0  ;;  %v1820_v49 = vsel %vm1677_vm3, %v1662_v46, 0 }
 0x325   : > { %4861 = vmatpush3.bf16.xpose.msra.mxu0 %v1728_v43  ;;  %v1637_v45 = vpop.permute.xlu1 %1636 }
 0x326   : > { %4872 = vmatprep.subr.bf16.mxu0 %v5374_v11  ;;  %v1646_v48 = vpack.c.bf16 %v1637_v45, %v1637_v45 }
 0x329   : > { %v1643_v47 = vpop.permute.xlu1 %1642 }
 0x32a   : > { %v1648_v53 = vpack.c.bf16 %v1643_v47, %v1643_v47 }
 0x32c   : > { %4863 = vmatmul.mubr.msk.bf16.vlgmr.msra.gmra.mrb[8].mxu0 %vm1677_vm3, %v1646_v48 }
 0x32d   : > { %4873 = vmatpush3.bf16.xpose.msra.mxu0 %v1820_v49  ;;  %v1654_v50 = vpop.permute.xlu1 %1653  ;;  %4874 = vmatprep.mubr.msk.bf16.mxu0 %vm5375_vm2, %v5374_v11 }
 0x32e   : > { %v1661_v51 = vpack.c.bf16 %v1654_v50, %v1654_v50  ;;  %4884 = vmatprep.subr.bf16.mxu0 %v5374_v11 }
 0x330   : > { %v1774_v52 = vsel %vm1677_vm3, %v1661_v51, 0 }
 0x331   : > { %4867 = vmatpush3.bf16.xpose.msra.mxu1 %v1774_v52  ;;  %v1640_v54 = vpop.permute.xlu1 %1639 }
 0x332   : > { %4878 = vmatprep.subr.bf16.mxu1 %v5374_v11  ;;  %v1647_v56 = vpack.c.bf16 %v1640_v54, %v1640_v54 }
 0x334   : > { %4875 = vmatmul.mubr.msk.bf16.vlgmr.msra.gmra.mrb[12].mxu0 %vm1677_vm3, %v1648_v53 }
 0x335   : > { %4886 = vmatprep.mubr.msk.bf16.mxu0 %vm5375_vm2, %v5374_v11 }
 0x338   : > { %4869 = vmatmul.mubr.msk.bf16.vlgmr.msra.gmra.mrb[8].mxu1 %vm1677_vm3, %v1647_v56 }
 0x339   : > { %4879 = vmatpush3.bf16.msra.mxu1 %v1949_v57  ;;  %4880 = vmatprep.mubr.msk.bf16.mxu1 %vm5375_vm2, %v5374_v11 }
 0x33a   : > { %4890 = vmatprep.subr.bf16.mxu1 %v5374_v11 }
 0x38c   : > { %v1718_v2 = vpop.f32.mrb[4].mxu1 }
 0x38d   : > { %v1862_v3 = vmul.f32 %v5746_v63, %v1718_v2  ;;  %v4858_v4 = vpop.f32.mrb[5].mxu1 }
 0x38e   : > { %v1721_v5 = vpop.f32.mrb[6].mxu1 }
 0x38f   : > { %v4859_v6 = vpop.f32.mrb[7].mxu1  ;;  %v1868_v7 = vadd.f32 %v1867_v1, %v1862_v3 }
 0x391   : > { %v1872_v8 = vsel %vm1677_vm3, %v1868_v7, -inf }
 0x392   : > { %1873 = vmax.xlane.f32.xlu1 %v1872_v8 }
 0x3ff   : > { %v1764_v9 = vpop.f32.mrb[8].mxu0 }
 0x400   : > { %v1863_v10 = vmul.f32 %v5746_v63, %v1764_v9  ;;  %v4864_v12 = vpop.f32.mrb[9].mxu0 }
 0x401   : > { %v1767_v13 = vpop.f32.mrb[10].mxu0 }
 0x402   : > { %v4865_v14 = vpop.f32.mrb[11].mxu0  ;;  %v1869_v15 = vadd.f32 %v1867_v1, %v1863_v10 }
 0x404   : > { %v1875_v16 = vsel %vm1677_vm3, %v1869_v15, -inf }
 0x405   : > { %1876 = vmax.xlane.f32.xlu0 %v1875_v16 }
 0x407   : > { %v1856_v17 = vpop.f32.mrb[12].mxu0 }
 0x408   : > { %v1865_v18 = vmul.f32 %v5746_v63, %v1856_v17  ;;  %v4876_v19 = vpop.f32.mrb[13].mxu0 }
 0x409   : > { %v1859_v20 = vpop.f32.mrb[14].mxu0 }
 0x40a   : > { %v4877_v21 = vpop.f32.mrb[15].mxu0  ;;  %v1871_v22 = vadd.f32 %v1867_v1, %v1865_v18 }
 0x40b   : > { %v1810_v23 = vpop.f32.mrb[8].mxu1 }
 0x40c   : > { %v1864_v24 = vmul.f32 %v5746_v63, %v1810_v23  ;;  %v4870_v25 = vpop.f32.mrb[9].mxu1  ;;  %v1881_v26 = vsel %vm1677_vm3, %v1871_v22, -inf  ;;  %v1470_v23 = vld [vmem:[%s6260_s20] sm:$0xf] }
 0x40d   : > { %v1813_v27 = vpop.f32.mrb[10].mxu1  ;;  %1882 = vmax.xlane.f32.xlu1 %v1881_v26 }
 0x40e   : > { %v4871_v28 = vpop.f32.mrb[11].mxu1  ;;  %v1870_v29 = vadd.f32 %v1867_v1, %v1864_v24  ;;  %v5774_v1 = vld [vmem:[#allocation3] sm:$0xff] }
 0x40f   : > { %v2360_v2 = vsel %vm1429_vm1, %v5774_v1, 0.0  ;;  %v2181_v28 = vsel %vm1947_vm4, %v1470_v23, 0 }
 0x410   : > { %v1878_v30 = vsel %vm1677_vm3, %v1870_v29, -inf }
 0x411   : > { %1879 = vmax.xlane.f32.xlu1 %v1878_v30 }
 0x41f   : > { %v1874_v31 = vpop.xlane.xlu1 %1873 }
 0x420   : > { %v1884_v32 = vsub.f32 %v1868_v7, %v1874_v31 }
 0x422   : > { %v1888_v33 = vmul.f32 1.442695, %v1884_v32 }
 0x424   : > { %5216 = vpow2.f32 %v1888_v33 }
 0x42e   : > { %v5217_v34 = vpop.eup %5216 }
 0x42f   : > { %v1896_v35 = vmul.f32 %v5217_v34, %v5746_v63 }
 0x431   : > { %v1900_v37 = vsel %vm1677_vm3, %v1896_v35, 0.0 }
 0x432   : > { %1901 = vadd.xlane.f32.xlu0 %v1900_v37 }
 0x492   : > { %v1877_v38 = vpop.xlane.xlu0 %1876 }
 0x493   : > { %v1885_v39 = vsub.f32 %v1869_v15, %v1877_v38  ;;  %v1471_v38 = vld [vmem:[%s6260_s20 + $0x4] sm:$0xf] }
 0x495   : > { %v1890_v40 = vmul.f32 1.442695, %v1885_v39  ;;  %v2135_v39 = vsel %vm1947_vm4, %v1471_v38, 0 }
 0x497   : > { %5218 = vpow2.f32 %v1890_v40  ;;  %v1473_v40 = vld [vmem:[%s6260_s20 + $0xc] sm:$0xf] }
 0x49a   : > { %v1883_v41 = vpop.xlane.xlu1 %1882 }
 0x49b   : > { %v1887_v42 = vsub.f32 %v1871_v22, %v1883_v41 }
 0x49d   : > { %v1894_v43 = vmul.f32 1.442695, %v1887_v42 }
 0x49e   : > { %v1880_v44 = vpop.xlane.xlu1 %1879 }
 0x49f   : > { %5220 = vpow2.f32 %v1894_v43  ;;  %v1886_v45 = vsub.f32 %v1870_v29, %v1880_v44  ;;  %v2276_v44 = vsel %vm1947_vm4, %v1473_v40, 0 }
 0x4a1   : > { %v5219_v46 = vpop.eup %5218  ;;  %v1892_v47 = vmul.f32 1.442695, %v1886_v45 }
 0x4a2   : > { %v1897_v48 = vmul.f32 %v5219_v46, %v5746_v63 }
 0x4a3   : > { %5222 = vpow2.f32 %v1892_v47 }
 0x4a4   : > { %v1903_v49 = vsel %vm1677_vm3, %v1897_v48, 0.0 }
 0x4a5   : > { %1904 = vadd.xlane.f32.xlu1 %v1903_v49 }
 0x4a9   : > { %v5221_v50 = vpop.eup %5220 }
 0x4aa   : > { %v1899_v51 = vmul.f32 %v5221_v50, %v5746_v63  ;;  %v1472_v50 = vld [vmem:[%s6260_s20 + $0x8] sm:$0xf] }
 0x4ac   : > { %v1909_v52 = vsel %vm1677_vm3, %v1899_v51, 0.0 }
 0x4ad   : > { %v5223_v53 = vpop.eup %5222  ;;  %1910 = vadd.xlane.f32.xlu0 %v1909_v52 }
 0x4ae   : > { %v1898_v54 = vmul.f32 %v5223_v53, %v5746_v63 }
 0x4b0   : > { %v1906_v55 = vsel %vm1677_vm3, %v1898_v54, 0.0 }
 0x4b1   : > { %1907 = vadd.xlane.f32.xlu1 %v1906_v55 }
 0x4bf   : > { %v1902_v56 = vpop.xlane.xlu0 %1901 }
 0x4c0   : > { %v1912_v57 = vmax.f32 %v1902_v56, 1e-30  ;;  %vm1920_vm8 = vcmp.gt.f32.partialorder %v1902_v56, 0.0 }
 0x4c2   : > { %5224 = vrcp.f32 %v1912_v57  ;;  %1670 = vrot.lane.b32.xlu1 %v5705_v36, %s5376_s2 }
 0x4c3   : > { %1664 = vrot.lane.b32.xlu0 %v5705_v36, %s5377_s27 }
 0x4c6   : > { %1667 = vrot.lane.b32.xlu1 %v5705_v36, %s5378_s7 }
 0x4cc   : > { %v5225_v58 = vpop.eup %5224 }
 0x4cd   : > { %v1924_v61 = vmul.f32 %v5225_v58, %v1896_v35 }
 0x4cf   : > { %v1936_v0 = vsel %vm1920_vm8, %v1924_v61, 0.0  ;;  %v4665_v61 = vld [vmem:[%s6263_s1] ss:$0 sm:$0xff] }
 0x4d0   : > { %v1940_v63 = vpack.c.bf16 %v1936_v0, %v1936_v0 }
 0x4d2   : > { %4881 = vmatmul.mubr.msk.bf16.vlgmr.msra.gmra.mrb[12].mxu1 %vm1677_vm3, %v1940_v63  ;;  %v5202_v63 = vld [vmem:[%s5632_s25] sm:$0xff]  }
 0x4d3   : > { %4892 = vmatprep.mubr.msk.bf16.mxu1 %vm5375_vm2, %v5374_v11 }
 0x4e2   : > { %2361 = vadd.xlane.f32.xlu0 %v2360_v2 }
 0x532   : > { %v1905_v3 = vpop.xlane.xlu1 %1904 }
 0x533   : > { %v1913_v4 = vmax.f32 %v1905_v3, 1e-30  ;;  %vm1921_vm9 = vcmp.gt.f32.partialorder %v1905_v3, 0.0 }
 0x535   : > { %5226 = vrcp.f32 %v1913_v4 }
 0x53a   : > { %v1911_v36 = vpop.xlane.xlu0 %1910 }
 0x53b   : > { %v1915_v5 = vmax.f32 %v1911_v36, 1e-30  ;;  %vm1923_vm10 = vcmp.gt.f32.partialorder %v1911_v36, 0.0 }
 0x53d   : > { %5228 = vrcp.f32 %v1915_v5  ;;  %v4666_v5 = vld [vmem:[%s6264_s12] ss:$0 sm:$0xff] }
 0x53e   : > { %v1665_v6 = vpop.permute.xlu0 %1664  ;;  %v1908_v7 = vpop.xlane.xlu1 %1907 }
 0x53f   : > { %v5227_v8 = vpop.eup %5226  ;;  %v1674_v9 = vpack.c.bf16 %v1665_v6, %v1665_v6  ;;  %v1914_v10 = vmax.f32 %v1908_v7, 1e-30  ;;  %vm1922_vm11 = vcmp.gt.f32.partialorder %v1908_v7, 0.0 }
 0x540   : > { %v1925_v12 = vmul.f32 %v5227_v8, %v1897_v48  ;;  %v5203_v8 = vld [vmem:[%s5629_s21] sm:$0xff]  }
 0x541   : > { %v1995_v13 = vsel %vm1947_vm4, %v1674_v9, 0  ;;  %5230 = vrcp.f32 %v1914_v10  ;;  %v5204_v9 = vld [vmem:[%s5632_s25 + $0x8] sm:$0xff]   ;;  %s6267_s25 = sld [smem:[#allocation18_spill]] }
 0x542   : > { %v1937_v14 = vsel %vm1921_vm9, %v1925_v12, 0.0  ;;  %4885 = vmatpush3.bf16.msra.mxu0 %v1995_v13  ;;  %v1671_v15 = vpop.permute.xlu1 %1670 }
 0x543   : > { %v1941_v16 = vpack.c.bf16 %v1937_v14, %v1937_v14  ;;  %v1676_v17 = vpack.c.bf16 %v1671_v15, %v1671_v15  ;;  %4896 = vmatprep.subr.bf16.mxu0 %v5374_v11 }
 0x545   : > { %v2087_v18 = vsel %vm1947_vm4, %v1676_v17, 0  ;;  %4887 = vmatmul.mubr.msk.bf16.vlgmr.msra.gmra.mrb[16].mxu0 %vm1677_vm3, %v1941_v16  ;;  %v5205_v16 = vld [vmem:[%s5629_s21 + $0x8] sm:$0xff]   ;;  %s1408_s21 = sld [smem:[#allocation6 + %s6257_s10]] }
 0x546   : > { %4897 = vmatpush3.bf16.msra.mxu0 %v2087_v18  ;;  %v1668_v19 = vpop.permute.xlu1 %1667  ;;  %4898 = vmatprep.mubr.msk.bf16.mxu0 %vm5375_vm2, %v5374_v11  ;;  %v5206_v18 = vld [vmem:[%s5635_s30] sm:$0xff]  }
 0x547   : > { %v5229_v20 = vpop.eup %5228  ;;  %v1675_v21 = vpack.c.bf16 %v1668_v19, %v1668_v19  ;;  %4908 = vmatprep.subr.bf16.mxu0 %v5374_v11  ;;  %v5207_v19 = vld [vmem:[%s5635_s30 + $0x8] sm:$0xff]   ;;  %s6268_s30 = scalar_lea.vmem %s6267_s25, %s5581_s22 }
 0x548   : > { %v1927_v22 = vmul.f32 %v5229_v20, %v1899_v51 }
 0x549   : > { %v2041_v24 = vsel %vm1947_vm4, %v1675_v21, 0 }
 0x54a   : > { %v1939_v25 = vsel %vm1923_vm10, %v1927_v22, 0.0  ;;  %4891 = vmatpush3.bf16.msra.mxu1 %v2041_v24 }
 0x54b   : > { %v5231_v26 = vpop.eup %5230  ;;  %v1943_v27 = vpack.c.bf16 %v1939_v25, %v1939_v25  ;;  %4902 = vmatprep.subr.bf16.mxu1 %v5374_v11 }
 0x54c   : > { %v1926_v29 = vmul.f32 %v5231_v26, %v1898_v54  ;;  %v2228_v54 = vsel %vm1947_vm4, %v1472_v50, 0 }
 0x54d   : > { %4899 = vmatmul.mubr.msk.bf16.vlgmr.msra.gmra.mrb[20].mxu0 %vm1677_vm3, %v1943_v27 }
 0x54e   : > { %v1938_v30 = vsel %vm1922_vm11, %v1926_v29, 0.0  ;;  %4909 = vmatpush3.bf16.msra.mxu0 %v2181_v28  ;;  %4910 = vmatprep.mubr.msk.bf16.mxu0 %vm5375_vm2, %v5374_v11 }
 0x54f   : > { %v1942_v31 = vpack.c.bf16 %v1938_v30, %v1938_v30  ;;  %4920 = vmatprep.subr.bf16.mxu0 %v5374_v11 }
 0x551   : > { %4893 = vmatmul.mubr.msk.bf16.vlgmr.msra.gmra.mrb[16].mxu1 %vm1677_vm3, %v1942_v31 }
 0x552   : > { %4904 = vmatprep.mubr.msk.bf16.mxu1 %vm5375_vm2, %v5374_v11  ;;  %4903 = vmatpush3.bf16.msra.mxu1 %v2135_v39 }
 0x553   : > { %4914 = vmatprep.subr.bf16.mxu1 %v5374_v11 }
 0x56f   : > { %v2362_v32 = vpop.xlane.xlu0 %2361 }
 0x570   : > { %v2363_v33 = vmul.f32 0.03125, %v2362_v32 }
 0x572   : > { %v2364_v34 = vsub.f32 %v5774_v1, %v2363_v33 }
 0x574   : > { %v2365_v35 = vmul.f32 %v2364_v34, %v2364_v34 }
 0x576   : > { %v2366_v37 = vsel %vm1429_vm1, %v2365_v35, 0.0 }
 0x577   : > { %2367 = vadd.xlane.f32.xlu1 %v2366_v37 }
 0x5a5   : > { %v1985_v41 = vpop.f32.mrb[12].mxu1 }
 0x5a6   : > { %v2129_v42 = vpack.c.bf16 %v1985_v41, %v1985_v41  ;;  %v4882_v43 = vpop.f32.mrb[13].mxu1 }
 0x5a7   : > { %v1988_v45 = vpop.f32.mrb[14].mxu1 }
 0x5a8   : > { %v4883_v46 = vpop.f32.mrb[15].mxu1  ;;  %4911 = vmatmul.mubr.msk.bf16.vlgmr.msra.gmra.mrb[24].mxu0 %vm1677_vm3, %v2129_v42 }
 0x5a9   : > { %4921 = vmatpush3.bf16.msra.mxu0 %v2276_v44  ;;  %4922 = vmatprep.mubr.msk.bf16.mxu0 %vm5375_vm2, %v5374_v11 }
 0x5aa   : > { %4934 = vmatprep.subr.bf16.mxu0 %v5374_v11 }
 0x604   : > { %v2368_v47 = vpop.xlane.xlu1 %2367 }
 0x605   : > { %v2369_v48 = vmul.f32 0.03125, %v2368_v47 }
 0x607   : > { %v2370_v49 = vadd.f32 1e-05, %v2369_v48 }
 0x609   : > { %5232 = vrsqrt.f32 %v2370_v49 }
 0x613   : > { %v5233_v55 = vpop.eup %5232 }
 0x614   : > { %v2372_v58 = vmul.f32 %v5233_v55, %v2364_v34 }
 0x616   : > { %v2379_v4 = vmul.f32 %v4665_v61, %v2372_v58 }
 0x618   : > { %v2031_v51 = vpop.f32.mrb[16].mxu0  ;;  %v2386_v13 = vadd.f32 %v4666_v5, %v2379_v4 }
 0x619   : > { %v2130_v52 = vpack.c.bf16 %v2031_v51, %v2031_v51  ;;  %v4888_v53 = vpop.f32.mrb[17].mxu0 }
 0x61a   : > { %v2034_v56 = vpop.f32.mrb[18].mxu0  ;;  %v2404_v17 = vpack.c.bf16 %v2386_v13, %v2386_v13 }
 0x61b   : > { %v4889_v57 = vpop.f32.mrb[19].mxu0  ;;  %4905 = vmatmul.mubr.msk.bf16.vlgmr.msra.gmra.mrb[20].mxu1 %vm1677_vm3, %v2130_v52 }
 0x61c   : > { %4915 = vmatpush3.bf16.msra.mxu1 %v2228_v54  ;;  %4916 = vmatprep.mubr.msk.bf16.mxu1 %vm5375_vm2, %v5374_v11 }
 0x61d   : > { %4926 = vmatprep.subr.bf16.mxu1 %v5374_v11 }
 0x620   : > { %v2123_v0 = vpop.f32.mrb[20].mxu0 }
 0x621   : > { %v2271_v2 = vpack.c.bf16 %v2123_v0, %v2123_v0  ;;  %v4900_v3 = vpop.f32.mrb[21].mxu0 }
 0x622   : > { %v2126_v36 = vpop.f32.mrb[22].mxu0 }
 0x623   : > { %v4901_v6 = vpop.f32.mrb[23].mxu0  ;;  %4923 = vmatmul.mubr.msk.bf16.vlgmr.msra.gmra.mrb[28].mxu0 %vm1677_vm3, %v2271_v2 }
 0x624   : > { %v2077_v7 = vpop.f32.mrb[16].mxu1  ;;  %4935 = vmatpush3.bf16.msra.mxu0 %v5202_v63  ;;  %4938 = vmatprep.mubr.msk.bf16.mxu0 %vm5375_vm2, %v5374_v11 }
 0x625   : > { %v2223_v10 = vpack.c.bf16 %v2077_v7, %v2077_v7  ;;  %v4894_v12 = vpop.f32.mrb[17].mxu1  ;;  %4936 = vmatprep.subr.bf16.mxu0 %v5374_v11 }
 0x626   : > { %v2080_v14 = vpop.f32.mrb[18].mxu1  ;;  %v1415_v12 = vstv %s1408_s21 }
 0x627   : > { %v4895_v15 = vpop.f32.mrb[19].mxu1  ;;  %4917 = vmatmul.mubr.msk.bf16.vlgmr.msra.gmra.mrb[24].mxu1 %vm1677_vm3, %v2223_v10  ;;  %vm5882_vm12 = vcmp.lt.s32.totalorder %v5733_v59, %v1415_v12  ;;  %vm1417_vm13 = vcmp.lt.s32.totalorder %v5735_v60, %v1415_v12 }
 0x628   : > { %4927 = vmatpush3.bf16.msra.mxu1 %v5203_v8  ;;  %4937 = vmatpush3.bf16.msra.mxu0 %v5204_v9  ;;  %vm1418_vm14 = vmand %vm5882_vm12, %vm1417_vm13 }
 0x629   : > { %4928 = vmatprep.subr.bf16.mxu1 %v5374_v11  ;;  %4930 = vmatprep.mubr.msk.bf16.mxu1 %vm5375_vm2, %v5374_v11  ;;  %vm1421_vm0 = vmand %vm1418_vm14, %vm1420_vm15 }
 0x62a   : > { %4950 = vmatprep.subr.bf16.mxu0 %v5374_v11  ;;  %v5895_v14 = vsel %vm1421_vm0, 1.0, %v5374_v11  ;;  %vm1419_vm10 = vmand %vm5882_vm12, %vm5739_vm6 }
 0x62b   : > { %4939 = vmatmul.mubr.msk.bf16.vlgmr.msra.gmra.mrb[32].mxu0 %vm1429_vm1, %v2404_v17  ;;  %v2794_v15 = vsub.f32 1.0, %v5895_v14  ;;  %vm1422_vm11 = vmand %vm1419_vm10, %vm1420_vm15 }
 0x62c   : > { %4929 = vmatpush3.bf16.msra.mxu1 %v5205_v16  ;;  %4952 = vmatprep.mubr.msk.bf16.mxu0 %vm5375_vm2, %v5374_v11 }
 0x62d   : > { %4942 = vmatprep.subr.bf16.mxu1 %v5374_v11  ;;  %v2795_v16 = vmul.f32 -1e+30, %v2794_v15 }
 0x62f   : > { %4931 = vmatmul.mubr.msk.bf16.vlgmr.msra.gmra.mrb[28].mxu1 %vm1429_vm1, %v2404_v17 }
 0x630   : > { %4943 = vmatpush3.bf16.msra.mxu1 %v5206_v18  ;;  %4946 = vmatprep.mubr.msk.bf16.mxu1 %vm5375_vm2, %v5374_v11 }
 0x631   : > { %4944 = vmatprep.subr.bf16.mxu1 %v5374_v11 }
 0x634   : > { %4945 = vmatpush3.bf16.msra.mxu1 %v5207_v19 }
 0x635   : > { %4956 = vmatprep.subr.bf16.mxu1 %v5374_v11 }
 0x637   : > { %4947 = vmatmul.mubr.msk.bf16.vlgmr.msra.gmra.mrb[32].mxu1 %vm1429_vm1, %v2404_v17 }
 0x638   : > { %4958 = vmatprep.mubr.msk.bf16.mxu1 %vm5375_vm2, %v5374_v11 }
 0x67b   : > { %v2217_v20 = vpop.f32.mrb[24].mxu0 }
 0x67c   : > { %v4912_v21 = vpop.f32.mrb[25].mxu0 }
 0x67d   : > { %v2220_v22 = vpop.f32.mrb[26].mxu0 }
 0x67e   : > { %v4913_v23 = vpop.f32.mrb[27].mxu0 }
 0x6ee   : > { %v2171_v24 = vpop.f32.mrb[20].mxu1 }
 0x6ef   : > { %v2218_v25 = vadd.f32 %v2217_v20, %v2171_v24  ;;  %v4906_v26 = vpop.f32.mrb[21].mxu1 }
 0x6f0   : > { %v2174_v27 = vpop.f32.mrb[22].mxu1 }
 0x6f1   : > { %v4907_v28 = vpop.f32.mrb[23].mxu1 }
 0x6f6   : > { %v2312_v29 = vpop.f32.mrb[28].mxu0 }
 0x6f7   : > { %v4924_v30 = vpop.f32.mrb[29].mxu0 }
 0x6f8   : > { %v2315_v31 = vpop.f32.mrb[30].mxu0 }
 0x6f9   : > { %v4925_v32 = vpop.f32.mrb[31].mxu0 }
 0x6fa   : > { %v2264_v33 = vpop.f32.mrb[24].mxu1 }
 0x6fb   : > { %v2270_v34 = vadd.f32 %v2264_v33, %v2218_v25  ;;  %v4918_v35 = vpop.f32.mrb[25].mxu1 }
 0x6fc   : > { %v2267_v37 = vpop.f32.mrb[26].mxu1 }
 0x6fd   : > { %v5846_v38 = vadd.f32 %v2312_v29, %v2270_v34  ;;  %v4919_v39 = vpop.f32.mrb[27].mxu1 }
 0x6fe   : > { %v2506_v40 = vpop.f32.mrb[32].mxu0 }
 0x6ff   : > { %2579 = vrot.lane.b32.xlu0 %v2506_v40, %s5377_s27  ;;  %v4940_v41 = vpop.f32.mrb[33].mxu0  ;;  %v2588_v42 = vpack.c.bf16 %v2506_v40, %v2506_v40 }
 0x700   : > { %v2509_v43 = vpop.f32.mrb[34].mxu0 }
 0x701   : > { %v4941_v44 = vpop.f32.mrb[35].mxu0  ;;  %v2610_v45 = vsel %vm1677_vm3, %v2588_v42, 0 }
 0x702   : > { %v2454_v46 = vpop.f32.mrb[28].mxu1  ;;  %4951 = vmatpush3.bf16.xpose.msra.mxu0 %v2610_v45 }
 0x703   : > { %2565 = vrot.lane.b32.xlu1 %v2454_v46, %s5377_s27  ;;  %v4932_v47 = vpop.f32.mrb[29].mxu1  ;;  %2582 = vrot.lane.b32.xlu0 %v2506_v40, %s5378_s7  ;;  %v2574_v50 = vpack.c.bf16 %v2454_v46, %v2454_v46 }
 0x704   : > { %v2457_v48 = vpop.f32.mrb[30].mxu1  ;;  %4962 = vmatprep.subr.bf16.mxu0 %v5374_v11 }
 0x705   : > { %v4933_v49 = vpop.f32.mrb[31].mxu1 }
 0x707   : > { %2585 = vrot.lane.b32.xlu1 %v2506_v40, %s5376_s2  ;;  %2568 = vrot.lane.b32.xlu0 %v2454_v46, %s5378_s7 }
 0x709   : > { %4953 = vmatmul.mubr.msk.bf16.vlgmr.msra.gmra.mrb[36].mxu0 %vm1677_vm3, %v2574_v50 }
 0x70a   : > { %v5856_v51 = vpop.f32.mrb[32].mxu1  ;;  %4964 = vmatprep.mubr.msk.bf16.mxu0 %vm5375_vm2, %v5374_v11 }
 0x70b   : > { %v4948_v52 = vpop.f32.mrb[33].mxu1  ;;  %2571 = vrot.lane.b32.xlu1 %v2454_v46, %s5376_s2  ;;  %v2602_v6 = vpack.c.bf16 %v5856_v51, %v5856_v51 }
 0x70c   : > { %v2561_v53 = vpop.f32.mrb[34].mxu1 }
 0x70d   : > { %v4949_v54 = vpop.f32.mrb[35].mxu1  ;;  %v2876_v9 = vsel %vm1947_vm4, %v2602_v6, 0 }
 0x771   : > { %v2580_v55 = vpop.permute.xlu0 %2579 }
 0x772   : > { %v2589_v56 = vpack.c.bf16 %v2580_v55, %v2580_v55 }
 0x774   : > { %v2656_v57 = vsel %vm1677_vm3, %v2589_v56, 0 }
 0x775   : > { %v2566_v58 = vpop.permute.xlu1 %2565  ;;  %4957 = vmatpush3.bf16.xpose.msra.mxu1 %v2656_v57  ;;  %v2583_v61 = vpop.permute.xlu0 %2582 }
 0x776   : > { %v2590_v0 = vpack.c.bf16 %v2583_v61, %v2583_v61  ;;  %4968 = vmatprep.subr.bf16.mxu1 %v5374_v11  ;;  %v2575_v3 = vpack.c.bf16 %v2566_v58, %v2566_v58 }
 0x778   : > { %v2702_v63 = vsel %vm1677_vm3, %v2590_v0, 0 }
 0x779   : > { %v2586_v2 = vpop.permute.xlu1 %2585  ;;  %4963 = vmatpush3.bf16.xpose.msra.mxu0 %v2702_v63  ;;  %v2569_v36 = vpop.permute.xlu0 %2568 }
 0x77a   : > { %v2591_v4 = vpack.c.bf16 %v2586_v2, %v2586_v2  ;;  %4974 = vmatprep.subr.bf16.mxu0 %v5374_v11  ;;  %v2576_v7 = vpack.c.bf16 %v2569_v36, %v2569_v36 }
 0x77c   : > { %v2748_v5 = vsel %vm1677_vm3, %v2591_v4, 0  ;;  %4959 = vmatmul.mubr.msk.bf16.vlgmr.msra.gmra.mrb[36].mxu1 %vm1677_vm3, %v2575_v3 }
 0x77d   : > { %4969 = vmatpush3.bf16.xpose.msra.mxu1 %v2748_v5  ;;  %4970 = vmatprep.mubr.msk.bf16.mxu1 %vm5375_vm2, %v5374_v11  ;;  %v2572_v8 = vpop.permute.xlu1 %2571 }
 0x77e   : > { %4980 = vmatprep.subr.bf16.mxu1 %v5374_v11  ;;  %v2577_v10 = vpack.c.bf16 %v2572_v8, %v2572_v8 }
 0x780   : > { %4965 = vmatmul.mubr.msk.bf16.vlgmr.msra.gmra.mrb[40].mxu0 %vm1677_vm3, %v2576_v7 }
 0x781   : > { %4975 = vmatpush3.bf16.msra.mxu0 %v2876_v9  ;;  %4976 = vmatprep.mubr.msk.bf16.mxu0 %vm5375_vm2, %v5374_v11 }
 0x782   : > { %4986 = vmatprep.subr.bf16.mxu0 %v5374_v11 }
 0x784   : > { %4971 = vmatmul.mubr.msk.bf16.vlgmr.msra.gmra.mrb[40].mxu1 %vm1677_vm3, %v2577_v10 }
 0x785   : > { %4982 = vmatprep.mubr.msk.bf16.mxu1 %vm5375_vm2, %v5374_v11 }
 0x7dc   : > { %v2646_v17 = vpop.f32.mrb[36].mxu0 }
 0x7dd   : > { %v2790_v18 = vmul.f32 %v5895_v14, %v2646_v17  ;;  %v4954_v19 = vpop.f32.mrb[37].mxu0 }
 0x7de   : > { %v2649_v20 = vpop.f32.mrb[38].mxu0  ;;  %v4662_v19 = vld [vmem:[%s6268_s30] ss:$0 sm:$0xff] }
 0x7df   : > { %v4955_v21 = vpop.f32.mrb[39].mxu0  ;;  %v2796_v22 = vadd.f32 %v2795_v16, %v2790_v18 }
 0x7e0   : > { %v2325_v21 = vadd.f32 %v4662_v19, %v5846_v38 }
 0x7e1   : > { %v2800_v23 = vsel %vm1677_vm3, %v2796_v22, -inf }
 0x7e2   : > { %2801 = vmax.xlane.f32.xlu0 %v2800_v23 }
 0x84f   : > { %v2692_v24 = vpop.f32.mrb[36].mxu1 }
 0x850   : > { %v2791_v25 = vmul.f32 %v5895_v14, %v2692_v24  ;;  %v4960_v26 = vpop.f32.mrb[37].mxu1  ;;  %v5274_v24 = vld [vmem:[#allocation2] sm:$0xff] }
 0x851   : > { %v2695_v27 = vpop.f32.mrb[38].mxu1 }
 0x852   : > { %v4961_v28 = vpop.f32.mrb[39].mxu1  ;;  %v2797_v29 = vadd.f32 %v2795_v16, %v2791_v25  ;;  %v5926_v25 = vadd.f32 %v5274_v24, %v2325_v21 }
 0x853   : > { %v2738_v30 = vpop.f32.mrb[40].mxu0 }
 0x854   : > { %v2792_v31 = vmul.f32 %v5895_v14, %v2738_v30  ;;  %v4966_v32 = vpop.f32.mrb[41].mxu0  ;;  %v2803_v33 = vsel %vm1677_vm3, %v2797_v29, -inf }
 0x855   : > { %2804 = vmax.xlane.f32.xlu1 %v2803_v33  ;;  %v2741_v34 = vpop.f32.mrb[42].mxu0 }
 0x856   : > { %v4967_v35 = vpop.f32.mrb[43].mxu0  ;;  %v2798_v37 = vadd.f32 %v2795_v16, %v2792_v31 }
 0x857   : > { %v2784_v39 = vpop.f32.mrb[40].mxu1 }
 0x858   : > { %v2793_v40 = vmul.f32 %v5895_v14, %v2784_v39  ;;  %v4972_v41 = vpop.f32.mrb[41].mxu1  ;;  %v2806_v42 = vsel %vm1677_vm3, %v2798_v37, -inf }
 0x859   : > { %v2787_v43 = vpop.f32.mrb[42].mxu1  ;;  %2807 = vmax.xlane.f32.xlu0 %v2806_v42 }
 0x85a   : > { %v4973_v44 = vpop.f32.mrb[43].mxu1  ;;  %v2799_v45 = vadd.f32 %v2795_v16, %v2793_v40 }
 0x85c   : > { %v2809_v46 = vsel %vm1677_vm3, %v2799_v45, -inf }
 0x85d   : > { %2810 = vmax.xlane.f32.xlu0 %v2809_v46 }
 0x866   : > { %2593 = vrot.lane.b32.xlu1 %v5856_v51, %s5377_s27 }
 0x86f   : > { %v2802_v47 = vpop.xlane.xlu0 %2801 }
 0x870   : > { %v2812_v48 = vsub.f32 %v2796_v22, %v2802_v47 }
 0x872   : > { %v2816_v49 = vmul.f32 1.442695, %v2812_v48 }
 0x874   : > { %5234 = vpow2.f32 %v2816_v49  ;;  %v2399_v49 = vld [vmem:[%s5638_s6] sm:$0xf] }
 0x87e   : > { %v5235_v50 = vpop.eup %5234 }
 0x87f   : > { %v2824_v52 = vmul.f32 %v5235_v50, %v5895_v14 }
 0x881   : > { %v2828_v53 = vsel %vm1677_vm3, %v2824_v52, 0.0 }
 0x88a   : > { %2829 = vadd.xlane.f32.xlu1 %v2828_v53  ;;  %v3108_v53 = vsel %vm1947_vm4, %v2399_v49, 0 }
 0x8e2   : > { %v2805_v54 = vpop.xlane.xlu1 %2804 }
 0x8e3   : > { %v2813_v55 = vsub.f32 %v2797_v29, %v2805_v54 }
 0x8e5   : > { %v2818_v56 = vmul.f32 1.442695, %v2813_v55 }
 0x8e6   : > { %v2594_v57 = vpop.permute.xlu1 %2593  ;;  %v2808_v58 = vpop.xlane.xlu0 %2807 }
 0x8e7   : > { %5236 = vpow2.f32 %v2818_v56  ;;  %v2603_v61 = vpack.c.bf16 %v2594_v57, %v2594_v57  ;;  %v2814_v0 = vsub.f32 %v2798_v37, %v2808_v58 }
 0x8e9   : > { %v2922_v63 = vsel %vm1947_vm4, %v2603_v61, 0  ;;  %v2820_v2 = vmul.f32 1.442695, %v2814_v0  ;;  %v2400_v61 = vld [vmem:[%s5638_s6 + $0x4] sm:$0xf] }
 0x8ea   : > { %4981 = vmatpush3.bf16.msra.mxu1 %v2922_v63  ;;  %v2811_v3 = vpop.xlane.xlu0 %2810  ;;  %v3062_v0 = vsel %vm1947_vm4, %v2400_v61, 0  ;;  %v2402_v63 = vld [vmem:[%s5638_s6 + $0xc] sm:$0xf] }
 0x8eb   : > { %5238 = vpow2.f32 %v2820_v2  ;;  %v2815_v4 = vsub.f32 %v2799_v45, %v2811_v3  ;;  %4992 = vmatprep.subr.bf16.mxu1 %v5374_v11 }
 0x8ed   : > { %v2822_v36 = vmul.f32 1.442695, %v2815_v4 }
 0x8ef   : > { %5240 = vpow2.f32 %v2822_v36  ;;  %v3203_v36 = vsel %vm1947_vm4, %v2402_v63, 0 }
 0x8f1   : > { %v5237_v5 = vpop.eup %5236 }
 0x8f2   : > { %v2825_v6 = vmul.f32 %v5237_v5, %v5895_v14 }
 0x8f4   : > { %v2831_v7 = vsel %vm1677_vm3, %v2825_v6, 0.0 }
 0x8f5   : > { %v5239_v8 = vpop.eup %5238  ;;  %2832 = vadd.xlane.f32.xlu0 %v2831_v7 }
 0x8f6   : > { %v2826_v9 = vmul.f32 %v5239_v8, %v5895_v14 }
 0x8f8   : > { %v2834_v10 = vsel %vm1677_vm3, %v2826_v9, 0.0 }
 0x8f9   : > { %v5241_v12 = vpop.eup %5240  ;;  %2835 = vadd.xlane.f32.xlu1 %v2834_v10 }
 0x8fa   : > { %v2827_v15 = vmul.f32 %v5241_v12, %v5895_v14  ;;  %v4663_v12 = vld [vmem:[%s6271_s23] ss:$0 sm:$0xff] }
 0x8fc   : > { %v2837_v16 = vsel %vm1677_vm3, %v2827_v15, 0.0 }
 0x8fd   : > { %2838 = vadd.xlane.f32.xlu0 %v2837_v16  ;;  %v4664_v16 = vld [vmem:[%s6272_s18] ss:$0 sm:$0xff] }
 0x90a   : > { %2599 = vrot.lane.b32.xlu1 %v5856_v51, %s5376_s2 }
 0x913   : > { %2596 = vrot.lane.b32.xlu0 %v5856_v51, %s5378_s7  ;;  %v2329_v51 = vsel %vm1429_vm1, %v5926_v25, 0.0 }
 0x917   : > { %v2830_v17 = vpop.xlane.xlu1 %2829 }
 0x918   : > { %v2840_v18 = vmax.f32 %v2830_v17, 1e-30  ;;  %vm2848_vm5 = vcmp.gt.f32.partialorder %v2830_v17, 0.0 }
 0x91a   : > { %5242 = vrcp.f32 %v2840_v18 }
 0x924   : > { %v5243_v20 = vpop.eup %5242 }
 0x925   : > { %v2852_v22 = vmul.f32 %v5243_v20, %v2824_v52  ;;  %v2401_v20 = vld [vmem:[%s5638_s6 + $0x8] sm:$0xf] }
 0x926   : > { %v3155_v24 = vsel %vm1947_vm4, %v2401_v20, 0 }
 0x927   : > { %v2864_v14 = vsel %vm2848_vm5, %v2852_v22, 0.0 }
 0x928   : > { %v2868_v23 = vpack.c.bf16 %v2864_v14, %v2864_v14 }
 0x92a   : > { %4977 = vmatmul.mubr.msk.bf16.vlgmr.msra.gmra.mrb[44].mxu0 %vm1677_vm3, %v2868_v23 }
 0x92b   : > { %4988 = vmatprep.mubr.msk.bf16.mxu0 %vm5375_vm2, %v5374_v11 }
 0x92e   : > { %2330 = vadd.xlane.f32.xlu1 %v2329_v51 }
 0x982   : > { %v2833_v26 = vpop.xlane.xlu0 %2832 }
 0x983   : > { %v2841_v27 = vmax.f32 %v2833_v26, 1e-30  ;;  %vm2849_vm7 = vcmp.gt.f32.partialorder %v2833_v26, 0.0 }
 0x985   : > { %5244 = vrcp.f32 %v2841_v27 }
 0x986   : > { %v2836_v38 = vpop.xlane.xlu1 %2835 }
 0x987   : > { %v2842_v28 = vmax.f32 %v2836_v38, 1e-30  ;;  %vm2850_vm8 = vcmp.gt.f32.partialorder %v2836_v38, 0.0 }
 0x989   : > { %5246 = vrcp.f32 %v2842_v28 }
 0x98a   : > { %v2839_v29 = vpop.xlane.xlu0 %2838  ;;  %v2600_v31 = vpop.permute.xlu1 %2599 }
 0x98b   : > { %v2843_v30 = vmax.f32 %v2839_v29, 1e-30  ;;  %v2605_v37 = vpack.c.bf16 %v2600_v31, %v2600_v31  ;;  %vm2851_vm9 = vcmp.gt.f32.partialorder %v2839_v29, 0.0 }
 0x98d   : > { %5248 = vrcp.f32 %v2843_v30  ;;  %v3014_v44 = vsel %vm1947_vm4, %v2605_v37, 0 }
 0x98e   : > { %v2597_v32 = vpop.permute.xlu0 %2596 }
 0x98f   : > { %v5245_v33 = vpop.eup %5244  ;;  %v2604_v34 = vpack.c.bf16 %v2597_v32, %v2597_v32 }
 0x990   : > { %v2853_v35 = vmul.f32 %v5245_v33, %v2825_v6 }
 0x991   : > { %v2968_v39 = vsel %vm1947_vm4, %v2604_v34, 0 }
 0x992   : > { %v2865_v40 = vsel %vm2849_vm7, %v2853_v35, 0.0  ;;  %4987 = vmatpush3.bf16.msra.mxu0 %v2968_v39 }
 0x993   : > { %v5247_v41 = vpop.eup %5246  ;;  %v2869_v42 = vpack.c.bf16 %v2865_v40, %v2865_v40  ;;  %4998 = vmatprep.subr.bf16.mxu0 %v5374_v11 }
 0x994   : > { %v2854_v43 = vmul.f32 %v5247_v41, %v2826_v9 }
 0x995   : > { %4983 = vmatmul.mubr.msk.bf16.vlgmr.msra.gmra.mrb[44].mxu1 %vm1677_vm3, %v2869_v42 }
 0x996   : > { %v2866_v45 = vsel %vm2850_vm8, %v2854_v43, 0.0  ;;  %4993 = vmatpush3.bf16.msra.mxu1 %v3014_v44  ;;  %4994 = vmatprep.mubr.msk.bf16.mxu1 %vm5375_vm2, %v5374_v11 }
 0x997   : > { %v5249_v46 = vpop.eup %5248  ;;  %v2870_v47 = vpack.c.bf16 %v2866_v45, %v2866_v45  ;;  %5004 = vmatprep.subr.bf16.mxu1 %v5374_v11 }
 0x998   : > { %v2855_v48 = vmul.f32 %v5249_v46, %v2827_v15 }
 0x999   : > { %4989 = vmatmul.mubr.msk.bf16.vlgmr.msra.gmra.mrb[48].mxu0 %vm1677_vm3, %v2870_v47  ;;  %v5208_v47 = vld [vmem:[%s5646_s26] sm:$0xff]  }
 0x99a   : > { %v2867_v50 = vsel %vm2851_vm9, %v2855_v48, 0.0  ;;  %5000 = vmatprep.mubr.msk.bf16.mxu0 %vm5375_vm2, %v5374_v11  ;;  %4999 = vmatpush3.bf16.msra.mxu0 %v3062_v0  ;;  %v5209_v48 = vld [vmem:[%s5646_s26 + $0x8] sm:$0xff]   ;;  %v4688_v0 = vld [vmem:[%s1363_s29] ss:$0 sm:$0xff]  ;;  %s6275_s26 = sld [smem:[#allocation22_spill]]  ;;  %s6276_s29 = scalar_lea.vmem %s6274_s4, %s5581_s22 }
 0x99b   : > { %v2871_v52 = vpack.c.bf16 %v2867_v50, %v2867_v50  ;;  %5010 = vmatprep.subr.bf16.mxu0 %v5374_v11 }
 0x99d   : > { %4995 = vmatmul.mubr.msk.bf16.vlgmr.msra.gmra.mrb[48].mxu1 %vm1677_vm3, %v2871_v52 }
 0x99e   : > { %5005 = vmatpush3.bf16.msra.mxu1 %v3108_v53  ;;  %5006 = vmatprep.mubr.msk.bf16.mxu1 %vm5375_vm2, %v5374_v11 }
 0x99f   : > { %5016 = vmatprep.subr.bf16.mxu1 %v5374_v11 }
 0x9a0   : > { %s6277_s10 = scalar_lea.vmem %s6275_s26, %s5581_s22 }
 0x9bb   : > { %v2331_v54 = vpop.xlane.xlu1 %2330 }
 0x9bc   : > { %v2332_v55 = vmul.f32 0.03125, %v2331_v54 }
 0x9be   : > { %v2333_v56 = vsub.f32 %v5926_v25, %v2332_v55 }
 0x9c0   : > { %v2334_v57 = vmul.f32 %v2333_v56, %v2333_v56 }
 0x9c2   : > { %v2335_v58 = vsel %vm1429_vm1, %v2334_v57, 0.0 }
 0x9c3   : > { %2336 = vadd.xlane.f32.xlu0 %v2335_v58 }
 0x9fd   : > { %v2912_v2 = vpop.f32.mrb[44].mxu0 }
 0x9fe   : > { %v3056_v3 = vpack.c.bf16 %v2912_v2, %v2912_v2  ;;  %v4978_v4 = vpop.f32.mrb[45].mxu0 }
 0x9ff   : > { %v2915_v5 = vpop.f32.mrb[46].mxu0 }
 0xa00   : > { %v4979_v6 = vpop.f32.mrb[47].mxu0  ;;  %5007 = vmatmul.mubr.msk.bf16.vlgmr.msra.gmra.mrb[52].mxu1 %vm1677_vm3, %v3056_v3 }
 0xa01   : > { %5017 = vmatpush3.bf16.msra.mxu1 %v3203_v36  ;;  %5018 = vmatprep.mubr.msk.bf16.mxu1 %vm5375_vm2, %v5374_v11 }
 0xa02   : > { %5030 = vmatprep.subr.bf16.mxu1 %v5374_v11 }
 0xa50   : > { %v2337_v7 = vpop.xlane.xlu0 %2336 }
 0xa51   : > { %v2338_v8 = vmul.f32 0.03125, %v2337_v7 }
 0xa53   : > { %v2339_v9 = vadd.f32 1e-05, %v2338_v8 }
 0xa55   : > { %5250 = vrsqrt.f32 %v2339_v9 }
 0xa5f   : > { %v5251_v10 = vpop.eup %5250 }
 0xa60   : > { %v2341_v15 = vmul.f32 %v5251_v10, %v2333_v56 }
 0xa62   : > { %v2348_v17 = vmul.f32 %v4663_v12, %v2341_v15  ;;  %v4689_v15 = vld [vmem:[%s6276_s29] ss:$0 sm:$0xff] }
 0xa64   : > { %v2355_v18 = vadd.f32 %v4664_v16, %v2348_v17  ;;  %v4690_v17 = vld [vmem:[%s6277_s10] ss:$0 sm:$0xff] }
 0xa66   : > { %v2356_v19 = vmax.f32 %v2355_v18, 0.0 }
 0xa68   : > { %v2958_v21 = vpop.f32.mrb[44].mxu1  ;;  %v2357_v22 = vadd.f32 %v2356_v19, %v5926_v25 }
 0xa69   : > { %v3057_v14 = vpack.c.bf16 %v2958_v21, %v2958_v21  ;;  %v4984_v23 = vpop.f32.mrb[45].mxu1 }
 0xa6a   : > { %v2961_v51 = vpop.f32.mrb[46].mxu1  ;;  %v3256_v26 = vsel %vm1429_vm1, %v2357_v22, 0.0  ;;  %4214 = vst.msk [vmem:[#allocation2] sm:$0xff] %vm1429_vm1, %v2357_v22 }
 0xa6b   : > { %v4985_v27 = vpop.f32.mrb[47].mxu1  ;;  %5001 = vmatmul.mubr.msk.bf16.vlgmr.msra.gmra.mrb[52].mxu0 %vm1677_vm3, %v3057_v14  ;;  %3257 = vadd.xlane.f32.xlu0 %v3256_v26  ;;  %v5211_v51 = vld [vmem:[%s5643_s24 + $0x8] sm:$0xff]  }
 0xa6c   : > { %v3004_v38 = vpop.f32.mrb[48].mxu0  ;;  %5011 = vmatpush3.bf16.msra.mxu0 %v3155_v24  ;;  %5012 = vmatprep.mubr.msk.bf16.mxu0 %vm5375_vm2, %v5374_v11  ;;  %v5210_v24 = vld [vmem:[%s5643_s24] sm:$0xff]  }
 0xa6d   : > { %v4990_v28 = vpop.f32.mrb[49].mxu0  ;;  %5022 = vmatprep.subr.bf16.mxu0 %v5374_v11  ;;  %v3150_v31 = vpack.c.bf16 %v3004_v38, %v3004_v38 }
 0xa6e   : > { %v3007_v25 = vpop.f32.mrb[50].mxu0 }
 0xa6f   : > { %v4991_v29 = vpop.f32.mrb[51].mxu0 }
 0xa70   : > { %v3050_v30 = vpop.f32.mrb[48].mxu1 }
 0xa71   : > { %v3198_v32 = vpack.c.bf16 %v3050_v30, %v3050_v30  ;;  %v4996_v33 = vpop.f32.mrb[49].mxu1 }
 0xa72   : > { %v3053_v34 = vpop.f32.mrb[50].mxu1 }
 0xa73   : > { %v4997_v35 = vpop.f32.mrb[51].mxu1  ;;  %5013 = vmatmul.mubr.msk.bf16.vlgmr.msra.gmra.mrb[56].mxu0 %vm1677_vm3, %v3150_v31  ;;  %5019 = vmatmul.mubr.msk.bf16.vlgmr.msra.gmra.mrb[56].mxu1 %vm1677_vm3, %v3198_v32  ;;  %v4691_v34 = vld [vmem:[%s1331_s13] ss:$0 sm:$0xff] }
 0xa74   : > { %5034 = vmatprep.mubr.msk.bf16.mxu1 %vm5375_vm2, %v5374_v11  ;;  %5026 = vmatprep.mubr.msk.bf16.mxu0 %vm5375_vm2, %v5374_v11 }
 0xa75   : > { %5031 = vmatpush3.bf16.msra.mxu1 %v5208_v47  ;;  %5023 = vmatpush3.bf16.msra.mxu0 %v5210_v24 }
 0xa76   : > { %5032 = vmatprep.subr.bf16.mxu1 %v5374_v11  ;;  %5024 = vmatprep.subr.bf16.mxu0 %v5374_v11 }
 0xa79   : > { %5033 = vmatpush3.bf16.msra.mxu1 %v5209_v48  ;;  %5025 = vmatpush3.bf16.msra.mxu0 %v5211_v51 }
 0xa7a   : > { %5046 = vmatprep.subr.bf16.mxu1 %v5374_v11  ;;  %5038 = vmatprep.subr.bf16.mxu0 %v5374_v11 }
 0xad3   : > { %v3144_v37 = vpop.f32.mrb[52].mxu1 }
 0xad4   : > { %v5008_v39 = vpop.f32.mrb[53].mxu1 }
 0xad5   : > { %v3147_v40 = vpop.f32.mrb[54].mxu1 }
 0xad6   : > { %v5009_v41 = vpop.f32.mrb[55].mxu1 }
 0xad7   : > { %v5212_v41 = vld [vmem:[%s5649_s8] sm:$0xff]  }
 0xaf8   : > { %v3258_v42 = vpop.xlane.xlu0 %3257 }
 0xaf9   : > { %v3259_v43 = vmul.f32 0.03125, %v3258_v42 }
 0xafb   : > { %v3260_v44 = vsub.f32 %v2357_v22, %v3259_v43  ;;  %v5213_v43 = vld [vmem:[%s5649_s8 + $0x8] sm:$0xff]  }
 0xafd   : > { %v3261_v45 = vmul.f32 %v3260_v44, %v3260_v44 }
 0xaff   : > { %v3262_v46 = vsel %vm1429_vm1, %v3261_v45, 0.0 }
 0xb00   : > { %3263 = vadd.xlane.f32.xlu0 %v3262_v46 }
 0xb3e   : > { %v3098_v49 = vpop.f32.mrb[52].mxu0 }
 0xb3f   : > { %v3145_v50 = vadd.f32 %v3144_v37, %v3098_v49  ;;  %v5002_v52 = vpop.f32.mrb[53].mxu0  ;;  %v4692_v37 = vld [vmem:[%s1334_s14] ss:$0 sm:$0xff] }
 0xb40   : > { %v3101_v53 = vpop.f32.mrb[54].mxu0 }
 0xb41   : > { %v5003_v54 = vpop.f32.mrb[55].mxu0 }
 0xb46   : > { %v3191_v55 = vpop.f32.mrb[56].mxu0  ;;  %v3239_v56 = vpop.f32.mrb[56].mxu1 }
 0xb47   : > { %v3197_v57 = vadd.f32 %v3191_v55, %v3145_v50  ;;  %v5014_v58 = vpop.f32.mrb[57].mxu0  ;;  %v5020_v61 = vpop.f32.mrb[57].mxu1 }
 0xb48   : > { %v3194_v63 = vpop.f32.mrb[58].mxu0  ;;  %v3242_v2 = vpop.f32.mrb[58].mxu1 }
 0xb49   : > { %v3245_v3 = vadd.f32 %v3239_v56, %v3197_v57  ;;  %v5015_v4 = vpop.f32.mrb[59].mxu0  ;;  %v5021_v36 = vpop.f32.mrb[59].mxu1 }
 0xb4b   : > { %v3252_v5 = vadd.f32 %v4688_v0, %v3245_v3 }
 0xb4d   : > { %v5990_v6 = vadd.f32 %v3252_v5, %v5774_v1 }
 0xb4f   : > { %v3285_v7 = vsel %vm1429_vm1, %v5990_v6, 0.0 }
 0xb50   : > { %3286 = vadd.xlane.f32.xlu1 %v3285_v7 }
 0xb8d   : > { %v3264_v8 = vpop.xlane.xlu0 %3263 }
 0xb8e   : > { %v3265_v9 = vmul.f32 0.03125, %v3264_v8 }
 0xb90   : > { %v3266_v10 = vadd.f32 1e-05, %v3265_v9 }
 0xb92   : > { %5252 = vrsqrt.f32 %v3266_v10 }
 0xb9c   : > { %v5253_v12 = vpop.eup %5252 }
 0xb9d   : > { %v3268_v16 = vmul.f32 %v5253_v12, %v3260_v44  ;;  %v6065_v12 = vsel %vm1422_vm11, 1.0, %v5374_v11 }
 0xb9f   : > { %v3275_v18 = vmul.f32 %v4689_v15, %v3268_v16  ;;  %v3723_v15 = vsub.f32 1.0, %v6065_v12 }
 0xba1   : > { %v3282_v19 = vadd.f32 %v4690_v17, %v3275_v18  ;;  %v3724_v16 = vmul.f32 -1e+30, %v3723_v15 }
 0xba3   : > { %v3330_v1 = vpack.c.bf16 %v3282_v19, %v3282_v19 }
 0xba5   : > { %5035 = vmatmul.mubr.msk.bf16.vlgmr.msra.gmra.mrb[60].mxu1 %vm1429_vm1, %v3330_v1 }
 0xba6   : > { %5048 = vmatprep.mubr.msk.bf16.mxu1 %vm5375_vm2, %v5374_v11 }
 0xbdd   : > { %v3287_v20 = vpop.xlane.xlu1 %3286 }
 0xbde   : > { %v3288_v21 = vmul.f32 0.03125, %v3287_v20 }
 0xbe0   : > { %v3289_v22 = vsub.f32 %v5990_v6, %v3288_v21 }
 0xbe2   : > { %v3290_v14 = vmul.f32 %v3289_v22, %v3289_v22 }
 0xbe4   : > { %v3291_v23 = vsel %vm1429_vm1, %v3290_v14, 0.0 }
 0xbe5   : > { %3292 = vadd.xlane.f32.xlu1 %v3291_v23 }
 0xc72   : > { %v3293_v26 = vpop.xlane.xlu1 %3292 }
 0xc73   : > { %v3294_v27 = vmul.f32 0.03125, %v3293_v26 }
 0xc75   : > { %v3295_v38 = vadd.f32 1e-05, %v3294_v27 }
 0xc77   : > { %5254 = vrsqrt.f32 %v3295_v38 }
 0xc78   : > { %v3435_v28 = vpop.f32.mrb[60].mxu1 }
 0xc79   : > { %3508 = vrot.lane.b32.xlu0 %v3435_v28, %s5377_s27  ;;  %v5036_v25 = vpop.f32.mrb[61].mxu1  ;;  %v3517_v29 = vpack.c.bf16 %v3435_v28, %v3435_v28 }
 0xc7a   : > { %v3438_v30 = vpop.f32.mrb[62].mxu1 }
 0xc7b   : > { %v5037_v31 = vpop.f32.mrb[63].mxu1  ;;  %v3539_v32 = vsel %vm1677_vm3, %v3517_v29, 0 }
 0xc7c   : > { %5047 = vmatpush3.bf16.xpose.msra.mxu1 %v3539_v32 }
 0xc7d   : > { %3514 = vrot.lane.b32.xlu0 %v3435_v28, %s5376_s2  ;;  %5058 = vmatprep.subr.bf16.mxu1 %v5374_v11 }
 0xc81   : > { %v5255_v33 = vpop.eup %5254 }
 0xc82   : > { %v3297_v35 = vmul.f32 %v5255_v33, %v3289_v22 }
 0xc84   : > { %v3304_v39 = vmul.f32 %v4691_v34, %v3297_v35 }
 0xc86   : > { %v3311_v40 = vadd.f32 %v4692_v37, %v3304_v39 }
 0xc88   : > { %v3329_v42 = vpack.c.bf16 %v3311_v40, %v3311_v40 }
 0xc8a   : > { %5027 = vmatmul.mubr.msk.bf16.vlgmr.msra.gmra.mrb[60].mxu0 %vm1429_vm1, %v3329_v42 }
 0xc8b   : > { %5039 = vmatpush3.bf16.msra.mxu0 %v5212_v41  ;;  %5042 = vmatprep.mubr.msk.bf16.mxu0 %vm5375_vm2, %v5374_v11 }
 0xc8c   : > { %5040 = vmatprep.subr.bf16.mxu0 %v5374_v11 }
 0xc8f   : > { %5041 = vmatpush3.bf16.msra.mxu0 %v5213_v43 }
 0xc90   : > { %5052 = vmatprep.subr.bf16.mxu0 %v5374_v11 }
 0xc92   : > { %5043 = vmatmul.mubr.msk.bf16.vlgmr.msra.gmra.mrb[64].mxu0 %vm1429_vm1, %v3330_v1 }
 0xc93   : > { %5054 = vmatprep.mubr.msk.bf16.mxu0 %vm5375_vm2, %v5374_v11 }
 0xceb   : > { %v3509_v44 = vpop.permute.xlu0 %3508 }
 0xcec   : > { %v3518_v45 = vpack.c.bf16 %v3509_v44, %v3509_v44 }
 0xcee   : > { %v3585_v46 = vsel %vm1677_vm3, %v3518_v45, 0 }
 0xcef   : > { %5053 = vmatpush3.bf16.xpose.msra.mxu0 %v3585_v46  ;;  %v3515_v57 = vpop.permute.xlu0 %3514 }
 0xcf0   : > { %5064 = vmatprep.subr.bf16.mxu0 %v5374_v11  ;;  %v3520_v58 = vpack.c.bf16 %v3515_v57, %v3515_v57 }
 0xcf2   : > { %v3677_v63 = vsel %vm1677_vm3, %v3520_v58, 0 }
 0xd5d   : > { %v3380_v47 = vpop.f32.mrb[60].mxu0 }
 0xd5e   : > { %v3503_v48 = vpack.c.bf16 %v3380_v47, %v3380_v47  ;;  %3500 = vrot.lane.b32.xlu0 %v3380_v47, %s5376_s2  ;;  %3494 = vrot.lane.b32.xlu1 %v3380_v47, %s5377_s27  ;;  %v5028_v49 = vpop.f32.mrb[61].mxu0 }
 0xd5f   : > { %v3383_v50 = vpop.f32.mrb[62].mxu0 }
 0xd60   : > { %v5029_v52 = vpop.f32.mrb[63].mxu0  ;;  %5049 = vmatmul.mubr.msk.bf16.vlgmr.msra.gmra.mrb[64].mxu1 %vm1677_vm3, %v3503_v48 }
 0xd61   : > { %5060 = vmatprep.mubr.msk.bf16.mxu1 %vm5375_vm2, %v5374_v11 }
 0xd62   : > { %3511 = vrot.lane.b32.xlu1 %v3435_v28, %s5378_s7 }
 0xd65   : > { %v6037_v53 = vpop.f32.mrb[64].mxu0 }
 0xd66   : > { %3497 = vrot.lane.b32.xlu1 %v3380_v47, %s5378_s7  ;;  %v5044_v54 = vpop.f32.mrb[65].mxu0  ;;  %v3531_v8 = vpack.c.bf16 %v6037_v53, %v6037_v53 }
 0xd67   : > { %v3490_v55 = vpop.f32.mrb[66].mxu0 }
 0xd68   : > { %v5045_v56 = vpop.f32.mrb[67].mxu0  ;;  %v3805_v10 = vsel %vm1947_vm4, %v3531_v8, 0 }
 0xdd0   : > { %v3495_v61 = vpop.permute.xlu1 %3494  ;;  %v3501_v4 = vpop.permute.xlu0 %3500 }
 0xdd1   : > { %v3504_v0 = vpack.c.bf16 %v3495_v61, %v3495_v61  ;;  %v3506_v5 = vpack.c.bf16 %v3501_v4, %v3501_v4 }
 0xdd3   : > { %5055 = vmatmul.mubr.msk.bf16.vlgmr.msra.gmra.mrb[68].mxu0 %vm1677_vm3, %v3504_v0 }
 0xdd4   : > { %5065 = vmatpush3.bf16.xpose.msra.mxu0 %v3677_v63  ;;  %v3512_v2 = vpop.permute.xlu1 %3511  ;;  %5066 = vmatprep.mubr.msk.bf16.mxu0 %vm5375_vm2, %v5374_v11 }
 0xdd5   : > { %v3519_v3 = vpack.c.bf16 %v3512_v2, %v3512_v2  ;;  %5076 = vmatprep.subr.bf16.mxu0 %v5374_v11 }
 0xdd7   : > { %v3631_v36 = vsel %vm1677_vm3, %v3519_v3, 0 }
 0xdd8   : > { %5059 = vmatpush3.bf16.xpose.msra.mxu1 %v3631_v36  ;;  %v3498_v7 = vpop.permute.xlu1 %3497 }
 0xdd9   : > { %5070 = vmatprep.subr.bf16.mxu1 %v5374_v11  ;;  %v3505_v9 = vpack.c.bf16 %v3498_v7, %v3498_v7 }
 0xddb   : > { %5067 = vmatmul.mubr.msk.bf16.vlgmr.msra.gmra.mrb[72].mxu0 %vm1677_vm3, %v3506_v5 }
 0xddc   : > { %5078 = vmatprep.mubr.msk.bf16.mxu0 %vm5375_vm2, %v5374_v11 }
 0xddf   : > { %5061 = vmatmul.mubr.msk.bf16.vlgmr.msra.gmra.mrb[68].mxu1 %vm1677_vm3, %v3505_v9 }
 0xde0   : > { %5071 = vmatpush3.bf16.msra.mxu1 %v3805_v10  ;;  %5072 = vmatprep.mubr.msk.bf16.mxu1 %vm5375_vm2, %v5374_v11 }
 0xde1   : > { %5082 = vmatprep.subr.bf16.mxu1 %v5374_v11 }
 0xe33   : > { %v3575_v17 = vpop.f32.mrb[64].mxu1 }
 0xe34   : > { %v3719_v18 = vmul.f32 %v6065_v12, %v3575_v17  ;;  %v5050_v19 = vpop.f32.mrb[65].mxu1 }
 0xe35   : > { %v3578_v1 = vpop.f32.mrb[66].mxu1 }
 0xe36   : > { %v5051_v20 = vpop.f32.mrb[67].mxu1  ;;  %v3725_v62 = vadd.f32 %v3724_v16, %v3719_v18 }
 0xe38   : > { %v3729_v13 = vsel %vm1677_vm3, %v3725_v62, -inf }
 0xe39   : > { %3730 = vmax.xlane.f32.xlu1 %v3729_v13 }
 0xea6   : > { %v3621_v21 = vpop.f32.mrb[68].mxu0 }
 0xea7   : > { %v3720_v59 = vmul.f32 %v6065_v12, %v3621_v21  ;;  %v5056_v60 = vpop.f32.mrb[69].mxu0 }
 0xea8   : > { %v3624_v22 = vpop.f32.mrb[70].mxu0 }
 0xea9   : > { %v5057_v14 = vpop.f32.mrb[71].mxu0  ;;  %v3726_v23 = vadd.f32 %v3724_v16, %v3720_v59 }
 0xeab   : > { %v3732_v24 = vsel %vm1677_vm3, %v3726_v23, -inf }
 0xeac   : > { %3733 = vmax.xlane.f32.xlu0 %v3732_v24 }
 0xeae   : > { %v3713_v51 = vpop.f32.mrb[72].mxu0 }
 0xeaf   : > { %v3722_v26 = vmul.f32 %v6065_v12, %v3713_v51  ;;  %v5068_v27 = vpop.f32.mrb[73].mxu0 }
 0xeb0   : > { %v3716_v38 = vpop.f32.mrb[74].mxu0 }
 0xeb1   : > { %v5069_v28 = vpop.f32.mrb[75].mxu0  ;;  %v3728_v25 = vadd.f32 %v3724_v16, %v3722_v26 }
 0xeb2   : > { %v3667_v29 = vpop.f32.mrb[68].mxu1 }
 0xeb3   : > { %v3721_v30 = vmul.f32 %v6065_v12, %v3667_v29  ;;  %v5062_v31 = vpop.f32.mrb[69].mxu1  ;;  %v3738_v32 = vsel %vm1677_vm3, %v3728_v25, -inf }
 0xeb4   : > { %v3670_v33 = vpop.f32.mrb[70].mxu1  ;;  %3739 = vmax.xlane.f32.xlu1 %v3738_v32 }
 0xeb5   : > { %v5063_v34 = vpop.f32.mrb[71].mxu1  ;;  %v3727_v35 = vadd.f32 %v3724_v16, %v3721_v30  ;;  %v3324_v30 = vld [vmem:[%s5652_s28] sm:$0xf] }
 0xeb6   : > { %v4037_v33 = vsel %vm1947_vm4, %v3324_v30, 0  ;;  %v3325_v34 = vld [vmem:[%s5652_s28 + $0x4] sm:$0xf]  ;;  %v4716_v30 = vld [vmem:[%s1340_s19] ss:$0 sm:$0xff] }
 0xeb7   : > { %v3735_v37 = vsel %vm1677_vm3, %v3727_v35, -inf }
 0xeb8   : > { %3736 = vmax.xlane.f32.xlu0 %v3735_v37 }
 0xec6   : > { %v3731_v39 = vpop.xlane.xlu1 %3730 }
 0xec7   : > { %v3741_v40 = vsub.f32 %v3725_v62, %v3731_v39 }
 0xec9   : > { %v3745_v41 = vmul.f32 1.442695, %v3741_v40 }
 0xecb   : > { %5256 = vpow2.f32 %v3745_v41 }
 0xed5   : > { %v5257_v42 = vpop.eup %5256 }
 0xed6   : > { %v3753_v43 = vmul.f32 %v5257_v42, %v6065_v12 }
 0xed8   : > { %v3757_v44 = vsel %vm1677_vm3, %v3753_v43, 0.0 }
 0xed9   : > { %3758 = vadd.xlane.f32.xlu0 %v3757_v44 }
 0xf39   : > { %v3734_v45 = vpop.xlane.xlu0 %3733 }
 0xf3a   : > { %v3742_v46 = vsub.f32 %v3726_v23, %v3734_v45  ;;  %v3326_v45 = vld [vmem:[%s5652_s28 + $0x8] sm:$0xf] }
 0xf3c   : > { %v3747_v47 = vmul.f32 1.442695, %v3742_v46 }
 0xf3e   : > { %5258 = vpow2.f32 %v3747_v47 }
 0xf41   : > { %v3740_v61 = vpop.xlane.xlu1 %3739 }
 0xf42   : > { %v3744_v63 = vsub.f32 %v3728_v25, %v3740_v61 }
 0xf44   : > { %v3751_v3 = vmul.f32 1.442695, %v3744_v63 }
 0xf45   : > { %v3737_v48 = vpop.xlane.xlu0 %3736 }
 0xf46   : > { %v3743_v49 = vsub.f32 %v3727_v35, %v3737_v48  ;;  %v3991_v35 = vsel %vm1947_vm4, %v3325_v34, 0 }
 0xf48   : > { %v5259_v50 = vpop.eup %5258  ;;  %v3749_v52 = vmul.f32 1.442695, %v3743_v49  ;;  %v4084_v49 = vsel %vm1947_vm4, %v3326_v45, 0 }
 0xf49   : > { %v3754_v54 = vmul.f32 %v5259_v50, %v6065_v12 }
 0xf4a   : > { %5260 = vpow2.f32 %v3749_v52 }
 0xf4b   : > { %v3760_v55 = vsel %vm1677_vm3, %v3754_v54, 0.0 }
 0xf4c   : > { %3761 = vadd.xlane.f32.xlu1 %v3760_v55 }
 0xf54   : > { %v5261_v56 = vpop.eup %5260 }
 0xf55   : > { %v3755_v57 = vmul.f32 %v5261_v56, %v6065_v12 }
 0xf57   : > { %v3763_v58 = vsel %vm1677_vm3, %v3755_v57, 0.0 }
 0xf58   : > { %3764 = vadd.xlane.f32.xlu0 %v3763_v58 }
 0xf5d   : > { %3525 = vrot.lane.b32.xlu1 %v6037_v53, %s5378_s7 }
 0xf66   : > { %v3759_v0 = vpop.xlane.xlu0 %3758 }
 0xf67   : > { %v3769_v2 = vmax.f32 %v3759_v0, 1e-30  ;;  %vm3777_vm6 = vcmp.gt.f32.partialorder %v3759_v0, 0.0 }
 0xf69   : > { %5262 = vrcp.f32 %v3769_v2 }
 0xf6a   : > { %5264 = vpow2.f32 %v3751_v3 }
 0xf6e   : > { %3522 = vrot.lane.b32.xlu0 %v6037_v53, %s5377_s27 }
 0xf73   : > { %v5263_v4 = vpop.eup %5262 }
 0xf74   : > { %v3781_v36 = vmul.f32 %v5263_v4, %v3753_v43  ;;  %v5265_v8 = vpop.eup %5264  ;;  %v3327_v43 = vld [vmem:[%s5652_s28 + $0xc] sm:$0xf] }
 0xf75   : > { %v3756_v9 = vmul.f32 %v5265_v8, %v6065_v12  ;;  %v4132_v44 = vsel %vm1947_vm4, %v3327_v43, 0 }
 0xf76   : > { %v3793_v5 = vsel %vm3777_vm6, %v3781_v36, 0.0 }
 0xf77   : > { %v3797_v7 = vpack.c.bf16 %v3793_v5, %v3793_v5  ;;  %v3766_v10 = vsel %vm1677_vm3, %v3756_v9, 0.0 }
 0xf79   : > { %5073 = vmatmul.mubr.msk.bf16.vlgmr.msra.gmra.mrb[72].mxu1 %vm1677_vm3, %v3797_v7 }
 0xf7a   : > { %5084 = vmatprep.mubr.msk.bf16.mxu1 %vm5375_vm2, %v5374_v11 }
 0xf81   : > { %3767 = vadd.xlane.f32.xlu1 %v3766_v10 }
 0xf92   : > { %3528 = vrot.lane.b32.xlu1 %v6037_v53, %s5376_s2 }
 0xfd9   : > { %v3762_v15 = vpop.xlane.xlu1 %3761 }
 0xfda   : > { %v3770_v16 = vmax.f32 %v3762_v15, 1e-30  ;;  %vm3778_vm12 = vcmp.gt.f32.partialorder %v3762_v15, 0.0 }
 0xfdc   : > { %5266 = vrcp.f32 %v3770_v16 }
 0xfdd   : > { %v3526_v17 = vpop.permute.xlu1 %3525 }
 0xfde   : > { %v3533_v18 = vpack.c.bf16 %v3526_v17, %v3526_v17 }
 0xfe0   : > { %v3897_v19 = vsel %vm1947_vm4, %v3533_v18, 0 }
 0xfe1   : > { %5083 = vmatpush3.bf16.msra.mxu1 %v3897_v19 }
 0xfe2   : > { %5094 = vmatprep.subr.bf16.mxu1 %v5374_v11 }
 0xfe5   : > { %v3765_v1 = vpop.xlane.xlu0 %3764 }
 0xfe6   : > { %v5267_v20 = vpop.eup %5266  ;;  %v3771_v62 = vmax.f32 %v3765_v1, 1e-30  ;;  %vm3779_vm13 = vcmp.gt.f32.partialorder %v3765_v1, 0.0 }
 0xfe7   : > { %v3782_v12 = vmul.f32 %v5267_v20, %v3754_v54  ;;  %v4714_v20 = vld [vmem:[%s1386_s15] ss:$0 sm:$0xff] }
 0xfe8   : > { %5268 = vrcp.f32 %v3771_v62 }
 0xfe9   : > { %v3523_v13 = vpop.permute.xlu0 %3522  ;;  %v3794_v59 = vsel %vm3778_vm12, %v3782_v12, 0.0 }
 0xfea   : > { %v3532_v21 = vpack.c.bf16 %v3523_v13, %v3523_v13  ;;  %v3798_v60 = vpack.c.bf16 %v3794_v59, %v3794_v59 }
 0xfec   : > { %v3851_v53 = vsel %vm1947_vm4, %v3532_v21, 0 }
 0xfed   : > { %5077 = vmatpush3.bf16.msra.mxu0 %v3851_v53 }
 0xfee   : > { %5088 = vmatprep.subr.bf16.mxu0 %v5374_v11 }
 0xff0   : > { %5079 = vmatmul.mubr.msk.bf16.vlgmr.msra.gmra.mrb[76].mxu0 %vm1677_vm3, %v3798_v60 }
 0xff1   : > { %5090 = vmatprep.mubr.msk.bf16.mxu0 %vm5375_vm2, %v5374_v11 }
 0xff2   : > { %v5269_v22 = vpop.eup %5268 }
 0xff3   : > { %v3783_v14 = vmul.f32 %v5269_v22, %v3755_v57 }
 0xff5   : > { %v3795_v23 = vsel %vm3779_vm13, %v3783_v14, 0.0 }
 0xff6   : > { %v3799_v24 = vpack.c.bf16 %v3795_v23, %v3795_v23 }
 0xff8   : > { %5085 = vmatmul.mubr.msk.bf16.vlgmr.msra.gmra.mrb[76].mxu1 %vm1677_vm3, %v3799_v24 }
 0xff9   : > { %5096 = vmatprep.mubr.msk.bf16.mxu1 %vm5375_vm2, %v5374_v11  ;;  %5095 = vmatpush3.bf16.msra.mxu1 %v3991_v35 }
 0xffa   : > { %5106 = vmatprep.subr.bf16.mxu1 %v5374_v11 }
0x100e   : > { %v3768_v51 = vpop.xlane.xlu1 %3767 }
0x100f   : > { %v3772_v26 = vmax.f32 %v3768_v51, 1e-30  ;;  %vm3780_vm14 = vcmp.gt.f32.partialorder %v3768_v51, 0.0 }
0x1011   : > { %5270 = vrcp.f32 %v3772_v26 }
0x1012   : > { %v3529_v27 = vpop.permute.xlu1 %3528 }
0x1013   : > { %v3534_v38 = vpack.c.bf16 %v3529_v27, %v3529_v27 }
0x1015   : > { %v3943_v28 = vsel %vm1947_vm4, %v3534_v38, 0 }
0x1016   : > { %5089 = vmatpush3.bf16.msra.mxu0 %v3943_v28 }
0x1017   : > { %5100 = vmatprep.subr.bf16.mxu0 %v5374_v11 }
0x101b   : > { %v5271_v25 = vpop.eup %5270 }
0x101c   : > { %v3784_v29 = vmul.f32 %v5271_v25, %v3756_v9 }
0x101e   : > { %v3796_v31 = vsel %vm3780_vm14, %v3784_v29, 0.0 }
0x101f   : > { %v3800_v32 = vpack.c.bf16 %v3796_v31, %v3796_v31 }
0x1021   : > { %5091 = vmatmul.mubr.msk.bf16.vlgmr.msra.gmra.mrb[80].mxu0 %vm1677_vm3, %v3800_v32 }
0x1022   : > { %5101 = vmatpush3.bf16.msra.mxu0 %v4037_v33  ;;  %5102 = vmatprep.mubr.msk.bf16.mxu0 %vm5375_vm2, %v5374_v11 }
0x1023   : > { %5112 = vmatprep.subr.bf16.mxu0 %v5374_v11 }
0x104c   : > { %v3841_v37 = vpop.f32.mrb[72].mxu1 }
0x104d   : > { %v3985_v39 = vpack.c.bf16 %v3841_v37, %v3841_v37  ;;  %v5074_v40 = vpop.f32.mrb[73].mxu1 }
0x104e   : > { %v3844_v41 = vpop.f32.mrb[74].mxu1 }
0x104f   : > { %v5075_v42 = vpop.f32.mrb[75].mxu1  ;;  %5103 = vmatmul.mubr.msk.bf16.vlgmr.msra.gmra.mrb[84].mxu0 %vm1677_vm3, %v3985_v39 }
0x1050   : > { %5114 = vmatprep.mubr.msk.bf16.mxu0 %vm5375_vm2, %v5374_v11  ;;  %5113 = vmatpush3.bf16.msra.mxu0 %v4132_v44 }
0x10c3   : > { %v3887_v46 = vpop.f32.mrb[76].mxu0 }
0x10c4   : > { %v3986_v47 = vpack.c.bf16 %v3887_v46, %v3887_v46  ;;  %v5080_v48 = vpop.f32.mrb[77].mxu0 }
0x10c5   : > { %v3890_v50 = vpop.f32.mrb[78].mxu0 }
0x10c6   : > { %v5081_v52 = vpop.f32.mrb[79].mxu0  ;;  %5097 = vmatmul.mubr.msk.bf16.vlgmr.msra.gmra.mrb[80].mxu1 %vm1677_vm3, %v3986_v47 }
0x10c7   : > { %5107 = vmatpush3.bf16.msra.mxu1 %v4084_v49  ;;  %5108 = vmatprep.mubr.msk.bf16.mxu1 %vm5375_vm2, %v5374_v11 }
0x10cb   : > { %v3933_v54 = vpop.f32.mrb[76].mxu1 }
0x10cc   : > { %v4079_v55 = vpack.c.bf16 %v3933_v54, %v3933_v54  ;;  %v5086_v56 = vpop.f32.mrb[77].mxu1 }
0x10cd   : > { %v3936_v57 = vpop.f32.mrb[78].mxu1 }
0x10ce   : > { %v5087_v58 = vpop.f32.mrb[79].mxu1  ;;  %5109 = vmatmul.mubr.msk.bf16.vlgmr.msra.gmra.mrb[84].mxu1 %vm1677_vm3, %v4079_v55 }
0x10f4   : > { %v3979_v61 = vpop.f32.mrb[80].mxu0 }
0x10f5   : > { %v4127_v0 = vpack.c.bf16 %v3979_v61, %v3979_v61  ;;  %v5092_v63 = vpop.f32.mrb[81].mxu0 }
0x10f6   : > { %v3982_v2 = vpop.f32.mrb[82].mxu0 }
0x10f7   : > { %v5093_v3 = vpop.f32.mrb[83].mxu0  ;;  %5115 = vmatmul.mubr.msk.bf16.vlgmr.msra.gmra.mrb[88].mxu0 %vm1677_vm3, %v4127_v0 }
0x1122   : > { %v4073_v4 = vpop.f32.mrb[84].mxu0 }
0x1123   : > { %v5104_v36 = vpop.f32.mrb[85].mxu0 }
0x1124   : > { %v4076_v5 = vpop.f32.mrb[86].mxu0 }
0x1125   : > { %v5105_v11 = vpop.f32.mrb[87].mxu0 }
0x1199   : > { %v4027_v7 = vpop.f32.mrb[80].mxu1 }
0x119a   : > { %v4074_v8 = vadd.f32 %v4073_v4, %v4027_v7  ;;  %v5098_v9 = vpop.f32.mrb[81].mxu1 }
0x119b   : > { %v4030_v10 = vpop.f32.mrb[82].mxu1 }
0x119c   : > { %v5099_v15 = vpop.f32.mrb[83].mxu1 }
0x11a1   : > { %v4120_v16 = vpop.f32.mrb[84].mxu1 }
0x11a2   : > { %v4126_v17 = vadd.f32 %v4120_v16, %v4074_v8  ;;  %v5110_v18 = vpop.f32.mrb[85].mxu1 }
0x11a3   : > { %v4123_v19 = vpop.f32.mrb[86].mxu1 }
0x11a4   : > { %v5111_v1 = vpop.f32.mrb[87].mxu1 }
0x11ca   : > { %v4168_v62 = vpop.f32.mrb[88].mxu0 }
0x11cb   : > { %v4174_v12 = vadd.f32 %v4168_v62, %v4126_v17  ;;  %v5116_v13 = vpop.f32.mrb[89].mxu0 }
0x11cc   : > { %v4171_v21 = vpop.f32.mrb[90].mxu0 }
0x11cd   : > { %v4181_v59 = vadd.f32 %v4714_v20, %v4174_v12  ;;  %v5117_v53 = vpop.f32.mrb[91].mxu0 }
0x11cf   : > { %v4182_v60 = vadd.f32 %v4181_v59, %v5990_v6  ;;  %v4715_v6 = vld [vmem:[%s1337_s17] ss:$0 sm:$0xff] }
0x11d1   : > { %v4185_v22 = vsel %vm1429_vm1, %v4182_v60, 0.0 }
0x11d2   : > { %4186 = vadd.xlane.f32.xlu0 %v4185_v22 }
0x125f   : > { %v4187_v14 = vpop.xlane.xlu0 %4186 }
0x1260   : > { %v4188_v23 = vmul.f32 0.03125, %v4187_v14 }
0x1262   : > { %v4189_v24 = vsub.f32 %v4182_v60, %v4188_v23 }
0x1264   : > { %v4190_v51 = vmul.f32 %v4189_v24, %v4189_v24 }
0x1266   : > { %v4191_v26 = vsel %vm1429_vm1, %v4190_v51, 0.0 }
0x1267   : > { %4192 = vadd.xlane.f32.xlu1 %v4191_v26 }
0x12f4   : > { %v4193_v27 = vpop.xlane.xlu1 %4192 }
0x12f5   : > { %v4194_v38 = vmul.f32 0.03125, %v4193_v27 }
0x12f7   : > { %v4195_v28 = vadd.f32 1e-05, %v4194_v38 }
0x12f9   : > { %5272 = vrsqrt.f32 %v4195_v28 }
0x1303   : > { %v5273_v25 = vpop.eup %5272 }
0x1304   : > { %v4197_v29 = vmul.f32 %v5273_v25, %v4189_v24 }
0x1306   : > { %v4204_v31 = vmul.f32 %v4715_v6, %v4197_v29 }
0x1308   : > { %v4211_v32 = vadd.f32 %v4716_v30, %v4204_v31 }
0x130a   : > { %v4212_v33 = vmax.f32 %v4211_v32, 0.0 }
0x130c   : > { %v4213_v34 = vadd.f32 %v4212_v33, %v4182_v60 }
0x130e   : > { %4215 = vst.msk [vmem:[#allocation3] sm:$0xff] %vm1429_vm1, %v4213_v34  ;;  %4216 = vst.msk [vmem:[%s1390_s11] sm:$0xff] %vm1429_vm1, %v4213_v34 }
0x130f PF: > { %s6285_s15 = sld [smem:[#allocation42_spill]]  ;;  %s6286_s12 = sld [smem:[#allocation40_spill]] }
0x1310   : > { %s6287_s7 = sld [smem:[#allocation41_spill]]  ;;  %s6288_s11 = sld [smem:[#allocation43_spill]] }
0x1311   : > { %s6289_s0 = sld [smem:[#allocation44_spill]] }
0x1315   : > { %s83_s23 = sadd.s32 1, %s6285_s15  }
0x1316   : > { %p80_p4 = scmp.ge.s32.totalorder %s83_s23, 6  }
0x1318   :  { %82 = sbr.rel (!%p80_p4) target bundleno = 94 (0x5e), region = 285 }

</bundles_post_ra>
